<compile_context>
chip_gen: v7x
topology: tpu7x:2x2x1
jax: 0.10.0
libtpu: 0.0.40
codegen_flags: <defaults>
</compile_context>

<pallas_src>
import jax
import jax.numpy as jnp
from jax.experimental import pallas as pl
from jax.experimental.pallas import tpu as pltpu

EPS = 1e-5
OUT_DIM = 230
OUT_PAD = 256        # lane-dense padded output width (multiple of 128)


# ---------------------------------------------------------------------------
# Kernel
# ---------------------------------------------------------------------------
def classifier_kernel(
    x_ref, g_ref,
    wg_ref, bg_ref,
    w1a_ref, w1b_ref, b1_ref,
    w2_ref, b2_ref,
    w3_ref, b3_ref,
    out_ref,
):
    x = x_ref[...]                     # (TM, E)  f32
    g = g_ref[...]                     # (TM, 1)  f32

    # gender encoder: Linear(1,32) with BN folded in. K=1 matmul == broadcast mul.
    ge = jnp.maximum(g * wg_ref[...] + bg_ref[...], 0.0)          # (TM, 32) f32

    # fc layer 1 (BN folded): concat([x, ge]) @ W1 == x @ W1a + ge @ W1b
    h = (jnp.dot(x.astype(jnp.bfloat16), w1a_ref[...],
                 preferred_element_type=jnp.float32)
         + jnp.dot(ge.astype(jnp.bfloat16), w1b_ref[...],
                   preferred_element_type=jnp.float32)
         + b1_ref[...])
    h = jnp.maximum(h, 0.0)                                        # (TM, 2048) f32

    # fc layer 2 (BN folded)
    h = jnp.dot(h.astype(jnp.bfloat16), w2_ref[...],
                preferred_element_type=jnp.float32) + b2_ref[...]
    h = jnp.maximum(h, 0.0)                                        # (TM, 512) f32

    # classifier (output padded to 256 lanes -> unmasked vector stores)
    out_ref[...] = (jnp.dot(h.astype(jnp.bfloat16), w3_ref[...],
                            preferred_element_type=jnp.float32)
                    + b3_ref[...])                                 # (TM, 256) f32


# ---------------------------------------------------------------------------
# Wrapper: fold BN, cast weights to bf16, pad output, batch-tiled pallas_call
# ---------------------------------------------------------------------------
def prepare_params(p):
    """Fold eval-mode BatchNorm into the preceding Linear and cast to bf16."""
    f32, bf16 = jnp.float32, jnp.bfloat16

    def bn_scale(gamma, var):
        return gamma * jax.lax.rsqrt(var + EPS)

    # gender encoder + BN32 (kept f32: tiny, used as a broadcast multiply)
    sg = bn_scale(p["gbn_g"], p["gbn_v"])
    wg = (p["wg"] * sg).astype(f32)
    bg = ((p["bg"] - p["gbn_m"]) * sg + p["gbn_b"]).astype(f32)

    # Linear(emb_dim + 32, 2048) + BN2048
    s1 = bn_scale(p["bn1_g"], p["bn1_v"])
    w1a = (p["w1a"] * s1).astype(bf16)
    w1b = (p["w1b"] * s1).astype(bf16)
    b1 = ((p["b1"] - p["bn1_m"]) * s1 + p["bn1_b"]).astype(f32)

    # Linear(2048, 512) + BN512
    s2 = bn_scale(p["bn2_g"], p["bn2_v"])
    w2 = (p["w2"] * s2).astype(bf16)
    b2 = ((p["b2"] - p["bn2_m"]) * s2 + p["bn2_b"]).astype(f32)

    # classifier Linear(512, 230), zero-padded to 256 output lanes
    w3 = jnp.pad(p["w3"], ((0, 0), (0, OUT_PAD - OUT_DIM))).astype(bf16)
    b3 = jnp.pad(p["b3"], ((0, 0), (0, OUT_PAD - OUT_DIM))).astype(f32)

    return (wg, bg, w1a, w1b, b1, w2, b2, w3, b3)


def classifier_forward(x, gender, params):
    """x: (B, emb_dim) backbone embedding, gender: (B, 1). Returns (B, 230) logits."""
    B, E = x.shape
    weights = prepare_params(params)

    # Batch tile: sublane-aligned, capped at 256 rows. 256x2048 f32 activations
    # (~2 MiB) + ~3 MiB bf16 weights fits comfortably even in v7x's 64 MiB VMEM,
    # and the "parallel" batch axis lets the two v7x TensorCores split the grid.
    bp = ((B + 7) // 8) * 8
    tm = min(256, bp)
    bp = pl.cdiv(bp, tm) * tm
    if bp != B:
        x = jnp.pad(x, ((0, bp - B), (0, 0)))
        gender = jnp.pad(gender, ((0, bp - B), (0, 0)))

    grid = (bp // tm,)

    def batch_spec(shape):
        return pl.BlockSpec(shape, lambda i: (i, 0))

    def const_spec(w):                      # weights stay VMEM-resident across tiles
        return pl.BlockSpec(w.shape, lambda i: (0, 0))

    in_specs = ([batch_spec((tm, E)), batch_spec((tm, 1))]
                + [const_spec(w) for w in weights])

    flops = 2 * bp * (E * 2048 + 32 * 2048 + 2048 * 512 + 512 * OUT_PAD)
    bytes_accessed = (sum(int(a.size) * a.dtype.itemsize for a in (x, gender, *weights))
                      + bp * OUT_PAD * 4)

    out = pl.pallas_call(
        classifier_kernel,
        out_shape=jax.ShapeDtypeStruct((bp, OUT_PAD), jnp.float32),
        grid=grid,
        in_specs=in_specs,
        out_specs=pl.BlockSpec((tm, OUT_PAD), lambda i: (i, 0)),
        compiler_params=pltpu.CompilerParams(
            dimension_semantics=("parallel",),
            vmem_limit_bytes=32 << 20,
        ),
        cost_estimate=pl.CostEstimate(flops=flops, transcendentals=0,
                                      bytes_accessed=bytes_accessed),
    )(x, gender, *weights)

    return out[:B, :OUT_DIM]


# ---------------------------------------------------------------------------
# Parameter init + pure-JAX reference (original, unfolded f32 math)
# ---------------------------------------------------------------------------
def init_params(key, emb_dim):
    ks = jax.random.split(key, 21)
    f32 = jnp.float32

    def w(k, shape, scale=0.02):
        return (scale * jax.random.normal(k, shape)).astype(f32)

    def row(k, n, scale=0.02):
        return (scale * jax.random.normal(k, (1, n))).astype(f32)

    return {
        # gender encoder Linear(1, 32)
        "wg": w(ks[0], (1, 32)),
        "bg": row(ks[1], 32),
        # BatchNorm1d(32)
        "gbn_g": (1.0 + 0.1 * jax.random.normal(ks[2], (1, 32))).astype(f32),
        "gbn_b": row(ks[3], 32),
        "gbn_m": row(ks[4], 32, scale=0.1),
        "gbn_v": (0.5 + jax.random.uniform(ks[5], (1, 32))).astype(f32),
        # Linear(emb_dim + 32, 2048) split into emb part and gender part
        "w1a": w(ks[6], (emb_dim, 2048)),
        "w1b": w(ks[7], (32, 2048)),
        "b1": row(ks[8], 2048),
        "bn1_g": (1.0 + 0.1 * jax.random.normal(ks[9], (1, 2048))).astype(f32),
        "bn1_b": row(ks[10], 2048),
        "bn1_m": row(ks[11], 2048, scale=0.1),
        "bn1_v": (0.5 + jax.random.uniform(ks[12], (1, 2048))).astype(f32),
        # Linear(2048, 512)
        "w2": w(ks[13], (2048, 512)),
        "b2": row(ks[14], 512),
        "bn2_g": (1.0 + 0.1 * jax.random.normal(ks[15], (1, 512))).astype(f32),
        "bn2_b": row(ks[16], 512),
        "bn2_m": row(ks[17], 512, scale=0.1),
        "bn2_v": (0.5 + jax.random.uniform(ks[18], (1, 512))).astype(f32),
        # classifier Linear(512, 230)
        "w3": w(ks[19], (512, 230)),
        "b3": row(ks[20], 230),
    }


def _bn(h, gamma, beta, mean, var):
    return (h - mean) * jax.lax.rsqrt(var + EPS) * gamma + beta


def reference_forward(x, gender, p):
    """Full-precision pure-JAX reference matching the PyTorch module (eval mode)."""
    ge = gender @ p["wg"] + p["bg"]
    ge = jnp.maximum(_bn(ge, p["gbn_g"], p["gbn_b"], p["gbn_m"], p["gbn_v"]), 0.0)
    w1 = jnp.concatenate([p["w1a"], p["w1b"]], axis=0)
    h = jnp.concatenate([x, ge], axis=1) @ w1 + p["b1"]
    h = jnp.maximum(_bn(h, p["bn1_g"], p["bn1_b"], p["bn1_m"], p["bn1_v"]), 0.0)
    h = h @ p["w2"] + p["b2"]
    h = jnp.maximum(_bn(h, p["bn2_g"], p["bn2_b"], p["bn2_m"], p["bn2_v"]), 0.0)
    return h @ p["w3"] + p["b3"]


if __name__ == "__main__":
    B, EMB_DIM = 8, 64
    key = jax.random.PRNGKey(0)
    k_x, k_g, k_p = jax.random.split(key, 3)

    x = jax.random.normal(k_x, (B, EMB_DIM), dtype=jnp.float32)     # backbone embedding
    gender = jax.random.bernoulli(k_g, 0.5, (B, 1)).astype(jnp.float32)
    params = init_params(k_p, EMB_DIM)

    fwd = jax.jit(classifier_forward)
    out = jax.block_until_ready(fwd(x, gender, params))
    assert out.shape == (B, OUT_DIM)

    ref = reference_forward(x, gender, params)
    # bf16 weight streaming => compare against the f32 reference with a loose tol.
    assert jnp.allclose(out, ref, atol=2e-2, rtol=2e-2), float(jnp.max(jnp.abs(out - ref)))

    print("KERNEL_OK")
</pallas_src>

<mosaic_0001>
module attributes {stable_mosaic.version = 11 : i64} {
  func.func @classifier_kernel(%arg0: i32, %arg1: memref<8x64xf32, #tpu.memory_space<vmem>>, %arg2: memref<8x1xf32, #tpu.memory_space<vmem>>, %arg3: memref<1x32xf32, #tpu.memory_space<vmem>>, %arg4: memref<1x32xf32, #tpu.memory_space<vmem>>, %arg5: memref<64x2048xbf16, #tpu.memory_space<vmem>>, %arg6: memref<32x2048xbf16, #tpu.memory_space<vmem>>, %arg7: memref<1x2048xf32, #tpu.memory_space<vmem>>, %arg8: memref<2048x512xbf16, #tpu.memory_space<vmem>>, %arg9: memref<1x512xf32, #tpu.memory_space<vmem>>, %arg10: memref<512x256xbf16, #tpu.memory_space<vmem>>, %arg11: memref<1x256xf32, #tpu.memory_space<vmem>>, %arg12: memref<8x256xf32, #tpu.memory_space<vmem>>) attributes {dimension_semantics = [#tpu.dimension_semantics<parallel>], iteration_bounds = array<i64: 1>, scalar_prefetch = 0 : i64, scratch_operands = 0 : i64, tpu.core_type = #tpu.core_type<tc>, window_params = [{transform_indices = @transform_0, window_bounds = array<i64: 8, 64>}, {transform_indices = @transform_1, window_bounds = array<i64: 8, 1>}, {pipeline_mode = #tpu.pipeline_mode<synchronous>, transform_indices = @transform_2, window_bounds = array<i64: 1, 32>}, {pipeline_mode = #tpu.pipeline_mode<synchronous>, transform_indices = @transform_3, window_bounds = array<i64: 1, 32>}, {pipeline_mode = #tpu.pipeline_mode<synchronous>, transform_indices = @transform_4, window_bounds = array<i64: 64, 2048>}, {pipeline_mode = #tpu.pipeline_mode<synchronous>, transform_indices = @transform_5, window_bounds = array<i64: 32, 2048>}, {pipeline_mode = #tpu.pipeline_mode<synchronous>, transform_indices = @transform_6, window_bounds = array<i64: 1, 2048>}, {pipeline_mode = #tpu.pipeline_mode<synchronous>, transform_indices = @transform_7, window_bounds = array<i64: 2048, 512>}, {pipeline_mode = #tpu.pipeline_mode<synchronous>, transform_indices = @transform_8, window_bounds = array<i64: 1, 512>}, {pipeline_mode = #tpu.pipeline_mode<synchronous>, transform_indices = @transform_9, window_bounds = array<i64: 512, 256>}, {pipeline_mode = #tpu.pipeline_mode<synchronous>, transform_indices = @transform_10, window_bounds = array<i64: 1, 256>}, {transform_indices = @transform_11, window_bounds = array<i64: 8, 256>}]} {
    %c0 = arith.constant 0 : index
    %c0_0 = arith.constant 0 : index
    %0 = vector.load %arg1[%c0, %c0_0] : memref<8x64xf32, #tpu.memory_space<vmem>>, vector<8x64xf32>
    %c0_1 = arith.constant 0 : index
    %c0_2 = arith.constant 0 : index
    %1 = vector.load %arg2[%c0_1, %c0_2] : memref<8x1xf32, #tpu.memory_space<vmem>>, vector<8x1xf32>
    %c0_3 = arith.constant 0 : index
    %c0_4 = arith.constant 0 : index
    %2 = vector.load %arg3[%c0_3, %c0_4] : memref<1x32xf32, #tpu.memory_space<vmem>>, vector<1x32xf32>
    %3 = vector.broadcast %1 : vector<8x1xf32> to vector<8x32xf32>
    %4 = vector.broadcast %2 : vector<1x32xf32> to vector<8x32xf32>
    %5 = arith.mulf %3, %4 : vector<8x32xf32>
    %c0_5 = arith.constant 0 : index
    %c0_6 = arith.constant 0 : index
    %6 = vector.load %arg4[%c0_5, %c0_6] : memref<1x32xf32, #tpu.memory_space<vmem>>, vector<1x32xf32>
    %7 = vector.broadcast %6 : vector<1x32xf32> to vector<8x32xf32>
    %8 = arith.addf %5, %7 : vector<8x32xf32>
    %cst = arith.constant 0.000000e+00 : f32
    %9 = vector.broadcast %cst : f32 to vector<8x32xf32>
    %10 = arith.maximumf %8, %9 : vector<8x32xf32>
    %11 = arith.truncf %0 : vector<8x64xf32> to vector<8x64xbf16>
    %c0_7 = arith.constant 0 : index
    %c0_8 = arith.constant 0 : index
    %12 = vector.load %arg5[%c0_7, %c0_8] : memref<64x2048xbf16, #tpu.memory_space<vmem>>, vector<64x2048xbf16>
    %cst_9 = arith.constant dense<0.000000e+00> : vector<8x2048xf32>
    %13 = tpu.matmul %11, %12, %cst_9 {dimension_numbers = #tpu.dot_dimension_numbers<[1], [0], [0], [1], [0, 0, 1, 1], [], []>} : vector<8x64xbf16>, vector<64x2048xbf16>, vector<8x2048xf32> -> vector<8x2048xf32>
    %14 = arith.truncf %10 : vector<8x32xf32> to vector<8x32xbf16>
    %c0_10 = arith.constant 0 : index
    %c0_11 = arith.constant 0 : index
    %15 = vector.load %arg6[%c0_10, %c0_11] : memref<32x2048xbf16, #tpu.memory_space<vmem>>, vector<32x2048xbf16>
    %cst_12 = arith.constant dense<0.000000e+00> : vector<8x2048xf32>
    %16 = tpu.matmul %14, %15, %cst_12 {dimension_numbers = #tpu.dot_dimension_numbers<[1], [0], [0], [1], [0, 0, 1, 1], [], []>} : vector<8x32xbf16>, vector<32x2048xbf16>, vector<8x2048xf32> -> vector<8x2048xf32>
    %17 = arith.addf %13, %16 : vector<8x2048xf32>
    %c0_13 = arith.constant 0 : index
    %c0_14 = arith.constant 0 : index
    %18 = vector.load %arg7[%c0_13, %c0_14] : memref<1x2048xf32, #tpu.memory_space<vmem>>, vector<1x2048xf32>
    %19 = vector.broadcast %18 : vector<1x2048xf32> to vector<8x2048xf32>
    %20 = arith.addf %17, %19 : vector<8x2048xf32>
    %cst_15 = arith.constant 0.000000e+00 : f32
    %21 = vector.broadcast %cst_15 : f32 to vector<8x2048xf32>
    %22 = arith.maximumf %20, %21 : vector<8x2048xf32>
    %23 = arith.truncf %22 : vector<8x2048xf32> to vector<8x2048xbf16>
    %c0_16 = arith.constant 0 : index
    %c0_17 = arith.constant 0 : index
    %24 = vector.load %arg8[%c0_16, %c0_17] : memref<2048x512xbf16, #tpu.memory_space<vmem>>, vector<2048x512xbf16>
    %cst_18 = arith.constant dense<0.000000e+00> : vector<8x512xf32>
    %25 = tpu.matmul %23, %24, %cst_18 {dimension_numbers = #tpu.dot_dimension_numbers<[1], [0], [0], [1], [0, 0, 1, 1], [], []>} : vector<8x2048xbf16>, vector<2048x512xbf16>, vector<8x512xf32> -> vector<8x512xf32>
    %c0_19 = arith.constant 0 : index
    %c0_20 = arith.constant 0 : index
    %26 = vector.load %arg9[%c0_19, %c0_20] : memref<1x512xf32, #tpu.memory_space<vmem>>, vector<1x512xf32>
    %27 = vector.broadcast %26 : vector<1x512xf32> to vector<8x512xf32>
    %28 = arith.addf %25, %27 : vector<8x512xf32>
    %cst_21 = arith.constant 0.000000e+00 : f32
    %29 = vector.broadcast %cst_21 : f32 to vector<8x512xf32>
    %30 = arith.maximumf %28, %29 : vector<8x512xf32>
    %31 = arith.truncf %30 : vector<8x512xf32> to vector<8x512xbf16>
    %c0_22 = arith.constant 0 : index
    %c0_23 = arith.constant 0 : index
    %32 = vector.load %arg10[%c0_22, %c0_23] : memref<512x256xbf16, #tpu.memory_space<vmem>>, vector<512x256xbf16>
    %cst_24 = arith.constant dense<0.000000e+00> : vector<8x256xf32>
    %33 = tpu.matmul %31, %32, %cst_24 {dimension_numbers = #tpu.dot_dimension_numbers<[1], [0], [0], [1], [0, 0, 1, 1], [], []>} : vector<8x512xbf16>, vector<512x256xbf16>, vector<8x256xf32> -> vector<8x256xf32>
    %c0_25 = arith.constant 0 : index
    %c0_26 = arith.constant 0 : index
    %34 = vector.load %arg11[%c0_25, %c0_26] : memref<1x256xf32, #tpu.memory_space<vmem>>, vector<1x256xf32>
    %35 = vector.broadcast %34 : vector<1x256xf32> to vector<8x256xf32>
    %36 = arith.addf %33, %35 : vector<8x256xf32>
    %c0_27 = arith.constant 0 : index
    %c0_28 = arith.constant 0 : index
    %37 = vector.load %arg12[%c0_27, %c0_28] : memref<8x256xf32, #tpu.memory_space<vmem>>, vector<8x256xf32>
    tpu.vector_store %arg12[%c0_27, %c0_28], %36 {strides = array<i32>} : memref<8x256xf32, #tpu.memory_space<vmem>>, vector<8x256xf32>,
    return
  }
  func.func @transform_0(%arg0: i32) -> (i32, i32) {
    %c0_i32 = arith.constant 0 : i32
    %c0_i32_0 = arith.constant 0 : i32
    return %arg0, %c0_i32 : i32, i32
  }
  func.func @transform_1(%arg0: i32) -> (i32, i32) {
    %c0_i32 = arith.constant 0 : i32
    %c0_i32_0 = arith.constant 0 : i32
    return %arg0, %c0_i32 : i32, i32
  }
  func.func @transform_2(%arg0: i32) -> (i32, i32) {
    %c0_i32 = arith.constant 0 : i32
    %c0_i32_0 = arith.constant 0 : i32
    %c0_i32_1 = arith.constant 0 : i32
    return %c0_i32, %c0_i32_0 : i32, i32
  }
  func.func @transform_3(%arg0: i32) -> (i32, i32) {
    %c0_i32 = arith.constant 0 : i32
    %c0_i32_0 = arith.constant 0 : i32
    %c0_i32_1 = arith.constant 0 : i32
    return %c0_i32, %c0_i32_0 : i32, i32
  }
  func.func @transform_4(%arg0: i32) -> (i32, i32) {
    %c0_i32 = arith.constant 0 : i32
    %c0_i32_0 = arith.constant 0 : i32
    %c0_i32_1 = arith.constant 0 : i32
    return %c0_i32, %c0_i32_0 : i32, i32
  }
  func.func @transform_5(%arg0: i32) -> (i32, i32) {
    %c0_i32 = arith.constant 0 : i32
    %c0_i32_0 = arith.constant 0 : i32
    %c0_i32_1 = arith.constant 0 : i32
    return %c0_i32, %c0_i32_0 : i32, i32
  }
  func.func @transform_6(%arg0: i32) -> (i32, i32) {
    %c0_i32 = arith.constant 0 : i32
    %c0_i32_0 = arith.constant 0 : i32
    %c0_i32_1 = arith.constant 0 : i32
    return %c0_i32, %c0_i32_0 : i32, i32
  }
  func.func @transform_7(%arg0: i32) -> (i32, i32) {
    %c0_i32 = arith.constant 0 : i32
    %c0_i32_0 = arith.constant 0 : i32
    %c0_i32_1 = arith.constant 0 : i32
    return %c0_i32, %c0_i32_0 : i32, i32
  }
  func.func @transform_8(%arg0: i32) -> (i32, i32) {
    %c0_i32 = arith.constant 0 : i32
    %c0_i32_0 = arith.constant 0 : i32
    %c0_i32_1 = arith.constant 0 : i32
    return %c0_i32, %c0_i32_0 : i32, i32
  }
  func.func @transform_9(%arg0: i32) -> (i32, i32) {
    %c0_i32 = arith.constant 0 : i32
    %c0_i32_0 = arith.constant 0 : i32
    %c0_i32_1 = arith.constant 0 : i32
    return %c0_i32, %c0_i32_0 : i32, i32
  }
  func.func @transform_10(%arg0: i32) -> (i32, i32) {
    %c0_i32 = arith.constant 0 : i32
    %c0_i32_0 = arith.constant 0 : i32
    %c0_i32_1 = arith.constant 0 : i32
    return %c0_i32, %c0_i32_0 : i32, i32
  }
  func.func @transform_11(%arg0: i32) -> (i32, i32) {
    %c0_i32 = arith.constant 0 : i32
    %c0_i32_0 = arith.constant 0 : i32
    return %arg0, %c0_i32 : i32, i32
  }
}

</mosaic_0001>

<bundles_post_ra>
// kernel: classifier_forward.1
= control target key start
LH: loop header
LB: loop body
LE: loop exit
PB: predicated region body
PF: predicated region fallthrough
CT: control target
= control target key end

     0   :  { %v7335_v3 = vmov 0   ;;  %vm322_vm0 = vcmask 261120   ;;  %vm974_vm1 = vcmask 523264   ;;  %s9720_s0 = inlined_call_operand.vmem [shape: f32[8,64], index: 0, kind: input, shape index: {}]   ;;  %s9721_s1 = inlined_call_operand.vmem [shape: f32[8,1], index: 1, kind: input, shape index: {}]   ;;  %s9722_s2 = inlined_call_operand.vmem [shape: f32[1,32], index: 2, kind: input, shape index: {}]   ;;  %s9723_s3 = inlined_call_operand.vmem [shape: f32[1,32], index: 3, kind: input, shape index: {}]   ;;  %s9724_s4 = inlined_call_operand.vmem [shape: bf16[64,2048], index: 4, kind: input, shape index: {}]   ;;  %s9725_s5 = inlined_call_operand.vmem [shape: bf16[32,2048], index: 5, kind: input, shape index: {}]   ;;  %s9726_s6 = inlined_call_operand.vmem [shape: f32[1,2048], index: 6, kind: input, shape index: {}]   ;;  %s9727_s7 = inlined_call_operand.vmem [shape: bf16[2048,512], index: 7, kind: input, shape index: {}]   ;;  %s9728_s8 = inlined_call_operand.vmem [shape: f32[1,512], index: 8, kind: input, shape index: {}]   ;;  %s9729_s9 = inlined_call_operand.vmem [shape: bf16[512,256], index: 9, kind: input, shape index: {}]   ;;  %s9730_s10 = inlined_call_operand.vmem [shape: f32[1,256], index: 10, kind: input, shape index: {}]   ;;  %s9731_s11 = inlined_call_operand.hbm [shape: f32[8,256], index: 11, kind: output, shape index: {}]  }
   0x1   :  { %v41_v0 = vld [vmem:[%s9721_s1] sm:$0xff]  ;;  %6446 = vset.pattern.permute.xlu0 %v7335_v3  ;;  %v131_v5 = vld [vmem:[%s9725_s5 + $0x8] sm:$0xff]  ;;  %358 = vmatprep.mubr.bf16.mxu0 %v7335_v3  ;;  %v132_v18 = vld [vmem:[%s9725_s5 + $0x10] sm:$0xff] }
   0x2   :  { %v130_v1 = vld [vmem:[%s9725_s5] sm:$0xff]  ;;  %v139_v6 = vld [vmem:[%s9725_s5 + $0x48] sm:$0xff]  ;;  %45 = vperm.xlu0 %6446, %v41_v0   ;;  %399 = vmatprep.mubr.bf16.mxu1 %v7335_v3  ;;  %v140_v19 = vld [vmem:[%s9725_s5 + $0x50] sm:$0xff] }
   0x3   :  { %v138_v2 = vld [vmem:[%s9725_s5 + $0x40] sm:$0xff]  ;;  %v5695_v8 = vcombine.high %v131_v5, %v139_v6  ;;  %v5694_v9 = vcombine.low %v131_v5, %v139_v6  ;;  %v147_v13 = vld [vmem:[%s9725_s5 + $0x88] sm:$0xff]  ;;  %v133_v20 = vld [vmem:[%s9725_s5 + $0x18] sm:$0xff]  ;;  %v5697_v21 = vcombine.high %v132_v18, %v140_v19  ;;  %v5696_v23 = vcombine.low %v132_v18, %v140_v19 }
   0x4   :  { %v5693_v4 = vcombine.high %v130_v1, %v138_v2  ;;  %v5692_v7 = vcombine.low %v130_v1, %v138_v2  ;;  %v146_v10 = vld [vmem:[%s9725_s5 + $0x80] sm:$0xff]  ;;  %v155_v14 = vld [vmem:[%s9725_s5 + $0xc8] sm:$0xff]  ;;  %v141_v22 = vld [vmem:[%s9725_s5 + $0x58] sm:$0xff] }
   0x5   :  { %v154_v11 = vld [vmem:[%s9725_s5 + $0xc0] sm:$0xff]  ;;  %367 = vmatprep.subr.bf16.mxu1 %v5695_v8  ;;  %v5711_v15 = vcombine.high %v147_v13, %v155_v14  ;;  %v5710_v17 = vcombine.low %v147_v13, %v155_v14  ;;  %v5698_v24 = vcombine.low %v133_v20, %v141_v22  ;;  %v5699_v25 = vcombine.high %v133_v20, %v141_v22  ;;  %v148_v30 = vld [vmem:[%s9725_s5 + $0x90] sm:$0xff]  ;;  %v149_v32 = vld [vmem:[%s9725_s5 + $0x98] sm:$0xff] }
   0x6   :  { %326 = vmatprep.subr.bf16.mxu0 %v5693_v4  ;;  %v5709_v12 = vcombine.high %v146_v10, %v154_v11  ;;  %v5708_v16 = vcombine.low %v146_v10, %v154_v11  ;;  %368 = vmatpush1.bf16.msra.mxu1 %v5694_v9  ;;  %v5690_v26 = vld [vmem:[%s9722_s2] ss:$0 sm:$0xff]  ;;  %v156_v31 = vld [vmem:[%s9725_s5 + $0xd0] sm:$0xff]  ;;  %v157_v33 = vld [vmem:[%s9725_s5 + $0xd8] sm:$0xff] }
   0x7   :  { %327 = vmatpush1.bf16.msra.mxu0 %v5692_v7  ;;  %369 = vmatprep.subr.bf16.mxu1 %v5711_v15  ;;  %v5691_v27 = vld [vmem:[%s9723_s3] ss:$0 sm:$0xff]  ;;  %v135_v38 = vld [vmem:[%s9725_s5 + $0x28] sm:$0xff]  ;;  %v5713_v41 = vcombine.high %v148_v30, %v156_v31  ;;  %v5715_v42 = vcombine.high %v149_v32, %v157_v33  ;;  %v5712_v43 = vcombine.low %v148_v30, %v156_v31  ;;  %v136_v53 = vld [vmem:[%s9725_s5 + $0x30] sm:$0xff] }
   0x8   :  { %328 = vmatprep.subr.bf16.mxu0 %v5709_v12  ;;  %v134_v36 = vld [vmem:[%s9725_s5 + $0x20] sm:$0xff]  ;;  %v143_v39 = vld [vmem:[%s9725_s5 + $0x68] sm:$0xff]  ;;  %v5714_v44 = vcombine.low %v149_v32, %v157_v33  ;;  %v144_v54 = vld [vmem:[%s9725_s5 + $0x70] sm:$0xff] }
   0x9   :  { %v142_v37 = vld [vmem:[%s9725_s5 + $0x60] sm:$0xff]  ;;  %v151_v47 = vld [vmem:[%s9725_s5 + $0xa8] sm:$0xff]  ;;  %v5703_v50 = vcombine.high %v135_v38, %v143_v39  ;;  %v5702_v52 = vcombine.low %v135_v38, %v143_v39  ;;  %v137_v55 = vld [vmem:[%s9725_s5 + $0x38] sm:$0xff]  ;;  %v5705_v1 = vcombine.high %v136_v53, %v144_v54  ;;  %v5704_v4 = vcombine.low %v136_v53, %v144_v54 }
   0xa   :  { %370 = vmatpush1.bf16.msra.mxu1 %v5710_v17  ;;  %v150_v45 = vld [vmem:[%s9725_s5 + $0xa0] sm:$0xff]  ;;  %v159_v48 = vld [vmem:[%s9725_s5 + $0xe8] sm:$0xff]  ;;  %v5701_v49 = vcombine.high %v134_v36, %v142_v37  ;;  %v5700_v51 = vcombine.low %v134_v36, %v142_v37  ;;  %v145_v56 = vld [vmem:[%s9725_s5 + $0x78] sm:$0xff] }
   0xb   :  { %329 = vmatpush1.bf16.msra.mxu0 %v5708_v16  ;;  %449 = vmatprep.subr.bf16.mxu1 %v5699_v25  ;;  %v158_v46 = vld [vmem:[%s9725_s5 + $0xe0] sm:$0xff]  ;;  %v5719_v58 = vcombine.high %v151_v47, %v159_v48  ;;  %v5718_v60 = vcombine.low %v151_v47, %v159_v48  ;;  %v152_v61 = vld [vmem:[%s9725_s5 + $0xb0] sm:$0xff]  ;;  %v153_v63 = vld [vmem:[%s9725_s5 + $0xb8] sm:$0xff]  ;;  %v5707_v2 = vcombine.high %v137_v55, %v145_v56 }
   0xc   :  { %408 = vmatprep.subr.bf16.mxu0 %v5697_v21  ;;  %v5717_v57 = vcombine.high %v150_v45, %v158_v46  ;;  %v5716_v59 = vcombine.low %v150_v45, %v158_v46  ;;  %v160_v62 = vld [vmem:[%s9725_s5 + $0xf0] sm:$0xff]  ;;  %v161_v0 = vld [vmem:[%s9725_s5 + $0xf8] sm:$0xff]  ;;  %v5706_v5 = vcombine.low %v137_v55, %v145_v56  ;;  %v65_v6 = vld [vmem:[%s9724_s4] sm:$0xff] }
   0xd   :  { %v73_v7 = vld [vmem:[%s9724_s4 + $0x40] sm:$0xff]  ;;  %v66_v8 = vld [vmem:[%s9724_s4 + $0x8] sm:$0xff]  ;;  %v5721_v10 = vcombine.high %v152_v61, %v160_v62  ;;  %v5723_v11 = vcombine.high %v153_v63, %v161_v0  ;;  %v5720_v12 = vcombine.low %v152_v61, %v160_v62  ;;  %v5722_v13 = vcombine.low %v153_v63, %v161_v0  ;;  %v67_v38 = vld [vmem:[%s9724_s4 + $0x10] sm:$0xff] }
   0xe   :  { %v74_v9 = vld [vmem:[%s9724_s4 + $0x48] sm:$0xff]  ;;  %v81_v14 = vld [vmem:[%s9724_s4 + $0x80] sm:$0xff]  ;;  %v5733_v18 = vcombine.high %v65_v6, %v73_v7  ;;  %v5732_v20 = vcombine.low %v65_v6, %v73_v7  ;;  %v75_v39 = vld [vmem:[%s9724_s4 + $0x50] sm:$0xff] }
   0xf   :  { %v89_v15 = vld [vmem:[%s9724_s4 + $0xc0] sm:$0xff]  ;;  %v82_v16 = vld [vmem:[%s9724_s4 + $0x88] sm:$0xff]  ;;  %v5735_v19 = vcombine.high %v66_v8, %v74_v9  ;;  %v5734_v21 = vcombine.low %v66_v8, %v74_v9  ;;  %v83_v47 = vld [vmem:[%s9724_s4 + $0x90] sm:$0xff]  ;;  %v5736_v54 = vcombine.low %v67_v38, %v75_v39 }
  0x10   :  { %v90_v17 = vld [vmem:[%s9724_s4 + $0xc8] sm:$0xff]  ;;  %v97_v22 = vld [vmem:[%s9724_s4 + $0x100] sm:$0xff]  ;;  %v91_v48 = vld [vmem:[%s9724_s4 + $0xd0] sm:$0xff] }
  0x11   :  { %v106_v25 = vld [vmem:[%s9724_s4 + $0x148] sm:$0xff]  ;;  %v113_v30 = vld [vmem:[%s9724_s4 + $0x180] sm:$0xff]  ;;  %v99_v56 = vld [vmem:[%s9724_s4 + $0x110] sm:$0xff]  ;;  %v5752_v62 = vcombine.low %v83_v47, %v91_v48 }
  0x12   :  { %v121_v31 = vld [vmem:[%s9724_s4 + $0x1c0] sm:$0xff]  ;;  %v114_v32 = vld [vmem:[%s9724_s4 + $0x188] sm:$0xff]  ;;  %v115_v0 = vld [vmem:[%s9724_s4 + $0x190] sm:$0xff] }
  0x13   :  { %v122_v33 = vld [vmem:[%s9724_s4 + $0x1c8] sm:$0xff]  ;;  %v5780_v45 = vcombine.low %v113_v30, %v121_v31  ;;  %v69_v9 = vld [vmem:[%s9724_s4 + $0x20] sm:$0xff] }
  0x14   :  { %v5782_v46 = vcombine.low %v114_v32, %v122_v33 }
  0x81   :  { %v46_v28 = vpop.permute.xlu0 %45 }
  0x82   :  { %v54_v29 = vmul.f32 %v5690_v26, %v46_v28  ;;  %v5749_v26 = vcombine.high %v81_v14, %v89_v15  ;;  %v5748_v28 = vcombine.low %v81_v14, %v89_v15 }
  0x84   :  { %v62_v34 = vadd.f32 %v5691_v27, %v54_v29  ;;  %v5751_v27 = vcombine.high %v82_v16, %v90_v17  ;;  %v5750_v29 = vcombine.low %v82_v16, %v90_v17  ;;  %v85_v17 = vld [vmem:[%s9724_s4 + $0xa0] sm:$0xff] }
  0x86   :  { %v63_v35 = vmax.f32 %v62_v34, 0.0 }
  0x88   :  { %v7469_v40 = vpack.c.bf16 %v63_v35, %v63_v35 }
  0x8a   :  { %5724 = vmatmul.mubr.msk.bf16.vlgmr.msra.gmra.mrb[0].mxu0 %vm322_vm0, %v7469_v40  ;;  %5725 = vmatmul.mubr.msk.bf16.vlgmr.msra.gmra.mrb[0].mxu1 %vm322_vm0, %v7469_v40 }
  0x8b   :  { %409 = vmatpush1.bf16.msra.mxu0 %v5696_v23  ;;  %450 = vmatpush1.bf16.msra.mxu1 %v5698_v24  ;;  %v105_v23 = vld [vmem:[%s9724_s4 + $0x140] sm:$0xff]  ;;  %v98_v24 = vld [vmem:[%s9724_s4 + $0x108] sm:$0xff] }
  0x8c   :  { %410 = vmatprep.subr.bf16.mxu0 %v5713_v41  ;;  %451 = vmatprep.subr.bf16.mxu1 %v5715_v42  ;;  %v5765_v34 = vcombine.high %v97_v22, %v105_v23  ;;  %v5767_v35 = vcombine.high %v98_v24, %v106_v25  ;;  %v5764_v36 = vcombine.low %v97_v22, %v105_v23  ;;  %v76_v41 = vld [vmem:[%s9724_s4 + $0x58] sm:$0xff] }
  0x8d   :  { %440 = vmatprep.mubr.bf16.mxu0 %v7335_v3  ;;  %481 = vmatprep.mubr.bf16.mxu1 %v7335_v3  ;;  %v5766_v37 = vcombine.low %v98_v24, %v106_v25  ;;  %v5781_v42 = vcombine.high %v113_v30, %v121_v31  ;;  %v101_v25 = vld [vmem:[%s9724_s4 + $0x120] sm:$0xff] }
  0x8f   :  { %411 = vmatpush1.bf16.msra.mxu0 %v5712_v43  ;;  %452 = vmatpush1.bf16.msra.mxu1 %v5714_v44  ;;  %v5783_v43 = vcombine.high %v114_v32, %v122_v33  ;;  %v40_v44 = vld [vmem:[%s9720_s0] sm:$0xff] }
  0x90   :  { %490 = vmatprep.subr.bf16.mxu0 %v5701_v49  ;;  %531 = vmatprep.subr.bf16.mxu1 %v5703_v50  ;;  %v84_v49 = vld [vmem:[%s9724_s4 + $0x98] sm:$0xff]  ;;  %v7606_v53 = vpack.c.bf16 %v40_v44, %v40_v44  ;;  %v117_v33 = vld [vmem:[%s9724_s4 + $0x1a0] sm:$0xff] }
  0x91   :  { %v92_v50 = vld [vmem:[%s9724_s4 + $0xd8] sm:$0xff] }
  0x92   :  { %5726 = vmatmul.mubr.msk.bf16.vlgmr.msra.gmra.mrb[4].mxu0 %vm322_vm0, %v7469_v40  ;;  %5727 = vmatmul.mubr.msk.bf16.vlgmr.msra.gmra.mrb[4].mxu1 %vm322_vm0, %v7469_v40  ;;  %v5755_v61 = vcombine.high %v84_v49, %v92_v50  ;;  %v5754_v63 = vcombine.low %v84_v49, %v92_v50  ;;  %v80_v44 = vld [vmem:[%s9724_s4 + $0x78] sm:$0xff]  ;;  %v87_v49 = vld [vmem:[%s9724_s4 + $0xb0] sm:$0xff] }
  0x93   :  { %491 = vmatpush1.bf16.msra.mxu0 %v5700_v51  ;;  %532 = vmatpush1.bf16.msra.mxu1 %v5702_v52  ;;  %v5737_v51 = vcombine.high %v67_v38, %v75_v39  ;;  %v95_v50 = vld [vmem:[%s9724_s4 + $0xf0] sm:$0xff] }
  0x94   :  { %492 = vmatprep.subr.bf16.mxu0 %v5717_v57  ;;  %533 = vmatprep.subr.bf16.mxu1 %v5719_v58  ;;  %v107_v57 = vld [vmem:[%s9724_s4 + $0x150] sm:$0xff]  ;;  %v100_v58 = vld [vmem:[%s9724_s4 + $0x118] sm:$0xff] }
  0x95   :  { %522 = vmatprep.mubr.bf16.mxu0 %v7335_v3  ;;  %563 = vmatprep.mubr.bf16.mxu1 %v7335_v3  ;;  %v5768_v7 = vcombine.low %v99_v56, %v107_v57 }
  0x97   :  { %493 = vmatpush1.bf16.msra.mxu0 %v5716_v59  ;;  %534 = vmatpush1.bf16.msra.mxu1 %v5718_v60  ;;  %v108_v59 = vld [vmem:[%s9724_s4 + $0x158] sm:$0xff]  ;;  %v5753_v60 = vcombine.high %v83_v47, %v91_v48 }
  0x98   :  { %572 = vmatprep.subr.bf16.mxu0 %v5705_v1  ;;  %613 = vmatprep.subr.bf16.mxu1 %v5707_v2  ;;  %v123_v1 = vld [vmem:[%s9724_s4 + $0x1d0] sm:$0xff]  ;;  %v116_v2 = vld [vmem:[%s9724_s4 + $0x198] sm:$0xff]  ;;  %v5771_v6 = vcombine.high %v100_v58, %v108_v59  ;;  %v5770_v8 = vcombine.low %v100_v58, %v108_v59 }
  0x99   :  { %v5784_v15 = vcombine.low %v115_v0, %v123_v1  ;;  %v103_v58 = vld [vmem:[%s9724_s4 + $0x130] sm:$0xff] }
  0x9a   :  { %5728 = vmatmul.mubr.msk.bf16.vlgmr.msra.gmra.mrb[8].mxu0 %vm322_vm0, %v7469_v40  ;;  %5729 = vmatmul.mubr.msk.bf16.vlgmr.msra.gmra.mrb[8].mxu1 %vm322_vm0, %v7469_v40  ;;  %v111_v59 = vld [vmem:[%s9724_s4 + $0x170] sm:$0xff] }
  0x9b   :  { %573 = vmatpush1.bf16.msra.mxu0 %v5704_v4  ;;  %614 = vmatpush1.bf16.msra.mxu1 %v5706_v5  ;;  %v124_v4 = vld [vmem:[%s9724_s4 + $0x1d8] sm:$0xff]  ;;  %v5769_v5 = vcombine.high %v99_v56, %v107_v57 }
  0x9c   :  { %574 = vmatprep.subr.bf16.mxu0 %v5721_v10  ;;  %615 = vmatprep.subr.bf16.mxu1 %v5723_v11  ;;  %v77_v10 = vld [vmem:[%s9724_s4 + $0x60] sm:$0xff]  ;;  %v70_v11 = vld [vmem:[%s9724_s4 + $0x28] sm:$0xff]  ;;  %v5787_v14 = vcombine.high %v116_v2, %v124_v4  ;;  %v5786_v16 = vcombine.low %v116_v2, %v124_v4  ;;  %v119_v2 = vld [vmem:[%s9724_s4 + $0x1b0] sm:$0xff] }
  0x9d   :  { %604 = vmatprep.mubr.bf16.mxu0 %v7335_v3  ;;  %645 = vmatprep.mubr.bf16.mxu1 %v7335_v3  ;;  %v5740_v23 = vcombine.low %v69_v9, %v77_v10  ;;  %v127_v4 = vld [vmem:[%s9724_s4 + $0x1f0] sm:$0xff] }
  0x9f   :  { %575 = vmatpush1.bf16.msra.mxu0 %v5720_v12  ;;  %616 = vmatpush1.bf16.msra.mxu1 %v5722_v13  ;;  %v78_v12 = vld [vmem:[%s9724_s4 + $0x68] sm:$0xff]  ;;  %v5785_v13 = vcombine.high %v115_v0, %v123_v1  ;;  %v5760_v0 = vcombine.low %v87_v49, %v95_v50 }
  0xa0   :  { %978 = vmatprep.subr.bf16.mxu0 %v5733_v18  ;;  %1019 = vmatprep.subr.bf16.mxu1 %v5735_v19  ;;  %v93_v18 = vld [vmem:[%s9724_s4 + $0xe0] sm:$0xff]  ;;  %v86_v19 = vld [vmem:[%s9724_s4 + $0xa8] sm:$0xff]  ;;  %v5743_v22 = vcombine.high %v70_v11, %v78_v12  ;;  %v5742_v24 = vcombine.low %v70_v11, %v78_v12  ;;  %v5793_v11 = vcombine.high %v119_v2, %v127_v4 }
  0xa1   :  { %v5756_v31 = vcombine.low %v85_v17, %v93_v18 }
  0xa2   :  { %5730 = vmatmul.mubr.msk.bf16.vlgmr.msra.gmra.mrb[12].mxu0 %vm322_vm0, %v7469_v40  ;;  %5731 = vmatmul.mubr.msk.bf16.vlgmr.msra.gmra.mrb[12].mxu1 %vm322_vm0, %v7469_v40  ;;  %v68_v40 = vld [vmem:[%s9724_s4 + $0x18] sm:$0xff] }
  0xa3   :  { %979 = vmatpush1.bf16.msra.mxu0 %v5732_v20  ;;  %1020 = vmatpush1.bf16.msra.mxu1 %v5734_v21  ;;  %v5739_v52 = vcombine.high %v68_v40, %v76_v41  ;;  %v5738_v55 = vcombine.low %v68_v40, %v76_v41  ;;  %v94_v20 = vld [vmem:[%s9724_s4 + $0xe8] sm:$0xff]  ;;  %v5741_v21 = vcombine.high %v69_v9, %v77_v10  ;;  %v71_v41 = vld [vmem:[%s9724_s4 + $0x30] sm:$0xff] }
  0xa4   :  { %980 = vmatprep.subr.bf16.mxu0 %v5749_v26  ;;  %1021 = vmatprep.subr.bf16.mxu1 %v5751_v27  ;;  %v109_v26 = vld [vmem:[%s9724_s4 + $0x160] sm:$0xff]  ;;  %v102_v27 = vld [vmem:[%s9724_s4 + $0x128] sm:$0xff]  ;;  %v5759_v30 = vcombine.high %v86_v19, %v94_v20  ;;  %v5758_v32 = vcombine.low %v86_v19, %v94_v20  ;;  %v5776_v9 = vcombine.low %v103_v58, %v111_v59 }
  0xa5   :  { %1010 = vmatprep.mubr.bf16.mxu0 %v7335_v3  ;;  %1051 = vmatprep.mubr.bf16.mxu1 %v7335_v3  ;;  %v5772_v39 = vcombine.low %v101_v25, %v109_v26  ;;  %v6458_v19 = vld [vmem:[%s9727_s7 + $0x224] ss:$16 sps:$4 sm:$0xff]   ;;  %v6453_v20 = vld [vmem:[%s9727_s7 + $0x20] ss:$16 sps:$4 sm:$0xff]  }
  0xa7   :  { %981 = vmatpush1.bf16.msra.mxu0 %v5748_v28  ;;  %1022 = vmatpush1.bf16.msra.mxu1 %v5750_v29  ;;  %v110_v28 = vld [vmem:[%s9724_s4 + $0x168] sm:$0xff]  ;;  %v5757_v29 = vcombine.high %v85_v17, %v93_v18  ;;  %v6450_v17 = vld [vmem:[%s9727_s7 + $0x200] ss:$16 sps:$4 sm:$0xff]   ;;  %v6455_v18 = vld [vmem:[%s9727_s7 + $0x24] ss:$16 sps:$4 sm:$0xff]  }
  0xa8   :  { %982 = vmatprep.subr.bf16.mxu0 %v5765_v34  ;;  %1023 = vmatprep.subr.bf16.mxu1 %v5767_v35  ;;  %v125_v34 = vld [vmem:[%s9724_s4 + $0x1e0] sm:$0xff]  ;;  %v118_v35 = vld [vmem:[%s9724_s4 + $0x1a8] sm:$0xff]  ;;  %v5775_v38 = vcombine.high %v102_v27, %v110_v28  ;;  %v5774_v40 = vcombine.low %v102_v27, %v110_v28 }
  0xa9   :  { %v5788_v47 = vcombine.low %v117_v33, %v125_v34  ;;  %v6465_v27 = vld [vmem:[%s9727_s7 + $0x60] ss:$16 sps:$4 sm:$0xff]  }
  0xaa   :  { %v6468_v28 = vld [vmem:[%s9727_s7 + $0x260] ss:$16 sps:$4 sm:$0xff]  }
  0xab   :  { %983 = vmatpush1.bf16.msra.mxu0 %v5764_v36  ;;  %1024 = vmatpush1.bf16.msra.mxu1 %v5766_v37  ;;  %v126_v36 = vld [vmem:[%s9724_s4 + $0x1e8] sm:$0xff]  ;;  %v5773_v37 = vcombine.high %v101_v25, %v109_v26  ;;  %v6467_v25 = vld [vmem:[%s9727_s7 + $0x64] ss:$16 sps:$4 sm:$0xff]  }
  0xac   :  { %984 = vmatprep.subr.bf16.mxu0 %v5781_v42  ;;  %1025 = vmatprep.subr.bf16.mxu1 %v5783_v43  ;;  %v79_v42 = vld [vmem:[%s9724_s4 + $0x70] sm:$0xff]  ;;  %v72_v43 = vld [vmem:[%s9724_s4 + $0x38] sm:$0xff]  ;;  %v5790_v48 = vcombine.low %v118_v35, %v126_v36 }
  0xad   :  { %v5744_v56 = vcombine.low %v71_v41, %v79_v42  ;;  %v5746_v57 = vcombine.low %v72_v43, %v80_v44  ;;  %v6470_v26 = vld [vmem:[%s9727_s7 + $0x264] ss:$16 sps:$4 sm:$0xff]  }
  0xaf   :  { %985 = vmatpush1.bf16.msra.mxu0 %v5780_v45  ;;  %1026 = vmatpush1.bf16.msra.mxu1 %v5782_v46  ;;  %v5789_v45 = vcombine.high %v117_v33, %v125_v34  ;;  %v5791_v46 = vcombine.high %v118_v35, %v126_v36 }
  0xb0   :  { %1060 = vmatprep.subr.bf16.mxu0 %v5737_v51  ;;  %1101 = vmatprep.subr.bf16.mxu1 %v5739_v52  ;;  %v88_v51 = vld [vmem:[%s9724_s4 + $0xb8] sm:$0xff] }
  0xb1   :  { %v96_v52 = vld [vmem:[%s9724_s4 + $0xf8] sm:$0xff] }
  0xb2   :  { %5796 = vmatmul.mubr.msk.bf16.vlgmr.msra.gmra.mrb[16].mxu0 %vm974_vm1, %v7606_v53  ;;  %5797 = vmatmul.mubr.msk.bf16.vlgmr.msra.gmra.mrb[16].mxu1 %vm974_vm1, %v7606_v53  ;;  %v5762_v1 = vcombine.low %v88_v51, %v96_v52 }
  0xb3   :  { %1061 = vmatpush1.bf16.msra.mxu0 %v5736_v54  ;;  %1102 = vmatpush1.bf16.msra.mxu1 %v5738_v55  ;;  %v5745_v54 = vcombine.high %v71_v41, %v79_v42  ;;  %v5747_v55 = vcombine.high %v72_v43, %v80_v44 }
  0xb4   :  { %1062 = vmatprep.subr.bf16.mxu0 %v5753_v60  ;;  %1103 = vmatprep.subr.bf16.mxu1 %v5755_v61  ;;  %v104_v60 = vld [vmem:[%s9724_s4 + $0x138] sm:$0xff] }
  0xb5   :  { %1092 = vmatprep.mubr.bf16.mxu0 %v7335_v3  ;;  %1133 = vmatprep.mubr.bf16.mxu1 %v7335_v3  ;;  %v112_v61 = vld [vmem:[%s9724_s4 + $0x178] sm:$0xff] }
  0xb6   :  { %v5778_v10 = vcombine.low %v104_v60, %v112_v61 }
  0xb7   :  { %1063 = vmatpush1.bf16.msra.mxu0 %v5752_v62  ;;  %1104 = vmatpush1.bf16.msra.mxu1 %v5754_v63  ;;  %v5761_v62 = vcombine.high %v87_v49, %v95_v50  ;;  %v5763_v63 = vcombine.high %v88_v51, %v96_v52 }
  0xb8   :  { %1064 = vmatprep.subr.bf16.mxu0 %v5769_v5  ;;  %1105 = vmatprep.subr.bf16.mxu1 %v5771_v6  ;;  %v120_v5 = vld [vmem:[%s9724_s4 + $0x1b8] sm:$0xff] }
  0xb9   :  { %v128_v6 = vld [vmem:[%s9724_s4 + $0x1f8] sm:$0xff] }
  0xba   :  { %v5795_v12 = vcombine.high %v120_v5, %v128_v6 }
  0xbb   :  { %1065 = vmatpush1.bf16.msra.mxu0 %v5768_v7  ;;  %1106 = vmatpush1.bf16.msra.mxu1 %v5770_v8  ;;  %v5777_v7 = vcombine.high %v103_v58, %v111_v59  ;;  %v5779_v8 = vcombine.high %v104_v60, %v112_v61 }
  0xbc   :  { %1066 = vmatprep.subr.bf16.mxu0 %v5785_v13  ;;  %1107 = vmatprep.subr.bf16.mxu1 %v5787_v14  ;;  %v6449_v13 = vld [vmem:[%s9727_s7 + $0x4] ss:$16 sps:$4 sm:$0xff]  }
  0xbd   :  { %v6452_v14 = vld [vmem:[%s9727_s7 + $0x204] ss:$16 sps:$4 sm:$0xff]  }
  0xbf   :  { %1067 = vmatpush1.bf16.msra.mxu0 %v5784_v15  ;;  %1108 = vmatpush1.bf16.msra.mxu1 %v5786_v16  ;;  %v5792_v15 = vcombine.low %v119_v2, %v127_v4  ;;  %v6447_v16 = vld [vmem:[%s9727_s7] ss:$16 sps:$4 sm:$0xff]  }
  0xc0   :  { %1142 = vmatprep.subr.bf16.mxu0 %v5741_v21  ;;  %1183 = vmatprep.subr.bf16.mxu1 %v5743_v22  ;;  %v6456_v21 = vld [vmem:[%s9727_s7 + $0x220] ss:$16 sps:$4 sm:$0xff]   ;;  %v6461_v22 = vld [vmem:[%s9727_s7 + $0x44] ss:$16 sps:$4 sm:$0xff]  }
  0xc2   :  { %5798 = vmatmul.mubr.msk.bf16.vlgmr.msra.gmra.mrb[20].mxu0 %vm974_vm1, %v7606_v53  ;;  %5799 = vmatmul.mubr.msk.bf16.vlgmr.msra.gmra.mrb[20].mxu1 %vm974_vm1, %v7606_v53 }
  0xc3   :  { %1143 = vmatpush1.bf16.msra.mxu0 %v5740_v23  ;;  %1184 = vmatpush1.bf16.msra.mxu1 %v5742_v24  ;;  %v6464_v23 = vld [vmem:[%s9727_s7 + $0x244] ss:$16 sps:$4 sm:$0xff]   ;;  %v6459_v24 = vld [vmem:[%s9727_s7 + $0x40] ss:$16 sps:$4 sm:$0xff]  }
  0xc4   :  { %1144 = vmatprep.subr.bf16.mxu0 %v5757_v29  ;;  %1185 = vmatprep.subr.bf16.mxu1 %v5759_v30  ;;  %v6473_v29 = vld [vmem:[%s9727_s7 + $0x84] ss:$16 sps:$4 sm:$0xff]  }
  0xc5   :  { %1174 = vmatprep.mubr.bf16.mxu0 %v7335_v3  ;;  %1215 = vmatprep.mubr.bf16.mxu1 %v7335_v3  ;;  %v6476_v30 = vld [vmem:[%s9727_s7 + $0x284] ss:$16 sps:$4 sm:$0xff]  }
  0xc7   :  { %1145 = vmatpush1.bf16.msra.mxu0 %v5756_v31  ;;  %1186 = vmatpush1.bf16.msra.mxu1 %v5758_v32 }
  0xc8   :  { %1146 = vmatprep.subr.bf16.mxu0 %v5773_v37  ;;  %1187 = vmatprep.subr.bf16.mxu1 %v5775_v38 }
  0xcb   :  { %1147 = vmatpush1.bf16.msra.mxu0 %v5772_v39  ;;  %1188 = vmatpush1.bf16.msra.mxu1 %v5774_v40 }
  0xcc   :  { %1148 = vmatprep.subr.bf16.mxu0 %v5789_v45  ;;  %1189 = vmatprep.subr.bf16.mxu1 %v5791_v46 }
  0xcf   :  { %1149 = vmatpush1.bf16.msra.mxu0 %v5788_v47  ;;  %1190 = vmatpush1.bf16.msra.mxu1 %v5790_v48 }
  0xd0   :  { %1224 = vmatprep.subr.bf16.mxu0 %v5745_v54  ;;  %1265 = vmatprep.subr.bf16.mxu1 %v5747_v55 }
  0xd2   :  { %5800 = vmatmul.mubr.msk.bf16.vlgmr.msra.gmra.mrb[24].mxu0 %vm974_vm1, %v7606_v53  ;;  %5801 = vmatmul.mubr.msk.bf16.vlgmr.msra.gmra.mrb[24].mxu1 %vm974_vm1, %v7606_v53 }
  0xd3   :  { %1225 = vmatpush1.bf16.msra.mxu0 %v5744_v56  ;;  %1266 = vmatpush1.bf16.msra.mxu1 %v5746_v57 }
  0xd4   :  { %1226 = vmatprep.subr.bf16.mxu0 %v5761_v62  ;;  %1267 = vmatprep.subr.bf16.mxu1 %v5763_v63 }
  0xd5   :  { %1256 = vmatprep.mubr.bf16.mxu0 %v7335_v3  ;;  %1297 = vmatprep.mubr.bf16.mxu1 %v7335_v3  ;;  %v5794_v3 = vcombine.low %v120_v5, %v128_v6 }
  0xd7   :  { %1227 = vmatpush1.bf16.msra.mxu0 %v5760_v0  ;;  %1268 = vmatpush1.bf16.msra.mxu1 %v5762_v1 }
  0xd8   :  { %1228 = vmatprep.subr.bf16.mxu0 %v5777_v7  ;;  %1269 = vmatprep.subr.bf16.mxu1 %v5779_v8 }
  0xdb   :  { %1229 = vmatpush1.bf16.msra.mxu0 %v5776_v9  ;;  %1270 = vmatpush1.bf16.msra.mxu1 %v5778_v10 }
  0xdc   :  { %1230 = vmatprep.subr.bf16.mxu0 %v5793_v11  ;;  %1271 = vmatprep.subr.bf16.mxu1 %v5795_v12 }
  0xdf   :  { %1231 = vmatpush1.bf16.msra.mxu0 %v5792_v15  ;;  %1272 = vmatpush1.bf16.msra.mxu1 %v5794_v3 }
  0xe0   :  { %4532 = vmatprep.subr.bf16.mxu1 %v6449_v13  ;;  %4573 = vmatprep.subr.bf16.mxu0 %v6452_v14 }
  0xe2   :  { %5802 = vmatmul.mubr.msk.bf16.vlgmr.msra.gmra.mrb[28].mxu0 %vm974_vm1, %v7606_v53  ;;  %5803 = vmatmul.mubr.msk.bf16.vlgmr.msra.gmra.mrb[28].mxu1 %vm974_vm1, %v7606_v53  ;;  %v6462_v53 = vld [vmem:[%s9727_s7 + $0x240] ss:$16 sps:$4 sm:$0xff]  }
  0xe3   :  { %4533 = vmatpush1.bf16.msra.mxu1 %v6447_v16  ;;  %4574 = vmatpush1.bf16.msra.mxu0 %v6450_v17 }
  0xe4   :  { %4534 = vmatprep.subr.bf16.mxu1 %v6455_v18  ;;  %4575 = vmatprep.subr.bf16.mxu0 %v6458_v19 }
  0xe7   :  { %4535 = vmatpush1.bf16.msra.mxu1 %v6453_v20  ;;  %4576 = vmatpush1.bf16.msra.mxu0 %v6456_v21 }
  0xe8   :  { %4536 = vmatprep.subr.bf16.mxu1 %v6461_v22  ;;  %4577 = vmatprep.subr.bf16.mxu0 %v6464_v23 }
  0xeb   :  { %4537 = vmatpush1.bf16.msra.mxu1 %v6459_v24  ;;  %4578 = vmatpush1.bf16.msra.mxu0 %v6462_v53 }
  0xec   :  { %4538 = vmatprep.subr.bf16.mxu1 %v6467_v25  ;;  %4579 = vmatprep.subr.bf16.mxu0 %v6470_v26 }
  0xed   :  { %16 = vsyncpa [#allocation3], 0  ;;  %v6471_v31 = vld [vmem:[%s9727_s7 + $0x80] ss:$16 sps:$4 sm:$0xff]   ;;  %v6479_v33 = vld [vmem:[%s9727_s7 + $0xa4] ss:$16 sps:$4 sm:$0xff]   ;;  %v1310_v2 = vlaneseq }
  0xee   :  { %v6474_v32 = vld [vmem:[%s9727_s7 + $0x280] ss:$16 sps:$4 sm:$0xff]   ;;  %v6482_v34 = vld [vmem:[%s9727_s7 + $0x2a4] ss:$16 sps:$4 sm:$0xff]   ;;  %v6548_v24 = vld [vmem:[%s9727_s7 + $0xc] ss:$16 sps:$4 sm:$0xff]  }
  0xef   :  { %4539 = vmatpush1.bf16.msra.mxu1 %v6465_v27  ;;  %4580 = vmatpush1.bf16.msra.mxu0 %v6468_v28  ;;  %v6477_v35 = vld [vmem:[%s9727_s7 + $0xa0] ss:$16 sps:$4 sm:$0xff]   ;;  %v6485_v37 = vld [vmem:[%s9727_s7 + $0xc4] ss:$16 sps:$4 sm:$0xff]   ;;  %v7918_v8 = vshrl.u32 %v1310_v2, 7  ;;  %v7970_v53 = vld [vmem:[%s9726_s6 + $0x8] sm:$0xff] }
  0xf0   :  { %4540 = vmatprep.subr.bf16.mxu1 %v6473_v29  ;;  %4581 = vmatprep.subr.bf16.mxu0 %v6476_v30  ;;  %v6480_v36 = vld [vmem:[%s9727_s7 + $0x2a0] ss:$16 sps:$4 sm:$0xff]   ;;  %v6488_v38 = vld [vmem:[%s9727_s7 + $0x2c4] ss:$16 sps:$4 sm:$0xff]   ;;  %s7336_s23 = smov [#allocation2]  }
  0xf1   :  { %v6483_v39 = vld [vmem:[%s9727_s7 + $0xc0] ss:$16 sps:$4 sm:$0xff]   ;;  %v6491_v41 = vld [vmem:[%s9727_s7 + $0xe4] ss:$16 sps:$4 sm:$0xff]   ;;  %v1328_v11 = vsub.s32 4, %v7918_v8  ;;  %v1336_v12 = vsub.s32 6, %v7918_v8 }
  0xf2   :  { %v6486_v40 = vld [vmem:[%s9727_s7 + $0x2c0] ss:$16 sps:$4 sm:$0xff]   ;;  %v6494_v42 = vld [vmem:[%s9727_s7 + $0x2e4] ss:$16 sps:$4 sm:$0xff]   ;;  %v1340_v14 = vsub.s32 7, %v7918_v8  ;;  %v1332_v25 = vsub.s32 5, %v7918_v8 }
  0xf3   :  { %4541 = vmatpush1.bf16.msra.mxu1 %v6471_v31  ;;  %4582 = vmatpush1.bf16.msra.mxu0 %v6474_v32  ;;  %v6489_v43 = vld [vmem:[%s9727_s7 + $0xe0] ss:$16 sps:$4 sm:$0xff]   ;;  %v6497_v45 = vld [vmem:[%s9727_s7 + $0x104] ss:$16 sps:$4 sm:$0xff]   ;;  %v7974_v26 = vrot.slane %v7970_v53, %v1328_v11  ;;  %v7977_v27 = vrot.slane %v7970_v53, %v1336_v12  ;;  %v8021_v2 = vsub.s32 3, %v7918_v8  ;;  %s5682_s24 = sshll.u32 %s7336_s23, 4  ;;  %s5683_s24 = int_to_ptr.vmem [resolvable:$true] %s5682_s24 }
  0xf4   :  { %4542 = vmatprep.subr.bf16.mxu1 %v6479_v33  ;;  %4583 = vmatprep.subr.bf16.mxu0 %v6482_v34  ;;  %v6492_v44 = vld [vmem:[%s9727_s7 + $0x2e0] ss:$16 sps:$4 sm:$0xff]   ;;  %v6500_v46 = vld [vmem:[%s9727_s7 + $0x304] ss:$16 sps:$4 sm:$0xff]   ;;  %v7982_v28 = vrot.slane %v7970_v53, %v1332_v25  ;;  %v7985_v29 = vrot.slane %v7970_v53, %v1340_v14  ;;  %s7311_s25 = scalar_lea.vmem %s5683_s24, 256  ;;  %p7316_p1 = scmp.lt.s32.totalorder %s5683_s24, %s5683_s24 }
  0xf5   :  { %v6495_v47 = vld [vmem:[%s9727_s7 + $0x100] ss:$16 sps:$4 sm:$0xff]   ;;  %v6503_v49 = vld [vmem:[%s9727_s7 + $0x124] ss:$16 sps:$4 sm:$0xff]   ;;  %p7312_p0 = scmp.ne.s32.totalorder %s5683_s24, %s7311_s25  ;;  %p7317_p2 = scmp.lt.s32.totalorder %s7311_s25, %s7311_s25 }
  0xf6   :  { %v6498_v48 = vld [vmem:[%s9727_s7 + $0x300] ss:$16 sps:$4 sm:$0xff]   ;;  %v6506_v50 = vld [vmem:[%s9727_s7 + $0x324] ss:$16 sps:$4 sm:$0xff]  }
  0xf7   :  { %4543 = vmatpush1.bf16.msra.mxu1 %v6477_v35  ;;  %4584 = vmatpush1.bf16.msra.mxu0 %v6480_v36  ;;  %v6501_v51 = vld [vmem:[%s9727_s7 + $0x120] ss:$16 sps:$4 sm:$0xff]   ;;  %v6509_v54 = vld [vmem:[%s9727_s7 + $0x144] ss:$16 sps:$4 sm:$0xff]   ;;  %p7318_p3 = por %p7317_p2, %p7316_p1 }
  0xf8   :  { %4544 = vmatprep.subr.bf16.mxu1 %v6485_v37  ;;  %4585 = vmatprep.subr.bf16.mxu0 %v6488_v38  ;;  %v6504_v52 = vld [vmem:[%s9727_s7 + $0x320] ss:$16 sps:$4 sm:$0xff]   ;;  %v6512_v55 = vld [vmem:[%s9727_s7 + $0x344] ss:$16 sps:$4 sm:$0xff]  }
  0xf9   :  { %v6507_v56 = vld [vmem:[%s9727_s7 + $0x140] ss:$16 sps:$4 sm:$0xff]   ;;  %v6515_v58 = vld [vmem:[%s9727_s7 + $0x164] ss:$16 sps:$4 sm:$0xff]   ;;  %p7319_p4 = pnand %p7318_p3, %p7312_p0 }
  0xfa   :  { %v6510_v57 = vld [vmem:[%s9727_s7 + $0x340] ss:$16 sps:$4 sm:$0xff]   ;;  %v6518_v59 = vld [vmem:[%s9727_s7 + $0x364] ss:$16 sps:$4 sm:$0xff]  }
  0xfb   :  { %4545 = vmatpush1.bf16.msra.mxu1 %v6483_v39  ;;  %4586 = vmatpush1.bf16.msra.mxu0 %v6486_v40  ;;  %v6513_v60 = vld [vmem:[%s9727_s7 + $0x160] ss:$16 sps:$4 sm:$0xff]   ;;  %v6521_v62 = vld [vmem:[%s9727_s7 + $0x184] ss:$16 sps:$4 sm:$0xff]  }
  0xfc   :  { %4546 = vmatprep.subr.bf16.mxu1 %v6491_v41  ;;  %4587 = vmatprep.subr.bf16.mxu0 %v6494_v42  ;;  %v6516_v61 = vld [vmem:[%s9727_s7 + $0x360] ss:$16 sps:$4 sm:$0xff]   ;;  %v6524_v63 = vld [vmem:[%s9727_s7 + $0x384] ss:$16 sps:$4 sm:$0xff]  }
  0xfd   :  { %v6519_v0 = vld [vmem:[%s9727_s7 + $0x180] ss:$16 sps:$4 sm:$0xff]   ;;  %v6527_v4 = vld [vmem:[%s9727_s7 + $0x1a4] ss:$16 sps:$4 sm:$0xff]  }
  0xfe   :  { %v6522_v1 = vld [vmem:[%s9727_s7 + $0x380] ss:$16 sps:$4 sm:$0xff]   ;;  %v6530_v5 = vld [vmem:[%s9727_s7 + $0x3a4] ss:$16 sps:$4 sm:$0xff]  }
  0xff   :  { %4547 = vmatpush1.bf16.msra.mxu1 %v6489_v43  ;;  %4588 = vmatpush1.bf16.msra.mxu0 %v6492_v44  ;;  %v6525_v6 = vld [vmem:[%s9727_s7 + $0x1a0] ss:$16 sps:$4 sm:$0xff]   ;;  %v6533_v9 = vld [vmem:[%s9727_s7 + $0x1c4] ss:$16 sps:$4 sm:$0xff]  }
 0x100   :  { %4548 = vmatprep.subr.bf16.mxu1 %v6497_v45  ;;  %4589 = vmatprep.subr.bf16.mxu0 %v6500_v46  ;;  %v6528_v7 = vld [vmem:[%s9727_s7 + $0x3a0] ss:$16 sps:$4 sm:$0xff]   ;;  %v6536_v10 = vld [vmem:[%s9727_s7 + $0x3c4] ss:$16 sps:$4 sm:$0xff]  }
 0x101   :  { %v7931_v13 = vld [vmem:[%s9726_s6] sm:$0xff] }
 0x102   :  { %v6531_v15 = vld [vmem:[%s9727_s7 + $0x1c0] ss:$16 sps:$4 sm:$0xff]   ;;  %v7941_v16 = vrot.slane %v7931_v13, %v1328_v11  ;;  %v7944_v17 = vrot.slane %v7931_v13, %v1336_v12  ;;  %v6539_v18 = vld [vmem:[%s9727_s7 + $0x1e4] ss:$16 sps:$4 sm:$0xff]   ;;  %v7953_v20 = vrot.slane %v7931_v13, %v1340_v14 }
 0x103   :  { %4549 = vmatpush1.bf16.msra.mxu1 %v6495_v47  ;;  %4590 = vmatpush1.bf16.msra.mxu0 %v6498_v48  ;;  %v6534_v3 = vld [vmem:[%s9727_s7 + $0x3c0] ss:$16 sps:$4 sm:$0xff]   ;;  %v6542_v19 = vld [vmem:[%s9727_s7 + $0x3e4] ss:$16 sps:$4 sm:$0xff]  }
 0x104   :  { %4550 = vmatprep.subr.bf16.mxu1 %v6503_v49  ;;  %4591 = vmatprep.subr.bf16.mxu0 %v6506_v50  ;;  %v6537_v21 = vld [vmem:[%s9727_s7 + $0x1e0] ss:$16 sps:$4 sm:$0xff]   ;;  %v6545_v23 = vld [vmem:[%s9727_s7 + $0x404] ss:$16 sps:$4 sm:$0xff]  }
 0x105   :  { %v6540_v22 = vld [vmem:[%s9727_s7 + $0x3e0] ss:$16 sps:$4 sm:$0xff]  }
 0x107   :  { %4551 = vmatpush1.bf16.msra.mxu1 %v6501_v51  ;;  %4592 = vmatpush1.bf16.msra.mxu0 %v6504_v52 }
 0x108   :  { %4552 = vmatprep.subr.bf16.mxu1 %v6509_v54  ;;  %4593 = vmatprep.subr.bf16.mxu0 %v6512_v55 }
 0x10b   :  { %4553 = vmatpush1.bf16.msra.mxu1 %v6507_v56  ;;  %4594 = vmatpush1.bf16.msra.mxu0 %v6510_v57 }
 0x10c   :  { %4554 = vmatprep.subr.bf16.mxu1 %v6515_v58  ;;  %4595 = vmatprep.subr.bf16.mxu0 %v6518_v59 }
 0x10f   :  { %4555 = vmatpush1.bf16.msra.mxu1 %v6513_v60  ;;  %4596 = vmatpush1.bf16.msra.mxu0 %v6516_v61 }
 0x110   :  { %4556 = vmatprep.subr.bf16.mxu1 %v6521_v62  ;;  %4597 = vmatprep.subr.bf16.mxu0 %v6524_v63  ;;  %v8012_v63 = vsub.s32 0, %v7918_v8 }
 0x113   :  { %4557 = vmatpush1.bf16.msra.mxu1 %v6519_v0  ;;  %4598 = vmatpush1.bf16.msra.mxu0 %v6522_v1  ;;  %v8015_v0 = vsub.s32 2, %v7918_v8  ;;  %v8018_v1 = vsub.s32 1, %v7918_v8  ;;  %v6563_v8 = vld [vmem:[%s9727_s7 + $0x464] ss:$16 sps:$4 sm:$0xff]  }
 0x114   :  { %4558 = vmatprep.subr.bf16.mxu1 %v6527_v4  ;;  %4599 = vmatprep.subr.bf16.mxu0 %v6530_v5  ;;  %v1313_v4 = vrot.slane %v7931_v13, %v8012_v63 }
 0x115   :  { %v1321_v5 = vrot.slane %v7931_v13, %v8015_v0 }
 0x117   :  { %4559 = vmatpush1.bf16.msra.mxu1 %v6525_v6  ;;  %4600 = vmatpush1.bf16.msra.mxu0 %v6528_v7 }
 0x118   :  { %4560 = vmatprep.subr.bf16.mxu1 %v6533_v9  ;;  %4601 = vmatprep.subr.bf16.mxu0 %v6536_v10  ;;  %v1317_v9 = vrot.slane %v7931_v13, %v8018_v1  ;;  %v1325_v10 = vrot.slane %v7931_v13, %v8021_v2 }
 0x11b   :  { %4561 = vmatpush1.bf16.msra.mxu1 %v6531_v15  ;;  %4602 = vmatpush1.bf16.msra.mxu0 %v6534_v3 }
 0x11c   :  { %4562 = vmatprep.subr.bf16.mxu1 %v6539_v18  ;;  %4603 = vmatprep.subr.bf16.mxu0 %v6542_v19 }
 0x11f   :  { %4563 = vmatpush1.bf16.msra.mxu1 %v6537_v21  ;;  %4604 = vmatpush1.bf16.msra.mxu0 %v6540_v22 }
 0x120   :  { %4614 = vmatprep.subr.bf16.mxu0 %v6545_v23  ;;  %4860 = vmatprep.subr.bf16.mxu1 %v6548_v24 }
 0x15d   :  { %v360_v30 = vpop.f32.mrb[0].mxu0  ;;  %v401_v31 = vpop.f32.mrb[0].mxu1 }
 0x15e   :  { %v362_v32 = vpop.f32.mrb[1].mxu0  ;;  %v403_v33 = vpop.f32.mrb[1].mxu1 }
 0x15f   :  { %v364_v34 = vpop.f32.mrb[2].mxu0  ;;  %v405_v35 = vpop.f32.mrb[2].mxu1 }
 0x160   :  { %v365_v36 = vpop.f32.mrb[3].mxu0  ;;  %v406_v37 = vpop.f32.mrb[3].mxu1 }
 0x165   :  { %v7987_v38 = vpop.f32.mrb[4].mxu0  ;;  %v7989_v39 = vpop.f32.mrb[4].mxu1 }
 0x166   :  { %v7991_v40 = vpop.f32.mrb[5].mxu0  ;;  %v7993_v41 = vpop.f32.mrb[5].mxu1 }
 0x167   :  { %v446_v42 = vpop.f32.mrb[6].mxu0  ;;  %v487_v43 = vpop.f32.mrb[6].mxu1 }
 0x168   :  { %v447_v44 = vpop.f32.mrb[7].mxu0  ;;  %v488_v45 = vpop.f32.mrb[7].mxu1 }
 0x16d   :  { %v7995_v46 = vpop.f32.mrb[8].mxu0  ;;  %v7997_v47 = vpop.f32.mrb[8].mxu1 }
 0x16e   :  { %v7999_v48 = vpop.f32.mrb[9].mxu0  ;;  %v8001_v49 = vpop.f32.mrb[9].mxu1 }
 0x16f   :  { %v528_v50 = vpop.f32.mrb[10].mxu0  ;;  %v569_v51 = vpop.f32.mrb[10].mxu1 }
 0x170   :  { %v529_v52 = vpop.f32.mrb[11].mxu0  ;;  %v570_v54 = vpop.f32.mrb[11].mxu1  ;;  %v6551_v51 = vld [vmem:[%s9727_s7 + $0x424] ss:$16 sps:$4 sm:$0xff]  }
 0x171   :  { %v6554_v52 = vld [vmem:[%s9727_s7 + $0x2c] ss:$16 sps:$4 sm:$0xff]   ;;  %v6549_v54 = vld [vmem:[%s9727_s7 + $0x420] ss:$16 sps:$4 sm:$0xff]  }
 0x175   :  { %v8003_v55 = vpop.f32.mrb[12].mxu0  ;;  %v8005_v56 = vpop.f32.mrb[12].mxu1 }
 0x176   :  { %v8007_v57 = vpop.f32.mrb[13].mxu0  ;;  %v8009_v58 = vpop.f32.mrb[13].mxu1 }
 0x177   :  { %v610_v59 = vpop.f32.mrb[14].mxu0  ;;  %v651_v60 = vpop.f32.mrb[14].mxu1 }
 0x178   :  { %v611_v61 = vpop.f32.mrb[15].mxu0  ;;  %v652_v62 = vpop.f32.mrb[15].mxu1  ;;  %v6552_v59 = vld [vmem:[%s9727_s7 + $0x28] ss:$16 sps:$4 sm:$0xff]   ;;  %v6557_v60 = vld [vmem:[%s9727_s7 + $0x444] ss:$16 sps:$4 sm:$0xff]  }
 0x179   :  { %v6560_v61 = vld [vmem:[%s9727_s7 + $0x4c] ss:$16 sps:$4 sm:$0xff]  }
 0x185   :  { %v1012_v6 = vpop.f32.mrb[16].mxu0  ;;  %v1053_v7 = vpop.f32.mrb[16].mxu1 }
 0x186   :  { %v1013_v11 = vadd.f32 %v1012_v6, %v360_v30  ;;  %v1054_v12 = vadd.f32 %v1053_v7, %v401_v31  ;;  %v1014_v14 = vpop.f32.mrb[17].mxu0  ;;  %v1055_v15 = vpop.f32.mrb[17].mxu1  ;;  %v6543_v30 = vld [vmem:[%s9727_s7 + $0x400] ss:$16 sps:$4 sm:$0xff]   ;;  %v6546_v31 = vld [vmem:[%s9727_s7 + $0x8] ss:$16 sps:$4 sm:$0xff]  }
 0x187   :  { %v1015_v3 = vadd.f32 %v1014_v14, %v362_v32  ;;  %v1056_v18 = vadd.f32 %v1055_v15, %v403_v33  ;;  %v1016_v19 = vpop.f32.mrb[18].mxu0  ;;  %v1057_v21 = vpop.f32.mrb[18].mxu1  ;;  %v6555_v6 = vld [vmem:[%s9727_s7 + $0x440] ss:$16 sps:$4 sm:$0xff]   ;;  %v6558_v7 = vld [vmem:[%s9727_s7 + $0x48] ss:$16 sps:$4 sm:$0xff]  }
 0x188   :  { %v1390_v22 = vadd.f32 %v1313_v4, %v1013_v11  ;;  %v1392_v23 = vadd.f32 %v1321_v5, %v1054_v12  ;;  %v1017_v24 = vpop.f32.mrb[19].mxu0  ;;  %v1058_v34 = vpop.f32.mrb[19].mxu1  ;;  %v1333_v5 = vrot.slane %v7931_v13, %v1332_v25  ;;  %v6566_v13 = vld [vmem:[%s9727_s7 + $0x6c] ss:$16 sps:$4 sm:$0xff]  }
 0x189   :  { %v1391_v35 = vadd.f32 %v1317_v9, %v1015_v3  ;;  %v1393_v36 = vadd.f32 %v1325_v10, %v1056_v18  ;;  %v6567_v24 = vld [vmem:[%s9727_s7 + $0x480] ss:$16 sps:$4 sm:$0xff]   ;;  %v6570_v34 = vld [vmem:[%s9727_s7 + $0x88] ss:$16 sps:$4 sm:$0xff]  }
 0x18a   :  { %v1406_v37 = vmax.f32 %v1390_v22, 0.0  ;;  %v1408_v42 = vmax.f32 %v1392_v23, 0.0 }
 0x18b   :  { %v1407_v43 = vmax.f32 %v1391_v35, 0.0  ;;  %v1409_v44 = vmax.f32 %v1393_v36, 0.0  ;;  %v6575_v35 = vld [vmem:[%s9727_s7 + $0x4a4] ss:$16 sps:$4 sm:$0xff]   ;;  %v6578_v36 = vld [vmem:[%s9727_s7 + $0xac] ss:$16 sps:$4 sm:$0xff]  }
 0x18c   :  { %v8039_v32 = vpack.c.bf16 %v1406_v37, %v1406_v37  ;;  %v8041_v33 = vpack.c.bf16 %v1408_v42, %v1408_v42  ;;  %v6573_v37 = vld [vmem:[%s9727_s7 + $0x4a0] ss:$16 sps:$4 sm:$0xff]   ;;  %v6576_v42 = vld [vmem:[%s9727_s7 + $0xa8] ss:$16 sps:$4 sm:$0xff]  }
 0x18d   :  { %v1423_v45 = vpack.c.bf16 %v1407_v43, %v1407_v43  ;;  %v8031_v50 = vpack.c.bf16 %v1409_v44, %v1409_v44  ;;  %v6581_v43 = vld [vmem:[%s9727_s7 + $0x4c4] ss:$16 sps:$4 sm:$0xff]   ;;  %v6584_v44 = vld [vmem:[%s9727_s7 + $0xcc] ss:$16 sps:$4 sm:$0xff]  }
 0x18f   :  { %4564 = vmatprep.mubr.bf16.mxu1 %v1423_v45  ;;  %4605 = vmatprep.mubr.bf16.mxu0 %v8031_v50 }
 0x190   :  { %4565 = vmatmul.mubr.bf16.vlgmr.msra.gmra.mrb[32].mxu1 %v8039_v32  ;;  %4606 = vmatmul.mubr.bf16.vlgmr.msra.gmra.mrb[32].mxu0 %v8041_v33 }
 0x191   :  { %4615 = vmatpush1.bf16.msra.mxu0 %v6543_v30  ;;  %4861 = vmatpush1.bf16.msra.mxu1 %v6546_v31 }
 0x192   :  { %4892 = vmatprep.mubr.bf16.mxu1 %v1423_v45  ;;  %4616 = vmatprep.subr.bf16.mxu0 %v6551_v51  ;;  %v1353_v45 = vrot.slane %v7970_v53, %v8015_v0  ;;  %v1357_v51 = vrot.slane %v7970_v53, %v8021_v2 }
 0x193   :  { %4862 = vmatprep.subr.bf16.mxu1 %v6554_v52  ;;  %v6579_v52 = vld [vmem:[%s9727_s7 + $0x4c0] ss:$16 sps:$4 sm:$0xff]  }
 0x195   :  { %4617 = vmatpush1.bf16.msra.mxu0 %v6549_v54  ;;  %4863 = vmatpush1.bf16.msra.mxu1 %v6552_v59  ;;  %v1094_v62 = vpop.f32.mrb[20].mxu0  ;;  %v1135_v4 = vpop.f32.mrb[20].mxu1  ;;  %v6582_v54 = vld [vmem:[%s9727_s7 + $0xc8] ss:$16 sps:$4 sm:$0xff]  }
 0x196   :  { %v1095_v9 = vadd.f32 %v1094_v62, %v7987_v38  ;;  %v1136_v10 = vadd.f32 %v1135_v4, %v7989_v39  ;;  %v1096_v11 = vpop.f32.mrb[21].mxu0  ;;  %v1137_v12 = vpop.f32.mrb[21].mxu1  ;;  %4618 = vmatprep.subr.bf16.mxu0 %v6557_v60  ;;  %4864 = vmatprep.subr.bf16.mxu1 %v6560_v61  ;;  %v6587_v4 = vld [vmem:[%s9727_s7 + $0x4e4] ss:$16 sps:$4 sm:$0xff]  }
 0x197   :  { %v1097_v25 = vadd.f32 %v1096_v11, %v7991_v40  ;;  %v1138_v14 = vadd.f32 %v1137_v12, %v7993_v41  ;;  %v1098_v15 = vpop.f32.mrb[22].mxu0  ;;  %v1139_v38 = vpop.f32.mrb[22].mxu1  ;;  %v6561_v40 = vld [vmem:[%s9727_s7 + $0x460] ss:$16 sps:$4 sm:$0xff]  }
 0x198   :  { %v8084_v39 = vadd.f32 %v7941_v16, %v1095_v9  ;;  %v8087_v3 = vadd.f32 %v7944_v17, %v1136_v10  ;;  %v1099_v18 = vpop.f32.mrb[23].mxu0  ;;  %v1140_v19 = vpop.f32.mrb[23].mxu1  ;;  %v6564_v16 = vld [vmem:[%s9727_s7 + $0x68] ss:$16 sps:$4 sm:$0xff]   ;;  %v6569_v17 = vld [vmem:[%s9727_s7 + $0x484] ss:$16 sps:$4 sm:$0xff]  }
 0x199   :  { %v1395_v21 = vadd.f32 %v1333_v5, %v1097_v25  ;;  %v8090_v22 = vadd.f32 %v7953_v20, %v1138_v14  ;;  %4619 = vmatpush1.bf16.msra.mxu0 %v6555_v6  ;;  %4865 = vmatpush1.bf16.msra.mxu1 %v6558_v7  ;;  %v6572_v20 = vld [vmem:[%s9727_s7 + $0x8c] ss:$16 sps:$4 sm:$0xff]   ;;  %v6591_v25 = vld [vmem:[%s9727_s7 + $0x500] ss:$16 sps:$4 sm:$0xff]   ;;  %v6594_v14 = vld [vmem:[%s9727_s7 + $0x108] ss:$16 sps:$4 sm:$0xff]  }
 0x19a   :  { %4620 = vmatprep.subr.bf16.mxu0 %v6563_v8  ;;  %4866 = vmatprep.subr.bf16.mxu1 %v6566_v13  ;;  %v6590_v5 = vld [vmem:[%s9727_s7 + $0xec] ss:$16 sps:$4 sm:$0xff]   ;;  %v6585_v8 = vld [vmem:[%s9727_s7 + $0x4e0] ss:$16 sps:$4 sm:$0xff]   ;;  %v6599_v15 = vld [vmem:[%s9727_s7 + $0x524] ss:$16 sps:$4 sm:$0xff]  }
 0x19b   :  { %v1411_v41 = vmax.f32 %v1395_v21, 0.0  ;;  %v6596_v13 = vld [vmem:[%s9727_s7 + $0x10c] ss:$16 sps:$4 sm:$0xff]   ;;  %v6597_v18 = vld [vmem:[%s9727_s7 + $0x520] ss:$16 sps:$4 sm:$0xff]  }
 0x19c   :  { %v6602_v38 = vld [vmem:[%s9727_s7 + $0x12c] ss:$16 sps:$4 sm:$0xff]   ;;  %v6600_v19 = vld [vmem:[%s9727_s7 + $0x128] ss:$16 sps:$4 sm:$0xff]   ;;  %v6605_v21 = vld [vmem:[%s9727_s7 + $0x544] ss:$16 sps:$4 sm:$0xff]  }
 0x19d   :  { %v8104_v23 = vpack.c.bf16 %v1411_v41, %v1411_v41  ;;  %4621 = vmatpush1.bf16.msra.mxu0 %v6561_v40  ;;  %4867 = vmatpush1.bf16.msra.mxu1 %v6564_v16  ;;  %v6608_v40 = vld [vmem:[%s9727_s7 + $0x14c] ss:$16 sps:$4 sm:$0xff]   ;;  %v6606_v41 = vld [vmem:[%s9727_s7 + $0x148] ss:$16 sps:$4 sm:$0xff]  }
 0x19e   :  { %4622 = vmatprep.subr.bf16.mxu0 %v6569_v17  ;;  %4868 = vmatprep.subr.bf16.mxu1 %v6572_v20  ;;  %v6603_v20 = vld [vmem:[%s9727_s7 + $0x540] ss:$16 sps:$4 sm:$0xff]  }
 0x19f   :  { %4646 = vmatprep.mubr.bf16.mxu0 %v8104_v23 }
 0x1a1   :  { %4623 = vmatpush1.bf16.msra.mxu0 %v6567_v24  ;;  %4869 = vmatpush1.bf16.msra.mxu1 %v6570_v34 }
 0x1a2   :  { %4624 = vmatprep.subr.bf16.mxu0 %v6575_v35  ;;  %4870 = vmatprep.subr.bf16.mxu1 %v6578_v36 }
 0x1a5   :  { %4625 = vmatpush1.bf16.msra.mxu0 %v6573_v37  ;;  %4871 = vmatpush1.bf16.msra.mxu1 %v6576_v42  ;;  %v1176_v30 = vpop.f32.mrb[24].mxu0  ;;  %v1217_v31 = vpop.f32.mrb[24].mxu1  ;;  %v6611_v37 = vld [vmem:[%s9727_s7 + $0x564] ss:$16 sps:$4 sm:$0xff]   ;;  %v6614_v42 = vld [vmem:[%s9727_s7 + $0x16c] ss:$16 sps:$4 sm:$0xff]  }
 0x1a6   :  { %v8142_v59 = vadd.f32 %v1176_v30, %v7995_v46  ;;  %v1218_v60 = vadd.f32 %v1217_v31, %v7997_v47  ;;  %v1178_v61 = vpop.f32.mrb[25].mxu0  ;;  %v1219_v62 = vpop.f32.mrb[25].mxu1  ;;  %4626 = vmatprep.subr.bf16.mxu0 %v6581_v43  ;;  %4872 = vmatprep.subr.bf16.mxu1 %v6584_v44 }
 0x1a7   :  { %v8152_v6 = vadd.f32 %v1178_v61, %v7999_v48  ;;  %v1220_v46 = vadd.f32 %v1219_v62, %v8001_v49  ;;  %v1180_v7 = vpop.f32.mrb[26].mxu0  ;;  %v1221_v9 = vpop.f32.mrb[26].mxu1  ;;  %v6588_v48 = vld [vmem:[%s9727_s7 + $0xe8] ss:$16 sps:$4 sm:$0xff]   ;;  %v6593_v49 = vld [vmem:[%s9727_s7 + $0x504] ss:$16 sps:$4 sm:$0xff]  }
 0x1a8   :  { %v8155_v47 = vadd.f32 %v1353_v45, %v1218_v60  ;;  %v1181_v10 = vpop.f32.mrb[27].mxu0  ;;  %v1222_v11 = vpop.f32.mrb[27].mxu1  ;;  %v6623_v60 = vld [vmem:[%s9727_s7 + $0x5a4] ss:$16 sps:$4 sm:$0xff]   ;;  %v6626_v61 = vld [vmem:[%s9727_s7 + $0x1ac] ss:$16 sps:$4 sm:$0xff]  }
 0x1a9   :  { %v8157_v12 = vadd.f32 %v1357_v51, %v1220_v46  ;;  %4627 = vmatpush1.bf16.msra.mxu0 %v6579_v52  ;;  %4873 = vmatpush1.bf16.msra.mxu1 %v6582_v54  ;;  %v6621_v62 = vld [vmem:[%s9727_s7 + $0x5a0] ss:$16 sps:$4 sm:$0xff]   ;;  %v6632_v46 = vld [vmem:[%s9727_s7 + $0x1cc] ss:$16 sps:$4 sm:$0xff]   ;;  %v6630_v9 = vld [vmem:[%s9727_s7 + $0x1c8] ss:$16 sps:$4 sm:$0xff]  }
 0x1aa   :  { %4628 = vmatprep.subr.bf16.mxu0 %v6587_v4  ;;  %4874 = vmatprep.subr.bf16.mxu1 %v6590_v5  ;;  %v6624_v4 = vld [vmem:[%s9727_s7 + $0x1a8] ss:$16 sps:$4 sm:$0xff]   ;;  %v6629_v5 = vld [vmem:[%s9727_s7 + $0x5c4] ss:$16 sps:$4 sm:$0xff]   ;;  %v6627_v7 = vld [vmem:[%s9727_s7 + $0x5c0] ss:$16 sps:$4 sm:$0xff]  }
 0x1ab   :  { %v6635_v10 = vld [vmem:[%s9727_s7 + $0x5e4] ss:$16 sps:$4 sm:$0xff]   ;;  %v6638_v11 = vld [vmem:[%s9727_s7 + $0x1ec] ss:$16 sps:$4 sm:$0xff]  }
 0x1ad   :  { %4629 = vmatpush1.bf16.msra.mxu0 %v6585_v8  ;;  %4875 = vmatpush1.bf16.msra.mxu1 %v6588_v48  ;;  %v6633_v8 = vld [vmem:[%s9727_s7 + $0x5e0] ss:$16 sps:$4 sm:$0xff]   ;;  %v6636_v48 = vld [vmem:[%s9727_s7 + $0x1e8] ss:$16 sps:$4 sm:$0xff]  }
 0x1ae   :  { %4630 = vmatprep.subr.bf16.mxu0 %v6593_v49  ;;  %4876 = vmatprep.subr.bf16.mxu1 %v6596_v13  ;;  %v1410_v49 = vmax.f32 %v8084_v39, 0.0  ;;  %v6641_v13 = vld [vmem:[%s9727_s7 + $0x604] ss:$16 sps:$4 sm:$0xff]   ;;  %v6642_v39 = vld [vmem:[%s9727_s7 + $0x208] ss:$16 sps:$4 sm:$0xff]  }
 0x1b1   :  { %4631 = vmatpush1.bf16.msra.mxu0 %v6591_v25  ;;  %4877 = vmatpush1.bf16.msra.mxu1 %v6594_v14  ;;  %v6644_v25 = vld [vmem:[%s9727_s7 + $0x20c] ss:$16 sps:$4 sm:$0xff]   ;;  %v1413_v14 = vmax.f32 %v8090_v22, 0.0  ;;  %v6647_v22 = vld [vmem:[%s9727_s7 + $0x624] ss:$16 sps:$4 sm:$0xff]  }
 0x1b2   :  { %4632 = vmatprep.subr.bf16.mxu0 %v6599_v15  ;;  %4878 = vmatprep.subr.bf16.mxu1 %v6602_v38  ;;  %v6639_v15 = vld [vmem:[%s9727_s7 + $0x600] ss:$16 sps:$4 sm:$0xff]   ;;  %v8288_v38 = vpack.c.bf16 %v1410_v49, %v1410_v49  ;;  %v6707_v49 = vld [vmem:[%s9727_s7 + $0x764] ss:$16 sps:$4 sm:$0xff]  }
 0x1b5   :  { %4633 = vmatpush1.bf16.msra.mxu0 %v6597_v18  ;;  %4879 = vmatpush1.bf16.msra.mxu1 %v6600_v19  ;;  %v1258_v16 = vpop.f32.mrb[28].mxu0  ;;  %v1299_v17 = vpop.f32.mrb[28].mxu1  ;;  %v8293_v18 = vpack.c.bf16 %v1413_v14, %v1413_v14  ;;  %v6650_v19 = vld [vmem:[%s9727_s7 + $0x22c] ss:$16 sps:$4 sm:$0xff]   ;;  %v6708_v14 = vld [vmem:[%s9727_s7 + $0x368] ss:$16 sps:$4 sm:$0xff]  }
 0x1b6   :  { %v1259_v24 = vadd.f32 %v1258_v16, %v8003_v55  ;;  %v1300_v34 = vadd.f32 %v1299_v17, %v8005_v56  ;;  %v1260_v35 = vpop.f32.mrb[29].mxu0  ;;  %v1301_v36 = vpop.f32.mrb[29].mxu1  ;;  %4634 = vmatprep.subr.bf16.mxu0 %v6605_v21  ;;  %4880 = vmatprep.subr.bf16.mxu1 %v6608_v40  ;;  %v6645_v21 = vld [vmem:[%s9727_s7 + $0x620] ss:$16 sps:$4 sm:$0xff]   ;;  %v6648_v40 = vld [vmem:[%s9727_s7 + $0x228] ss:$16 sps:$4 sm:$0xff]  }
 0x1b7   :  { %v1261_v43 = vadd.f32 %v1260_v35, %v8007_v57  ;;  %v1302_v44 = vadd.f32 %v1301_v36, %v8009_v58  ;;  %v1303_v45 = vpop.f32.mrb[30].mxu1  ;;  %v1262_v55 = vpop.f32.mrb[30].mxu0  ;;  %v6609_v57 = vld [vmem:[%s9727_s7 + $0x560] ss:$16 sps:$4 sm:$0xff]   ;;  %v6618_v58 = vld [vmem:[%s9727_s7 + $0x188] ss:$16 sps:$4 sm:$0xff]  }
 0x1b8   :  { %v8212_v56 = vadd.f32 %v7974_v26, %v1259_v24  ;;  %v8215_v30 = vadd.f32 %v7977_v27, %v1300_v34  ;;  %v1304_v31 = vpop.f32.mrb[31].mxu1  ;;  %v1263_v51 = vpop.f32.mrb[31].mxu0  ;;  %v6612_v26 = vld [vmem:[%s9727_s7 + $0x168] ss:$16 sps:$4 sm:$0xff]   ;;  %v6617_v27 = vld [vmem:[%s9727_s7 + $0x584] ss:$16 sps:$4 sm:$0xff]  }
 0x1b9   :  { %v8218_v52 = vadd.f32 %v7982_v28, %v1261_v43  ;;  %v8221_v54 = vadd.f32 %v7985_v29, %v1302_v44  ;;  %4635 = vmatpush1.bf16.msra.mxu0 %v6603_v20  ;;  %4881 = vmatpush1.bf16.msra.mxu1 %v6606_v41  ;;  %v6620_v28 = vld [vmem:[%s9727_s7 + $0x18c] ss:$16 sps:$4 sm:$0xff]   ;;  %v6615_v29 = vld [vmem:[%s9727_s7 + $0x580] ss:$16 sps:$4 sm:$0xff]   ;;  %v6653_v16 = vld [vmem:[%s9727_s7 + $0x644] ss:$16 sps:$4 sm:$0xff]  }
 0x1ba   :  { %4636 = vmatprep.subr.bf16.mxu0 %v6611_v37  ;;  %4882 = vmatprep.subr.bf16.mxu1 %v6614_v42  ;;  %v6651_v17 = vld [vmem:[%s9727_s7 + $0x640] ss:$16 sps:$4 sm:$0xff]   ;;  %v6659_v20 = vld [vmem:[%s9727_s7 + $0x664] ss:$16 sps:$4 sm:$0xff]   ;;  %v6662_v41 = vld [vmem:[%s9727_s7 + $0x26c] ss:$16 sps:$4 sm:$0xff]  }
 0x1bb   :  { %v6657_v24 = vld [vmem:[%s9727_s7 + $0x660] ss:$16 sps:$4 sm:$0xff]   ;;  %v6660_v34 = vld [vmem:[%s9727_s7 + $0x268] ss:$16 sps:$4 sm:$0xff]   ;;  %v6665_v35 = vld [vmem:[%s9727_s7 + $0x684] ss:$16 sps:$4 sm:$0xff]  }
 0x1bc   :  { %v6668_v36 = vld [vmem:[%s9727_s7 + $0x28c] ss:$16 sps:$4 sm:$0xff]   ;;  %v6663_v37 = vld [vmem:[%s9727_s7 + $0x680] ss:$16 sps:$4 sm:$0xff]   ;;  %v6666_v42 = vld [vmem:[%s9727_s7 + $0x288] ss:$16 sps:$4 sm:$0xff]  }
 0x1bd   :  { %4637 = vmatpush1.bf16.msra.mxu0 %v6609_v57  ;;  %4883 = vmatpush1.bf16.msra.mxu1 %v6612_v26  ;;  %v6671_v43 = vld [vmem:[%s9727_s7 + $0x6a4] ss:$16 sps:$4 sm:$0xff]   ;;  %v6674_v44 = vld [vmem:[%s9727_s7 + $0x2ac] ss:$16 sps:$4 sm:$0xff]   ;;  %v6669_v45 = vld [vmem:[%s9727_s7 + $0x6a0] ss:$16 sps:$4 sm:$0xff]  }
 0x1be   :  { %4638 = vmatprep.subr.bf16.mxu0 %v6617_v27  ;;  %4884 = vmatprep.subr.bf16.mxu1 %v6620_v28  ;;  %v6672_v55 = vld [vmem:[%s9727_s7 + $0x2a8] ss:$16 sps:$4 sm:$0xff]   ;;  %v6677_v31 = vld [vmem:[%s9727_s7 + $0x6c4] ss:$16 sps:$4 sm:$0xff]   ;;  %v6680_v51 = vld [vmem:[%s9727_s7 + $0x2cc] ss:$16 sps:$4 sm:$0xff]  }
 0x1bf   :  { %v6675_v57 = vld [vmem:[%s9727_s7 + $0x6c0] ss:$16 sps:$4 sm:$0xff]   ;;  %v6678_v26 = vld [vmem:[%s9727_s7 + $0x2c8] ss:$16 sps:$4 sm:$0xff]   ;;  %v6683_v27 = vld [vmem:[%s9727_s7 + $0x6e4] ss:$16 sps:$4 sm:$0xff]  }
 0x1c0   :  { %v6686_v28 = vld [vmem:[%s9727_s7 + $0x2ec] ss:$16 sps:$4 sm:$0xff]  }
 0x1c1   :  { %4639 = vmatpush1.bf16.msra.mxu0 %v6615_v29  ;;  %4885 = vmatpush1.bf16.msra.mxu1 %v6618_v58  ;;  %v6681_v29 = vld [vmem:[%s9727_s7 + $0x6e0] ss:$16 sps:$4 sm:$0xff]   ;;  %v6684_v58 = vld [vmem:[%s9727_s7 + $0x2e8] ss:$16 sps:$4 sm:$0xff]  }
 0x1c2   :  { %4640 = vmatprep.subr.bf16.mxu0 %v6623_v60  ;;  %4886 = vmatprep.subr.bf16.mxu1 %v6626_v61  ;;  %v6689_v60 = vld [vmem:[%s9727_s7 + $0x704] ss:$16 sps:$4 sm:$0xff]   ;;  %v6692_v61 = vld [vmem:[%s9727_s7 + $0x30c] ss:$16 sps:$4 sm:$0xff]  }
 0x1c5   :  { %4641 = vmatpush1.bf16.msra.mxu0 %v6621_v62  ;;  %4887 = vmatpush1.bf16.msra.mxu1 %v6624_v4  ;;  %v6687_v62 = vld [vmem:[%s9727_s7 + $0x700] ss:$16 sps:$4 sm:$0xff]   ;;  %v6690_v4 = vld [vmem:[%s9727_s7 + $0x308] ss:$16 sps:$4 sm:$0xff]  }
 0x1c6   :  { %4642 = vmatprep.subr.bf16.mxu0 %v6629_v5  ;;  %4888 = vmatprep.subr.bf16.mxu1 %v6632_v46  ;;  %v6695_v5 = vld [vmem:[%s9727_s7 + $0x724] ss:$16 sps:$4 sm:$0xff]   ;;  %v6698_v46 = vld [vmem:[%s9727_s7 + $0x32c] ss:$16 sps:$4 sm:$0xff]  }
 0x1c9   :  { %4643 = vmatpush1.bf16.msra.mxu0 %v6627_v7  ;;  %4889 = vmatpush1.bf16.msra.mxu1 %v6630_v9  ;;  %v6693_v7 = vld [vmem:[%s9727_s7 + $0x720] ss:$16 sps:$4 sm:$0xff]   ;;  %v6696_v9 = vld [vmem:[%s9727_s7 + $0x328] ss:$16 sps:$4 sm:$0xff]  }
 0x1ca   :  { %4644 = vmatprep.subr.bf16.mxu0 %v6635_v10  ;;  %4890 = vmatprep.subr.bf16.mxu1 %v6638_v11  ;;  %v6701_v10 = vld [vmem:[%s9727_s7 + $0x744] ss:$16 sps:$4 sm:$0xff]   ;;  %v6704_v11 = vld [vmem:[%s9727_s7 + $0x34c] ss:$16 sps:$4 sm:$0xff]  }
 0x1cd   :  { %4645 = vmatpush1.bf16.msra.mxu0 %v6633_v8  ;;  %4891 = vmatpush1.bf16.msra.mxu1 %v6636_v48  ;;  %v6699_v8 = vld [vmem:[%s9727_s7 + $0x740] ss:$16 sps:$4 sm:$0xff]   ;;  %v6702_v48 = vld [vmem:[%s9727_s7 + $0x348] ss:$16 sps:$4 sm:$0xff]  }
 0x1ce   :  { %4655 = vmatprep.subr.bf16.mxu0 %v6641_v13  ;;  %4901 = vmatprep.subr.bf16.mxu1 %v6644_v25  ;;  %v6710_v13 = vld [vmem:[%s9727_s7 + $0x36c] ss:$16 sps:$4 sm:$0xff]   ;;  %v6705_v25 = vld [vmem:[%s9727_s7 + $0x760] ss:$16 sps:$4 sm:$0xff]  }
 0x1d0   :  { %4647 = vmatmul.mubr.bf16.vlgmr.msra.gmra.mrb[32].mxu0 %v8288_v38  ;;  %4893 = vmatmul.mubr.bf16.vlgmr.msra.gmra.mrb[36].mxu1 %v8039_v32  ;;  %v6656_v32 = vld [vmem:[%s9727_s7 + $0x24c] ss:$16 sps:$4 sm:$0xff]  }
 0x1d1   :  { %4656 = vmatpush1.bf16.msra.mxu0 %v6639_v15  ;;  %4687 = vmatprep.mubr.bf16.mxu0 %v8293_v18  ;;  %v6713_v15 = vld [vmem:[%s9727_s7 + $0x784] ss:$16 sps:$4 sm:$0xff]  }
 0x1d2   :  { %4902 = vmatpush1.bf16.msra.mxu1 %v6642_v39  ;;  %4933 = vmatprep.mubr.bf16.mxu1 %v8031_v50  ;;  %v6654_v50 = vld [vmem:[%s9727_s7 + $0x248] ss:$16 sps:$4 sm:$0xff]   ;;  %v6716_v39 = vld [vmem:[%s9727_s7 + $0x38c] ss:$16 sps:$4 sm:$0xff]  }
 0x1d3   :  { %4657 = vmatprep.subr.bf16.mxu0 %v6647_v22  ;;  %4903 = vmatprep.subr.bf16.mxu1 %v6650_v19  ;;  %v6711_v22 = vld [vmem:[%s9727_s7 + $0x780] ss:$16 sps:$4 sm:$0xff]   ;;  %v6714_v19 = vld [vmem:[%s9727_s7 + $0x388] ss:$16 sps:$4 sm:$0xff]  }
 0x1d5   :  { %4658 = vmatpush1.bf16.msra.mxu0 %v6645_v21  ;;  %v6719_v21 = vld [vmem:[%s9727_s7 + $0x7a4] ss:$16 sps:$4 sm:$0xff]  }
 0x1d6   :  { %4904 = vmatpush1.bf16.msra.mxu1 %v6648_v40  ;;  %4659 = vmatprep.subr.bf16.mxu0 %v6653_v16  ;;  %v6722_v40 = vld [vmem:[%s9727_s7 + $0x3ac] ss:$16 sps:$4 sm:$0xff]   ;;  %v6717_v16 = vld [vmem:[%s9727_s7 + $0x7a0] ss:$16 sps:$4 sm:$0xff]  }
 0x1d7   :  { %4905 = vmatprep.subr.bf16.mxu1 %v6656_v32  ;;  %v6720_v32 = vld [vmem:[%s9727_s7 + $0x3a8] ss:$16 sps:$4 sm:$0xff]  }
 0x1d9   :  { %4660 = vmatpush1.bf16.msra.mxu0 %v6651_v17  ;;  %v6725_v17 = vld [vmem:[%s9727_s7 + $0x7c4] ss:$16 sps:$4 sm:$0xff]  }
 0x1da   :  { %4906 = vmatpush1.bf16.msra.mxu1 %v6654_v50  ;;  %4661 = vmatprep.subr.bf16.mxu0 %v6659_v20  ;;  %v6728_v50 = vld [vmem:[%s9727_s7 + $0x3cc] ss:$16 sps:$4 sm:$0xff]   ;;  %v1349_v20 = vrot.slane %v7970_v53, %v8018_v1 }
 0x1db   :  { %4907 = vmatprep.subr.bf16.mxu1 %v6662_v41  ;;  %v6723_v41 = vld [vmem:[%s9727_s7 + $0x7c0] ss:$16 sps:$4 sm:$0xff]  }
 0x1dd   :  { %4662 = vmatpush1.bf16.msra.mxu0 %v6657_v24  ;;  %v6726_v24 = vld [vmem:[%s9727_s7 + $0x3c8] ss:$16 sps:$4 sm:$0xff]  }
 0x1de   :  { %4908 = vmatpush1.bf16.msra.mxu1 %v6660_v34  ;;  %4663 = vmatprep.subr.bf16.mxu0 %v6665_v35  ;;  %v6731_v34 = vld [vmem:[%s9727_s7 + $0x7e4] ss:$16 sps:$4 sm:$0xff]   ;;  %v6734_v35 = vld [vmem:[%s9727_s7 + $0x3ec] ss:$16 sps:$4 sm:$0xff]  }
 0x1df   :  { %4909 = vmatprep.subr.bf16.mxu1 %v6668_v36  ;;  %v1399_v36 = vadd.f32 %v1349_v20, %v8152_v6  ;;  %v6740_v6 = vld [vmem:[%s9727_s7 + $0x40c] ss:$16 sps:$4 sm:$0xff]   ;;  %v6789_v20 = vld [vmem:[%s9727_s7 + $0x920] ss:$16 sps:$4 sm:$0xff]  }
 0x1e1   :  { %4664 = vmatpush1.bf16.msra.mxu0 %v6663_v37  ;;  %v6729_v37 = vld [vmem:[%s9727_s7 + $0x7e0] ss:$16 sps:$4 sm:$0xff]  }
 0x1e2   :  { %4910 = vmatpush1.bf16.msra.mxu1 %v6666_v42  ;;  %4665 = vmatprep.subr.bf16.mxu0 %v6671_v43  ;;  %v1412_v42 = vmax.f32 %v8087_v3, 0.0  ;;  %v6732_v43 = vld [vmem:[%s9727_s7 + $0x3e8] ss:$16 sps:$4 sm:$0xff]   ;;  %v6735_v3 = vld [vmem:[%s9727_s7 + $0x800] ss:$16 sps:$4 sm:$0xff]  }
 0x1e3   :  { %4911 = vmatprep.subr.bf16.mxu1 %v6674_v44  ;;  %v6737_v44 = vld [vmem:[%s9727_s7 + $0x804] ss:$16 sps:$4 sm:$0xff]  }
 0x1e5   :  { %4666 = vmatpush1.bf16.msra.mxu0 %v6669_v45  ;;  %v1415_v45 = vmax.f32 %v1399_v36, 0.0  ;;  %v6798_v36 = vld [vmem:[%s9727_s7 + $0x548] ss:$16 sps:$4 sm:$0xff]  }
 0x1e6   :  { %4912 = vmatpush1.bf16.msra.mxu1 %v6672_v55  ;;  %4667 = vmatprep.subr.bf16.mxu0 %v6677_v31  ;;  %v8492_v55 = vpack.c.bf16 %v1412_v42, %v1412_v42  ;;  %v6738_v31 = vld [vmem:[%s9727_s7 + $0x408] ss:$16 sps:$4 sm:$0xff]   ;;  %v6806_v42 = vld [vmem:[%s9727_s7 + $0x56c] ss:$16 sps:$4 sm:$0xff]  }
 0x1e7   :  { %4913 = vmatprep.subr.bf16.mxu1 %v6680_v51  ;;  %v6743_v51 = vld [vmem:[%s9727_s7 + $0x824] ss:$16 sps:$4 sm:$0xff]  }
 0x1e9   :  { %4668 = vmatpush1.bf16.msra.mxu0 %v6675_v57  ;;  %v8500_v57 = vpack.c.bf16 %v1415_v45, %v1415_v45  ;;  %v6812_v45 = vld [vmem:[%s9727_s7 + $0x58c] ss:$16 sps:$4 sm:$0xff]  }
 0x1ea   :  { %4914 = vmatpush1.bf16.msra.mxu1 %v6678_v26  ;;  %4669 = vmatprep.subr.bf16.mxu0 %v6683_v27  ;;  %v6746_v26 = vld [vmem:[%s9727_s7 + $0x42c] ss:$16 sps:$4 sm:$0xff]   ;;  %v6741_v27 = vld [vmem:[%s9727_s7 + $0x820] ss:$16 sps:$4 sm:$0xff]  }
 0x1eb   :  { %4915 = vmatprep.subr.bf16.mxu1 %v6686_v28  ;;  %v6744_v28 = vld [vmem:[%s9727_s7 + $0x428] ss:$16 sps:$4 sm:$0xff]  }
 0x1ed   :  { %4670 = vmatpush1.bf16.msra.mxu0 %v6681_v29  ;;  %v6749_v29 = vld [vmem:[%s9727_s7 + $0x844] ss:$16 sps:$4 sm:$0xff]  }
 0x1ee   :  { %4916 = vmatpush1.bf16.msra.mxu1 %v6684_v58  ;;  %4671 = vmatprep.subr.bf16.mxu0 %v6689_v60  ;;  %v6747_v58 = vld [vmem:[%s9727_s7 + $0x840] ss:$16 sps:$4 sm:$0xff]   ;;  %v6750_v60 = vld [vmem:[%s9727_s7 + $0x448] ss:$16 sps:$4 sm:$0xff]  }
 0x1ef   :  { %4917 = vmatprep.subr.bf16.mxu1 %v6692_v61  ;;  %v6758_v61 = vld [vmem:[%s9727_s7 + $0x46c] ss:$16 sps:$4 sm:$0xff]  }
 0x1f1   :  { %4672 = vmatpush1.bf16.msra.mxu0 %v6687_v62  ;;  %v6753_v62 = vld [vmem:[%s9727_s7 + $0x860] ss:$16 sps:$4 sm:$0xff]  }
 0x1f2   :  { %4918 = vmatpush1.bf16.msra.mxu1 %v6690_v4  ;;  %4673 = vmatprep.subr.bf16.mxu0 %v6695_v5  ;;  %v6756_v4 = vld [vmem:[%s9727_s7 + $0x468] ss:$16 sps:$4 sm:$0xff]   ;;  %v6761_v5 = vld [vmem:[%s9727_s7 + $0x884] ss:$16 sps:$4 sm:$0xff]  }
 0x1f3   :  { %4919 = vmatprep.subr.bf16.mxu1 %v6698_v46  ;;  %v6764_v46 = vld [vmem:[%s9727_s7 + $0x48c] ss:$16 sps:$4 sm:$0xff]  }
 0x1f5   :  { %4674 = vmatpush1.bf16.msra.mxu0 %v6693_v7  ;;  %v6759_v7 = vld [vmem:[%s9727_s7 + $0x880] ss:$16 sps:$4 sm:$0xff]  }
 0x1f6   :  { %4920 = vmatpush1.bf16.msra.mxu1 %v6696_v9  ;;  %4675 = vmatprep.subr.bf16.mxu0 %v6701_v10  ;;  %v6762_v9 = vld [vmem:[%s9727_s7 + $0x488] ss:$16 sps:$4 sm:$0xff]   ;;  %v6767_v10 = vld [vmem:[%s9727_s7 + $0x8a4] ss:$16 sps:$4 sm:$0xff]  }
 0x1f7   :  { %4921 = vmatprep.subr.bf16.mxu1 %v6704_v11  ;;  %v6770_v11 = vld [vmem:[%s9727_s7 + $0x4ac] ss:$16 sps:$4 sm:$0xff]  }
 0x1f9   :  { %4676 = vmatpush1.bf16.msra.mxu0 %v6699_v8  ;;  %v6765_v8 = vld [vmem:[%s9727_s7 + $0x8a0] ss:$16 sps:$4 sm:$0xff]  }
 0x1fa   :  { %4922 = vmatpush1.bf16.msra.mxu1 %v6702_v48  ;;  %4677 = vmatprep.subr.bf16.mxu0 %v6707_v49  ;;  %v6768_v48 = vld [vmem:[%s9727_s7 + $0x4a8] ss:$16 sps:$4 sm:$0xff]   ;;  %v6773_v49 = vld [vmem:[%s9727_s7 + $0x8c4] ss:$16 sps:$4 sm:$0xff]  }
 0x1fb   :  { %4923 = vmatprep.subr.bf16.mxu1 %v6710_v13  ;;  %v6776_v13 = vld [vmem:[%s9727_s7 + $0x4cc] ss:$16 sps:$4 sm:$0xff]  }
 0x1fd   :  { %4678 = vmatpush1.bf16.msra.mxu0 %v6705_v25  ;;  %v6771_v25 = vld [vmem:[%s9727_s7 + $0x8c0] ss:$16 sps:$4 sm:$0xff]  }
 0x1fe   :  { %4924 = vmatpush1.bf16.msra.mxu1 %v6708_v14  ;;  %4679 = vmatprep.subr.bf16.mxu0 %v6713_v15  ;;  %v6774_v14 = vld [vmem:[%s9727_s7 + $0x4c8] ss:$16 sps:$4 sm:$0xff]   ;;  %v6779_v15 = vld [vmem:[%s9727_s7 + $0x8e4] ss:$16 sps:$4 sm:$0xff]  }
 0x1ff   :  { %4925 = vmatprep.subr.bf16.mxu1 %v6716_v39  ;;  %v6782_v39 = vld [vmem:[%s9727_s7 + $0x4ec] ss:$16 sps:$4 sm:$0xff]  }
 0x201   :  { %4680 = vmatpush1.bf16.msra.mxu0 %v6711_v22  ;;  %v6777_v22 = vld [vmem:[%s9727_s7 + $0x8e0] ss:$16 sps:$4 sm:$0xff]  }
 0x202   :  { %4926 = vmatpush1.bf16.msra.mxu1 %v6714_v19  ;;  %4681 = vmatprep.subr.bf16.mxu0 %v6719_v21  ;;  %v6780_v19 = vld [vmem:[%s9727_s7 + $0x4e8] ss:$16 sps:$4 sm:$0xff]   ;;  %v6785_v21 = vld [vmem:[%s9727_s7 + $0x904] ss:$16 sps:$4 sm:$0xff]  }
 0x203   :  { %4927 = vmatprep.subr.bf16.mxu1 %v6722_v40  ;;  %v6788_v40 = vld [vmem:[%s9727_s7 + $0x50c] ss:$16 sps:$4 sm:$0xff]  }
 0x205   :  { %4682 = vmatpush1.bf16.msra.mxu0 %v6717_v16  ;;  %v6783_v16 = vld [vmem:[%s9727_s7 + $0x900] ss:$16 sps:$4 sm:$0xff]  }
 0x206   :  { %4928 = vmatpush1.bf16.msra.mxu1 %v6720_v32  ;;  %4683 = vmatprep.subr.bf16.mxu0 %v6725_v17  ;;  %v6786_v32 = vld [vmem:[%s9727_s7 + $0x508] ss:$16 sps:$4 sm:$0xff]   ;;  %v6791_v17 = vld [vmem:[%s9727_s7 + $0x924] ss:$16 sps:$4 sm:$0xff]  }
 0x207   :  { %4929 = vmatprep.subr.bf16.mxu1 %v6728_v50  ;;  %v6794_v50 = vld [vmem:[%s9727_s7 + $0x52c] ss:$16 sps:$4 sm:$0xff]  }
 0x209   :  { %4684 = vmatpush1.bf16.msra.mxu0 %v6723_v41  ;;  %v6792_v41 = vld [vmem:[%s9727_s7 + $0x528] ss:$16 sps:$4 sm:$0xff]  }
 0x20a   :  { %4930 = vmatpush1.bf16.msra.mxu1 %v6726_v24  ;;  %4685 = vmatprep.subr.bf16.mxu0 %v6731_v34  ;;  %v6797_v24 = vld [vmem:[%s9727_s7 + $0x944] ss:$16 sps:$4 sm:$0xff]   ;;  %v6800_v34 = vld [vmem:[%s9727_s7 + $0x54c] ss:$16 sps:$4 sm:$0xff]  }
 0x20b   :  { %4931 = vmatprep.subr.bf16.mxu1 %v6734_v35  ;;  %v6795_v35 = vld [vmem:[%s9727_s7 + $0x940] ss:$16 sps:$4 sm:$0xff]  }
 0x20d   :  { %4686 = vmatpush1.bf16.msra.mxu0 %v6729_v37  ;;  %v6803_v37 = vld [vmem:[%s9727_s7 + $0x964] ss:$16 sps:$4 sm:$0xff]  }
 0x20e   :  { %4932 = vmatpush1.bf16.msra.mxu1 %v6732_v43  ;;  %4696 = vmatprep.subr.bf16.mxu0 %v6737_v44  ;;  %v6801_v43 = vld [vmem:[%s9727_s7 + $0x960] ss:$16 sps:$4 sm:$0xff]   ;;  %v6804_v44 = vld [vmem:[%s9727_s7 + $0x568] ss:$16 sps:$4 sm:$0xff]  }
 0x20f   :  { %4942 = vmatprep.subr.bf16.mxu1 %v6740_v6  ;;  %v6809_v6 = vld [vmem:[%s9727_s7 + $0x984] ss:$16 sps:$4 sm:$0xff]  }
 0x210   :  { %4688 = vmatmul.mubr.bf16.vlgmr.msra.gmra.mrb[32].mxu0 %v8492_v55 }
 0x211   :  { %4934 = vmatmul.mubr.bf16.vlgmr.msra.gmra.mrb[36].mxu1 %v8041_v33  ;;  %4697 = vmatpush1.bf16.msra.mxu0 %v6735_v3  ;;  %v6752_v33 = vld [vmem:[%s9727_s7 + $0x44c] ss:$16 sps:$4 sm:$0xff]   ;;  %v6807_v3 = vld [vmem:[%s9727_s7 + $0x980] ss:$16 sps:$4 sm:$0xff]  }
 0x212   :  { %4728 = vmatprep.mubr.bf16.mxu0 %v8500_v57  ;;  %4943 = vmatpush1.bf16.msra.mxu1 %v6738_v31  ;;  %v6810_v31 = vld [vmem:[%s9727_s7 + $0x588] ss:$16 sps:$4 sm:$0xff]  }
 0x213   :  { %4974 = vmatprep.mubr.bf16.mxu1 %v8104_v23  ;;  %4698 = vmatprep.subr.bf16.mxu0 %v6743_v51  ;;  %v6755_v23 = vld [vmem:[%s9727_s7 + $0x864] ss:$16 sps:$4 sm:$0xff]  }
 0x214   :  { %4944 = vmatprep.subr.bf16.mxu1 %v6746_v26  ;;  %v6815_v51 = vld [vmem:[%s9727_s7 + $0x9a4] ss:$16 sps:$4 sm:$0xff]   ;;  %v6818_v26 = vld [vmem:[%s9727_s7 + $0x5ac] ss:$16 sps:$4 sm:$0xff]  }
 0x215   :  { %4699 = vmatpush1.bf16.msra.mxu0 %v6741_v27  ;;  %v6813_v27 = vld [vmem:[%s9727_s7 + $0x9a0] ss:$16 sps:$4 sm:$0xff]  }
 0x216   :  { %4945 = vmatpush1.bf16.msra.mxu1 %v6744_v28  ;;  %4700 = vmatprep.subr.bf16.mxu0 %v6749_v29  ;;  %v1345_v28 = vrot.slane %v7970_v53, %v8012_v63  ;;  %v6816_v29 = vld [vmem:[%s9727_s7 + $0x5a8] ss:$16 sps:$4 sm:$0xff]   ;;  %v6819_v53 = vld [vmem:[%s9727_s7 + $0x9c0] ss:$16 sps:$4 sm:$0xff]  }
 0x217   :  { %4946 = vmatprep.subr.bf16.mxu1 %v6752_v33  ;;  %v6821_v33 = vld [vmem:[%s9727_s7 + $0x9c4] ss:$16 sps:$4 sm:$0xff]  }
 0x219   :  { %4701 = vmatpush1.bf16.msra.mxu0 %v6747_v58  ;;  %v6824_v58 = vld [vmem:[%s9727_s7 + $0x5cc] ss:$16 sps:$4 sm:$0xff]  }
 0x21a   :  { %4947 = vmatpush1.bf16.msra.mxu1 %v6750_v60  ;;  %4702 = vmatprep.subr.bf16.mxu0 %v6755_v23  ;;  %v1398_v60 = vadd.f32 %v1345_v28, %v8142_v59  ;;  %v6822_v23 = vld [vmem:[%s9727_s7 + $0x5c8] ss:$16 sps:$4 sm:$0xff]   ;;  %v6825_v59 = vld [vmem:[%s9727_s7 + $0x9e0] ss:$16 sps:$4 sm:$0xff]  }
 0x21b   :  { %4948 = vmatprep.subr.bf16.mxu1 %v6758_v61  ;;  %v6827_v61 = vld [vmem:[%s9727_s7 + $0x9e4] ss:$16 sps:$4 sm:$0xff]   ;;  %v6879_v28 = vld [vmem:[%s9727_s7 + $0xb00] ss:$16 sps:$4 sm:$0xff]  }
 0x21d   :  { %4703 = vmatpush1.bf16.msra.mxu0 %v6753_v62  ;;  %v6830_v62 = vld [vmem:[%s9727_s7 + $0x5ec] ss:$16 sps:$4 sm:$0xff]  }
 0x21e   :  { %4949 = vmatpush1.bf16.msra.mxu1 %v6756_v4  ;;  %4704 = vmatprep.subr.bf16.mxu0 %v6761_v5  ;;  %v1414_v4 = vmax.f32 %v1398_v60, 0.0  ;;  %v6828_v5 = vld [vmem:[%s9727_s7 + $0x5e8] ss:$16 sps:$4 sm:$0xff]  }
 0x21f   :  { %4950 = vmatprep.subr.bf16.mxu1 %v6764_v46  ;;  %v6833_v46 = vld [vmem:[%s9727_s7 + $0xa04] ss:$16 sps:$4 sm:$0xff]   ;;  %v6888_v60 = vld [vmem:[%s9727_s7 + $0x728] ss:$16 sps:$4 sm:$0xff]  }
 0x221   :  { %4705 = vmatpush1.bf16.msra.mxu0 %v6759_v7  ;;  %v6836_v7 = vld [vmem:[%s9727_s7 + $0x60c] ss:$16 sps:$4 sm:$0xff]  }
 0x222   :  { %4951 = vmatpush1.bf16.msra.mxu1 %v6762_v9  ;;  %4706 = vmatprep.subr.bf16.mxu0 %v6767_v10  ;;  %v1417_v9 = vmax.f32 %v8157_v12, 0.0  ;;  %v6831_v10 = vld [vmem:[%s9727_s7 + $0xa00] ss:$16 sps:$4 sm:$0xff]   ;;  %v6842_v12 = vld [vmem:[%s9727_s7 + $0x62c] ss:$16 sps:$4 sm:$0xff]  }
 0x223   :  { %4952 = vmatprep.subr.bf16.mxu1 %v6770_v11  ;;  %v8696_v11 = vpack.c.bf16 %v1414_v4, %v1414_v4  ;;  %v6899_v4 = vld [vmem:[%s9727_s7 + $0xb64] ss:$16 sps:$4 sm:$0xff]  }
 0x225   :  { %4707 = vmatpush1.bf16.msra.mxu0 %v6765_v8  ;;  %v6834_v8 = vld [vmem:[%s9727_s7 + $0x608] ss:$16 sps:$4 sm:$0xff]  }
 0x226   :  { %4953 = vmatpush1.bf16.msra.mxu1 %v6768_v48  ;;  %4708 = vmatprep.subr.bf16.mxu0 %v6773_v49  ;;  %v6839_v48 = vld [vmem:[%s9727_s7 + $0xa24] ss:$16 sps:$4 sm:$0xff]   ;;  %v8704_v49 = vpack.c.bf16 %v1417_v9, %v1417_v9 }
 0x227   :  { %4954 = vmatprep.subr.bf16.mxu1 %v6776_v13  ;;  %v6837_v13 = vld [vmem:[%s9727_s7 + $0xa20] ss:$16 sps:$4 sm:$0xff]   ;;  %v6905_v9 = vld [vmem:[%s9727_s7 + $0xb84] ss:$16 sps:$4 sm:$0xff]  }
 0x229   :  { %4709 = vmatpush1.bf16.msra.mxu0 %v6771_v25  ;;  %v6840_v25 = vld [vmem:[%s9727_s7 + $0x628] ss:$16 sps:$4 sm:$0xff]  }
 0x22a   :  { %4955 = vmatpush1.bf16.msra.mxu1 %v6774_v14  ;;  %4710 = vmatprep.subr.bf16.mxu0 %v6779_v15  ;;  %v6845_v14 = vld [vmem:[%s9727_s7 + $0xa44] ss:$16 sps:$4 sm:$0xff]   ;;  %v6843_v15 = vld [vmem:[%s9727_s7 + $0xa40] ss:$16 sps:$4 sm:$0xff]  }
 0x22b   :  { %4956 = vmatprep.subr.bf16.mxu1 %v6782_v39  ;;  %v6846_v39 = vld [vmem:[%s9727_s7 + $0x648] ss:$16 sps:$4 sm:$0xff]  }
 0x22d   :  { %4711 = vmatpush1.bf16.msra.mxu0 %v6777_v22  ;;  %v6854_v22 = vld [vmem:[%s9727_s7 + $0x66c] ss:$16 sps:$4 sm:$0xff]  }
 0x22e   :  { %4957 = vmatpush1.bf16.msra.mxu1 %v6780_v19  ;;  %4712 = vmatprep.subr.bf16.mxu0 %v6785_v21  ;;  %v6849_v19 = vld [vmem:[%s9727_s7 + $0xa60] ss:$16 sps:$4 sm:$0xff]   ;;  %v6852_v21 = vld [vmem:[%s9727_s7 + $0x668] ss:$16 sps:$4 sm:$0xff]  }
 0x22f   :  { %4958 = vmatprep.subr.bf16.mxu1 %v6788_v40  ;;  %v6857_v40 = vld [vmem:[%s9727_s7 + $0xa84] ss:$16 sps:$4 sm:$0xff]  }
 0x231   :  { %4713 = vmatpush1.bf16.msra.mxu0 %v6783_v16  ;;  %v6860_v16 = vld [vmem:[%s9727_s7 + $0x68c] ss:$16 sps:$4 sm:$0xff]  }
 0x232   :  { %4959 = vmatpush1.bf16.msra.mxu1 %v6786_v32  ;;  %4714 = vmatprep.subr.bf16.mxu0 %v6791_v17  ;;  %v6855_v32 = vld [vmem:[%s9727_s7 + $0xa80] ss:$16 sps:$4 sm:$0xff]   ;;  %v6858_v17 = vld [vmem:[%s9727_s7 + $0x688] ss:$16 sps:$4 sm:$0xff]  }
 0x233   :  { %4960 = vmatprep.subr.bf16.mxu1 %v6794_v50  ;;  %v6863_v50 = vld [vmem:[%s9727_s7 + $0xaa4] ss:$16 sps:$4 sm:$0xff]  }
 0x235   :  { %4715 = vmatpush1.bf16.msra.mxu0 %v6789_v20  ;;  %v6866_v20 = vld [vmem:[%s9727_s7 + $0x6ac] ss:$16 sps:$4 sm:$0xff]  }
 0x236   :  { %4961 = vmatpush1.bf16.msra.mxu1 %v6792_v41  ;;  %4716 = vmatprep.subr.bf16.mxu0 %v6797_v24  ;;  %v6861_v41 = vld [vmem:[%s9727_s7 + $0xaa0] ss:$16 sps:$4 sm:$0xff]   ;;  %v6864_v24 = vld [vmem:[%s9727_s7 + $0x6a8] ss:$16 sps:$4 sm:$0xff]  }
 0x237   :  { %4962 = vmatprep.subr.bf16.mxu1 %v6800_v34  ;;  %v6869_v34 = vld [vmem:[%s9727_s7 + $0xac4] ss:$16 sps:$4 sm:$0xff]  }
 0x239   :  { %4717 = vmatpush1.bf16.msra.mxu0 %v6795_v35 }
 0x23a   :  { %4963 = vmatpush1.bf16.msra.mxu1 %v6798_v36  ;;  %4718 = vmatprep.subr.bf16.mxu0 %v6803_v37  ;;  %v6872_v36 = vld [vmem:[%s9727_s7 + $0x6cc] ss:$16 sps:$4 sm:$0xff]  }
 0x23b   :  { %4964 = vmatprep.subr.bf16.mxu1 %v6806_v42 }
 0x23d   :  { %4719 = vmatpush1.bf16.msra.mxu0 %v6801_v43  ;;  %v6867_v43 = vld [vmem:[%s9727_s7 + $0xac0] ss:$16 sps:$4 sm:$0xff]  }
 0x23e   :  { %4965 = vmatpush1.bf16.msra.mxu1 %v6804_v44  ;;  %4720 = vmatprep.subr.bf16.mxu0 %v6809_v6  ;;  %v6870_v6 = vld [vmem:[%s9727_s7 + $0x6c8] ss:$16 sps:$4 sm:$0xff]  }
 0x23f   :  { %4966 = vmatprep.subr.bf16.mxu1 %v6812_v45  ;;  %v6875_v45 = vld [vmem:[%s9727_s7 + $0xae4] ss:$16 sps:$4 sm:$0xff]  }
 0x241   :  { %4721 = vmatpush1.bf16.msra.mxu0 %v6807_v3  ;;  %v6878_v3 = vld [vmem:[%s9727_s7 + $0x6ec] ss:$16 sps:$4 sm:$0xff]  }
 0x242   :  { %4967 = vmatpush1.bf16.msra.mxu1 %v6810_v31  ;;  %4722 = vmatprep.subr.bf16.mxu0 %v6815_v51  ;;  %v6873_v31 = vld [vmem:[%s9727_s7 + $0xae0] ss:$16 sps:$4 sm:$0xff]   ;;  %v6876_v51 = vld [vmem:[%s9727_s7 + $0x6e8] ss:$16 sps:$4 sm:$0xff]  }
 0x243   :  { %4968 = vmatprep.subr.bf16.mxu1 %v6818_v26  ;;  %v6881_v26 = vld [vmem:[%s9727_s7 + $0xb04] ss:$16 sps:$4 sm:$0xff]  }
 0x245   :  { %4723 = vmatpush1.bf16.msra.mxu0 %v6813_v27  ;;  %v6884_v27 = vld [vmem:[%s9727_s7 + $0x70c] ss:$16 sps:$4 sm:$0xff]  }
 0x246   :  { %4969 = vmatpush1.bf16.msra.mxu1 %v6816_v29  ;;  %4724 = vmatprep.subr.bf16.mxu0 %v6821_v33  ;;  %v6882_v29 = vld [vmem:[%s9727_s7 + $0x708] ss:$16 sps:$4 sm:$0xff]   ;;  %v6887_v33 = vld [vmem:[%s9727_s7 + $0xb24] ss:$16 sps:$4 sm:$0xff]  }
 0x247   :  { %4970 = vmatprep.subr.bf16.mxu1 %v6824_v58  ;;  %v6890_v58 = vld [vmem:[%s9727_s7 + $0x72c] ss:$16 sps:$4 sm:$0xff]  }
 0x249   :  { %4725 = vmatpush1.bf16.msra.mxu0 %v6819_v53  ;;  %v6885_v53 = vld [vmem:[%s9727_s7 + $0xb20] ss:$16 sps:$4 sm:$0xff]  }
 0x24a   :  { %4971 = vmatpush1.bf16.msra.mxu1 %v6822_v23  ;;  %4726 = vmatprep.subr.bf16.mxu0 %v6827_v61  ;;  %v6893_v23 = vld [vmem:[%s9727_s7 + $0xb44] ss:$16 sps:$4 sm:$0xff]   ;;  %v6896_v61 = vld [vmem:[%s9727_s7 + $0x74c] ss:$16 sps:$4 sm:$0xff]  }
 0x24b   :  { %4972 = vmatprep.subr.bf16.mxu1 %v6830_v62  ;;  %v6891_v62 = vld [vmem:[%s9727_s7 + $0xb40] ss:$16 sps:$4 sm:$0xff]  }
 0x24d   :  { %4727 = vmatpush1.bf16.msra.mxu0 %v6825_v59  ;;  %v6894_v59 = vld [vmem:[%s9727_s7 + $0x748] ss:$16 sps:$4 sm:$0xff]  }
 0x24e   :  { %4973 = vmatpush1.bf16.msra.mxu1 %v6828_v5  ;;  %4737 = vmatprep.subr.bf16.mxu0 %v6833_v46  ;;  %v6902_v5 = vld [vmem:[%s9727_s7 + $0x76c] ss:$16 sps:$4 sm:$0xff]   ;;  %v6897_v46 = vld [vmem:[%s9727_s7 + $0xb60] ss:$16 sps:$4 sm:$0xff]  }
 0x24f   :  { %4983 = vmatprep.subr.bf16.mxu1 %v6836_v7  ;;  %v6900_v7 = vld [vmem:[%s9727_s7 + $0x768] ss:$16 sps:$4 sm:$0xff]  }
 0x250   :  { %4729 = vmatmul.mubr.bf16.vlgmr.msra.gmra.mrb[32].mxu0 %v8696_v11 }
 0x251   :  { %4975 = vmatmul.mubr.bf16.vlgmr.msra.gmra.mrb[36].mxu1 %v8288_v38  ;;  %4738 = vmatpush1.bf16.msra.mxu0 %v6831_v10  ;;  %v6848_v38 = vld [vmem:[%s9727_s7 + $0x64c] ss:$16 sps:$4 sm:$0xff]  }
 0x252   :  { %4769 = vmatprep.mubr.bf16.mxu0 %v8704_v49  ;;  %4984 = vmatpush1.bf16.msra.mxu1 %v6834_v8  ;;  %v6908_v10 = vld [vmem:[%s9727_s7 + $0x78c] ss:$16 sps:$4 sm:$0xff]   ;;  %v6903_v8 = vld [vmem:[%s9727_s7 + $0xb80] ss:$16 sps:$4 sm:$0xff]  }
 0x253   :  { %5015 = vmatprep.mubr.bf16.mxu1 %v8293_v18  ;;  %4739 = vmatprep.subr.bf16.mxu0 %v6839_v48  ;;  %v6851_v18 = vld [vmem:[%s9727_s7 + $0xa64] ss:$16 sps:$4 sm:$0xff]   ;;  %v6906_v48 = vld [vmem:[%s9727_s7 + $0x788] ss:$16 sps:$4 sm:$0xff]  }
 0x254   :  { %4985 = vmatprep.subr.bf16.mxu1 %v6842_v12  ;;  %v6911_v12 = vld [vmem:[%s9727_s7 + $0xba4] ss:$16 sps:$4 sm:$0xff]  }
 0x255   :  { %4740 = vmatpush1.bf16.msra.mxu0 %v6837_v13  ;;  %v6914_v13 = vld [vmem:[%s9727_s7 + $0x7ac] ss:$16 sps:$4 sm:$0xff]  }
 0x256   :  { %4986 = vmatpush1.bf16.msra.mxu1 %v6840_v25  ;;  %4741 = vmatprep.subr.bf16.mxu0 %v6845_v14  ;;  %v6909_v25 = vld [vmem:[%s9727_s7 + $0xba0] ss:$16 sps:$4 sm:$0xff]   ;;  %v6912_v14 = vld [vmem:[%s9727_s7 + $0x7a8] ss:$16 sps:$4 sm:$0xff]  }
 0x257   :  { %4987 = vmatprep.subr.bf16.mxu1 %v6848_v38  ;;  %v6917_v38 = vld [vmem:[%s9727_s7 + $0xbc4] ss:$16 sps:$4 sm:$0xff]  }
 0x259   :  { %4742 = vmatpush1.bf16.msra.mxu0 %v6843_v15  ;;  %v6920_v15 = vld [vmem:[%s9727_s7 + $0x7cc] ss:$16 sps:$4 sm:$0xff]  }
 0x25a   :  { %4988 = vmatpush1.bf16.msra.mxu1 %v6846_v39  ;;  %4743 = vmatprep.subr.bf16.mxu0 %v6851_v18  ;;  %v6915_v39 = vld [vmem:[%s9727_s7 + $0xbc0] ss:$16 sps:$4 sm:$0xff]   ;;  %v6918_v18 = vld [vmem:[%s9727_s7 + $0x7c8] ss:$16 sps:$4 sm:$0xff]  }
 0x25b   :  { %4989 = vmatprep.subr.bf16.mxu1 %v6854_v22  ;;  %v6923_v22 = vld [vmem:[%s9727_s7 + $0xbe4] ss:$16 sps:$4 sm:$0xff]  }
 0x25d   :  { %4744 = vmatpush1.bf16.msra.mxu0 %v6849_v19  ;;  %v6926_v19 = vld [vmem:[%s9727_s7 + $0x7ec] ss:$16 sps:$4 sm:$0xff]  }
 0x25e   :  { %4990 = vmatpush1.bf16.msra.mxu1 %v6852_v21  ;;  %4745 = vmatprep.subr.bf16.mxu0 %v6857_v40  ;;  %v6921_v21 = vld [vmem:[%s9727_s7 + $0xbe0] ss:$16 sps:$4 sm:$0xff]   ;;  %v1416_v40 = vmax.f32 %v8155_v47, 0.0 }
 0x25f   :  { %4991 = vmatprep.subr.bf16.mxu1 %v6860_v16  ;;  %v6924_v16 = vld [vmem:[%s9727_s7 + $0x7e8] ss:$16 sps:$4 sm:$0xff]   ;;  %v6927_v47 = vld [vmem:[%s9727_s7 + $0xc00] ss:$16 sps:$4 sm:$0xff]  }
 0x261   :  { %4746 = vmatpush1.bf16.msra.mxu0 %v6855_v32  ;;  %v6929_v32 = vld [vmem:[%s9727_s7 + $0xc04] ss:$16 sps:$4 sm:$0xff]  }
 0x262   :  { %4992 = vmatpush1.bf16.msra.mxu1 %v6858_v17  ;;  %4747 = vmatprep.subr.bf16.mxu0 %v6863_v50  ;;  %v6932_v17 = vld [vmem:[%s9727_s7 + $0x80c] ss:$16 sps:$4 sm:$0xff]   ;;  %v1419_v50 = vmax.f32 %v8218_v52, 0.0 }
 0x263   :  { %v8770_v35 = vpop.f32.mrb[32].mxu1  ;;  %4993 = vmatprep.subr.bf16.mxu1 %v6866_v20  ;;  %v8902_v20 = vpack.c.bf16 %v1416_v40, %v1416_v40  ;;  %v6938_v52 = vld [vmem:[%s9727_s7 + $0x82c] ss:$16 sps:$4 sm:$0xff]   ;;  %v7001_v40 = vld [vmem:[%s9727_s7 + $0xd84] ss:$16 sps:$4 sm:$0xff]  }
 0x264   :  { %v8775_v37 = vpop.f32.mrb[33].mxu1 }
 0x265   :  { %4748 = vmatpush1.bf16.msra.mxu0 %v6861_v41  ;;  %v4570_v42 = vpop.f32.mrb[34].mxu1  ;;  %v6930_v41 = vld [vmem:[%s9727_s7 + $0x808] ss:$16 sps:$4 sm:$0xff]  }
 0x266   :  { %4994 = vmatpush1.bf16.msra.mxu1 %v6864_v24  ;;  %v4571_v44 = vpop.f32.mrb[35].mxu1  ;;  %4749 = vmatprep.subr.bf16.mxu0 %v6869_v34  ;;  %v6935_v24 = vld [vmem:[%s9727_s7 + $0xc24] ss:$16 sps:$4 sm:$0xff]   ;;  %v8910_v34 = vpack.c.bf16 %v1419_v50, %v1419_v50  ;;  %v6936_v42 = vld [vmem:[%s9727_s7 + $0x828] ss:$16 sps:$4 sm:$0xff]  }
 0x267   :  { %4995 = vmatprep.subr.bf16.mxu1 %v6872_v36  ;;  %v6933_v36 = vld [vmem:[%s9727_s7 + $0xc20] ss:$16 sps:$4 sm:$0xff]   ;;  %v7007_v50 = vld [vmem:[%s9727_s7 + $0xda4] ss:$16 sps:$4 sm:$0xff]  }
 0x268   :  { %v6939_v44 = vld [vmem:[%s9727_s7 + $0xc40] ss:$16 sps:$4 sm:$0xff]  }
 0x269   :  { %4750 = vmatpush1.bf16.msra.mxu0 %v6867_v43  ;;  %v6941_v43 = vld [vmem:[%s9727_s7 + $0xc44] ss:$16 sps:$4 sm:$0xff]  }
 0x26a   :  { %4996 = vmatpush1.bf16.msra.mxu1 %v6870_v6  ;;  %4751 = vmatprep.subr.bf16.mxu0 %v6875_v45  ;;  %v6942_v6 = vld [vmem:[%s9727_s7 + $0x848] ss:$16 sps:$4 sm:$0xff]   ;;  %v6950_v45 = vld [vmem:[%s9727_s7 + $0x86c] ss:$16 sps:$4 sm:$0xff]  }
 0x26b   :  { %4997 = vmatprep.subr.bf16.mxu1 %v6878_v3  ;;  %v6945_v3 = vld [vmem:[%s9727_s7 + $0xc60] ss:$16 sps:$4 sm:$0xff]  }
 0x26d   :  { %4752 = vmatpush1.bf16.msra.mxu0 %v6873_v31  ;;  %v6948_v31 = vld [vmem:[%s9727_s7 + $0x868] ss:$16 sps:$4 sm:$0xff]  }
 0x26e   :  { %4998 = vmatpush1.bf16.msra.mxu1 %v6876_v51  ;;  %4753 = vmatprep.subr.bf16.mxu0 %v6881_v26  ;;  %v6953_v51 = vld [vmem:[%s9727_s7 + $0xc84] ss:$16 sps:$4 sm:$0xff]   ;;  %v6956_v26 = vld [vmem:[%s9727_s7 + $0x88c] ss:$16 sps:$4 sm:$0xff]  }
 0x26f   :  { %4999 = vmatprep.subr.bf16.mxu1 %v6884_v27  ;;  %v6951_v27 = vld [vmem:[%s9727_s7 + $0xc80] ss:$16 sps:$4 sm:$0xff]  }
 0x271   :  { %4754 = vmatpush1.bf16.msra.mxu0 %v6879_v28  ;;  %v6954_v28 = vld [vmem:[%s9727_s7 + $0x888] ss:$16 sps:$4 sm:$0xff]  }
 0x272   :  { %5000 = vmatpush1.bf16.msra.mxu1 %v6882_v29  ;;  %4755 = vmatprep.subr.bf16.mxu0 %v6887_v33  ;;  %v6959_v29 = vld [vmem:[%s9727_s7 + $0xca4] ss:$16 sps:$4 sm:$0xff]   ;;  %v6962_v33 = vld [vmem:[%s9727_s7 + $0x8ac] ss:$16 sps:$4 sm:$0xff]  }
 0x273   :  { %5001 = vmatprep.subr.bf16.mxu1 %v6890_v58  ;;  %v6957_v58 = vld [vmem:[%s9727_s7 + $0xca0] ss:$16 sps:$4 sm:$0xff]  }
 0x275   :  { %4756 = vmatpush1.bf16.msra.mxu0 %v6885_v53  ;;  %v6960_v53 = vld [vmem:[%s9727_s7 + $0x8a8] ss:$16 sps:$4 sm:$0xff]  }
 0x276   :  { %5002 = vmatpush1.bf16.msra.mxu1 %v6888_v60  ;;  %4757 = vmatprep.subr.bf16.mxu0 %v6893_v23  ;;  %v6965_v60 = vld [vmem:[%s9727_s7 + $0xcc4] ss:$16 sps:$4 sm:$0xff]   ;;  %v6968_v23 = vld [vmem:[%s9727_s7 + $0x8cc] ss:$16 sps:$4 sm:$0xff]  }
 0x277   :  { %5003 = vmatprep.subr.bf16.mxu1 %v6896_v61  ;;  %v6963_v61 = vld [vmem:[%s9727_s7 + $0xcc0] ss:$16 sps:$4 sm:$0xff]  }
 0x279   :  { %4758 = vmatpush1.bf16.msra.mxu0 %v6891_v62  ;;  %v6966_v62 = vld [vmem:[%s9727_s7 + $0x8c8] ss:$16 sps:$4 sm:$0xff]  }
 0x27a   :  { %5004 = vmatpush1.bf16.msra.mxu1 %v6894_v59  ;;  %4759 = vmatprep.subr.bf16.mxu0 %v6899_v4  ;;  %v6971_v59 = vld [vmem:[%s9727_s7 + $0xce4] ss:$16 sps:$4 sm:$0xff]   ;;  %v6974_v4 = vld [vmem:[%s9727_s7 + $0x8ec] ss:$16 sps:$4 sm:$0xff]  }
 0x27b   :  { %5005 = vmatprep.subr.bf16.mxu1 %v6902_v5  ;;  %v6969_v5 = vld [vmem:[%s9727_s7 + $0xce0] ss:$16 sps:$4 sm:$0xff]  }
 0x27d   :  { %4760 = vmatpush1.bf16.msra.mxu0 %v6897_v46  ;;  %v6972_v46 = vld [vmem:[%s9727_s7 + $0x8e8] ss:$16 sps:$4 sm:$0xff]  }
 0x27e   :  { %5006 = vmatpush1.bf16.msra.mxu1 %v6900_v7  ;;  %4761 = vmatprep.subr.bf16.mxu0 %v6905_v9  ;;  %v6977_v7 = vld [vmem:[%s9727_s7 + $0xd04] ss:$16 sps:$4 sm:$0xff]   ;;  %v6980_v9 = vld [vmem:[%s9727_s7 + $0x90c] ss:$16 sps:$4 sm:$0xff]  }
 0x27f   :  { %5007 = vmatprep.subr.bf16.mxu1 %v6908_v10  ;;  %v6975_v10 = vld [vmem:[%s9727_s7 + $0xd00] ss:$16 sps:$4 sm:$0xff]  }
 0x281   :  { %4762 = vmatpush1.bf16.msra.mxu0 %v6903_v8  ;;  %v6978_v8 = vld [vmem:[%s9727_s7 + $0x908] ss:$16 sps:$4 sm:$0xff]  }
 0x282   :  { %5008 = vmatpush1.bf16.msra.mxu1 %v6906_v48  ;;  %4763 = vmatprep.subr.bf16.mxu0 %v6911_v12  ;;  %v6983_v48 = vld [vmem:[%s9727_s7 + $0xd24] ss:$16 sps:$4 sm:$0xff]   ;;  %v6986_v12 = vld [vmem:[%s9727_s7 + $0x92c] ss:$16 sps:$4 sm:$0xff]  }
 0x283   :  { %5009 = vmatprep.subr.bf16.mxu1 %v6914_v13  ;;  %v6981_v13 = vld [vmem:[%s9727_s7 + $0xd20] ss:$16 sps:$4 sm:$0xff]  }
 0x285   :  { %4764 = vmatpush1.bf16.msra.mxu0 %v6909_v25  ;;  %v6984_v25 = vld [vmem:[%s9727_s7 + $0x928] ss:$16 sps:$4 sm:$0xff]  }
 0x286   :  { %5010 = vmatpush1.bf16.msra.mxu1 %v6912_v14  ;;  %4765 = vmatprep.subr.bf16.mxu0 %v6917_v38  ;;  %v6989_v14 = vld [vmem:[%s9727_s7 + $0xd44] ss:$16 sps:$4 sm:$0xff]   ;;  %v6992_v38 = vld [vmem:[%s9727_s7 + $0x94c] ss:$16 sps:$4 sm:$0xff]  }
 0x287   :  { %5011 = vmatprep.subr.bf16.mxu1 %v6920_v15  ;;  %v6987_v15 = vld [vmem:[%s9727_s7 + $0xd40] ss:$16 sps:$4 sm:$0xff]  }
 0x289   :  { %4766 = vmatpush1.bf16.msra.mxu0 %v6915_v39  ;;  %v6990_v39 = vld [vmem:[%s9727_s7 + $0x948] ss:$16 sps:$4 sm:$0xff]  }
 0x28a   :  { %5012 = vmatpush1.bf16.msra.mxu1 %v6918_v18  ;;  %4767 = vmatprep.subr.bf16.mxu0 %v6923_v22  ;;  %v6995_v18 = vld [vmem:[%s9727_s7 + $0xd64] ss:$16 sps:$4 sm:$0xff]   ;;  %v6998_v22 = vld [vmem:[%s9727_s7 + $0x96c] ss:$16 sps:$4 sm:$0xff]  }
 0x28b   :  { %5013 = vmatprep.subr.bf16.mxu1 %v6926_v19  ;;  %v6993_v19 = vld [vmem:[%s9727_s7 + $0xd60] ss:$16 sps:$4 sm:$0xff]  }
 0x28d   :  { %4768 = vmatpush1.bf16.msra.mxu0 %v6921_v21  ;;  %v6996_v21 = vld [vmem:[%s9727_s7 + $0x968] ss:$16 sps:$4 sm:$0xff]  }
 0x28e   :  { %5014 = vmatpush1.bf16.msra.mxu1 %v6924_v16  ;;  %4778 = vmatprep.subr.bf16.mxu0 %v6929_v32  ;;  %v7004_v16 = vld [vmem:[%s9727_s7 + $0x98c] ss:$16 sps:$4 sm:$0xff]   ;;  %v6999_v32 = vld [vmem:[%s9727_s7 + $0xd80] ss:$16 sps:$4 sm:$0xff]  }
 0x28f   :  { %5024 = vmatprep.subr.bf16.mxu1 %v6932_v17  ;;  %v7002_v17 = vld [vmem:[%s9727_s7 + $0x988] ss:$16 sps:$4 sm:$0xff]  }
 0x290   :  { %4770 = vmatmul.mubr.bf16.vlgmr.msra.gmra.mrb[32].mxu0 %v8902_v20 }
 0x291   :  { %5016 = vmatmul.mubr.bf16.vlgmr.msra.gmra.mrb[36].mxu1 %v8492_v55  ;;  %4779 = vmatpush1.bf16.msra.mxu0 %v6927_v47  ;;  %v6944_v55 = vld [vmem:[%s9727_s7 + $0x84c] ss:$16 sps:$4 sm:$0xff]  }
 0x292   :  { %4810 = vmatprep.mubr.bf16.mxu0 %v8910_v34  ;;  %5025 = vmatpush1.bf16.msra.mxu1 %v6930_v41  ;;  %v7010_v47 = vld [vmem:[%s9727_s7 + $0x9ac] ss:$16 sps:$4 sm:$0xff]   ;;  %v7005_v41 = vld [vmem:[%s9727_s7 + $0xda0] ss:$16 sps:$4 sm:$0xff]  }
 0x293   :  { %5056 = vmatprep.mubr.bf16.mxu1 %v8500_v57  ;;  %4780 = vmatprep.subr.bf16.mxu0 %v6935_v24  ;;  %v6947_v57 = vld [vmem:[%s9727_s7 + $0xc64] ss:$16 sps:$4 sm:$0xff]   ;;  %v7008_v24 = vld [vmem:[%s9727_s7 + $0x9a8] ss:$16 sps:$4 sm:$0xff]  }
 0x294   :  { %5026 = vmatprep.subr.bf16.mxu1 %v6938_v52  ;;  %v7013_v52 = vld [vmem:[%s9727_s7 + $0xdc4] ss:$16 sps:$4 sm:$0xff]  }
 0x295   :  { %4781 = vmatpush1.bf16.msra.mxu0 %v6933_v36  ;;  %v7016_v36 = vld [vmem:[%s9727_s7 + $0x9cc] ss:$16 sps:$4 sm:$0xff]  }
 0x296   :  { %5027 = vmatpush1.bf16.msra.mxu1 %v6936_v42  ;;  %4782 = vmatprep.subr.bf16.mxu0 %v6941_v43  ;;  %v7011_v42 = vld [vmem:[%s9727_s7 + $0xdc0] ss:$16 sps:$4 sm:$0xff]   ;;  %v7014_v43 = vld [vmem:[%s9727_s7 + $0x9c8] ss:$16 sps:$4 sm:$0xff]  }
 0x297   :  { %5028 = vmatprep.subr.bf16.mxu1 %v6944_v55  ;;  %v7019_v55 = vld [vmem:[%s9727_s7 + $0xde4] ss:$16 sps:$4 sm:$0xff]  }
 0x299   :  { %4783 = vmatpush1.bf16.msra.mxu0 %v6939_v44  ;;  %v7022_v44 = vld [vmem:[%s9727_s7 + $0x9ec] ss:$16 sps:$4 sm:$0xff]  }
 0x29a   :  { %5029 = vmatpush1.bf16.msra.mxu1 %v6942_v6  ;;  %4784 = vmatprep.subr.bf16.mxu0 %v6947_v57  ;;  %v7017_v6 = vld [vmem:[%s9727_s7 + $0xde0] ss:$16 sps:$4 sm:$0xff]   ;;  %v1418_v57 = vmax.f32 %v8212_v56, 0.0 }
 0x29b   :  { %5030 = vmatprep.subr.bf16.mxu1 %v6950_v45  ;;  %v7020_v45 = vld [vmem:[%s9727_s7 + $0x9e8] ss:$16 sps:$4 sm:$0xff]   ;;  %v7023_v56 = vld [vmem:[%s9727_s7 + $0xe00] ss:$16 sps:$4 sm:$0xff]  }
 0x29d   :  { %4785 = vmatpush1.bf16.msra.mxu0 %v6945_v3  ;;  %v7025_v3 = vld [vmem:[%s9727_s7 + $0xe04] ss:$16 sps:$4 sm:$0xff]  }
 0x29e   :  { %5031 = vmatpush1.bf16.msra.mxu1 %v6948_v31  ;;  %4786 = vmatprep.subr.bf16.mxu0 %v6953_v51  ;;  %v7028_v31 = vld [vmem:[%s9727_s7 + $0xa0c] ss:$16 sps:$4 sm:$0xff]   ;;  %v1421_v51 = vmax.f32 %v8221_v54, 0.0 }
 0x29f   :  { %5032 = vmatprep.subr.bf16.mxu1 %v6956_v26  ;;  %v9104_v26 = vpack.c.bf16 %v1418_v57, %v1418_v57  ;;  %v7034_v54 = vld [vmem:[%s9727_s7 + $0xa2c] ss:$16 sps:$4 sm:$0xff]   ;;  %v7095_v57 = vld [vmem:[%s9727_s7 + $0xf80] ss:$16 sps:$4 sm:$0xff]  }
 0x2a1   :  { %4787 = vmatpush1.bf16.msra.mxu0 %v6951_v27  ;;  %v7026_v27 = vld [vmem:[%s9727_s7 + $0xa08] ss:$16 sps:$4 sm:$0xff]  }
 0x2a2   :  { %5033 = vmatpush1.bf16.msra.mxu1 %v6954_v28  ;;  %4788 = vmatprep.subr.bf16.mxu0 %v6959_v29  ;;  %v7031_v28 = vld [vmem:[%s9727_s7 + $0xe24] ss:$16 sps:$4 sm:$0xff]   ;;  %v9112_v29 = vpack.c.bf16 %v1421_v51, %v1421_v51  ;;  %v7101_v51 = vld [vmem:[%s9727_s7 + $0xfa0] ss:$16 sps:$4 sm:$0xff]  }
 0x2a3   :  { %5034 = vmatprep.subr.bf16.mxu1 %v6962_v33  ;;  %v7029_v33 = vld [vmem:[%s9727_s7 + $0xe20] ss:$16 sps:$4 sm:$0xff]  }
 0x2a5   :  { %4789 = vmatpush1.bf16.msra.mxu0 %v6957_v58  ;;  %v7032_v58 = vld [vmem:[%s9727_s7 + $0xa28] ss:$16 sps:$4 sm:$0xff]  }
 0x2a6   :  { %5035 = vmatpush1.bf16.msra.mxu1 %v6960_v53  ;;  %4790 = vmatprep.subr.bf16.mxu0 %v6965_v60  ;;  %v7037_v53 = vld [vmem:[%s9727_s7 + $0xe44] ss:$16 sps:$4 sm:$0xff]   ;;  %v7035_v60 = vld [vmem:[%s9727_s7 + $0xe40] ss:$16 sps:$4 sm:$0xff]  }
 0x2a7   :  { %5036 = vmatprep.subr.bf16.mxu1 %v6968_v23  ;;  %v7038_v23 = vld [vmem:[%s9727_s7 + $0xa48] ss:$16 sps:$4 sm:$0xff]  }
 0x2a9   :  { %4791 = vmatpush1.bf16.msra.mxu0 %v6963_v61  ;;  %v7046_v61 = vld [vmem:[%s9727_s7 + $0xa6c] ss:$16 sps:$4 sm:$0xff]  }
 0x2aa   :  { %5037 = vmatpush1.bf16.msra.mxu1 %v6966_v62  ;;  %4792 = vmatprep.subr.bf16.mxu0 %v6971_v59  ;;  %v7041_v62 = vld [vmem:[%s9727_s7 + $0xe60] ss:$16 sps:$4 sm:$0xff]   ;;  %v7044_v59 = vld [vmem:[%s9727_s7 + $0xa68] ss:$16 sps:$4 sm:$0xff]  }
 0x2ab   :  { %5038 = vmatprep.subr.bf16.mxu1 %v6974_v4  ;;  %v7049_v4 = vld [vmem:[%s9727_s7 + $0xe84] ss:$16 sps:$4 sm:$0xff]  }
 0x2ad   :  { %4793 = vmatpush1.bf16.msra.mxu0 %v6969_v5  ;;  %v7052_v5 = vld [vmem:[%s9727_s7 + $0xa8c] ss:$16 sps:$4 sm:$0xff]  }
 0x2ae   :  { %5039 = vmatpush1.bf16.msra.mxu1 %v6972_v46  ;;  %4794 = vmatprep.subr.bf16.mxu0 %v6977_v7  ;;  %v7047_v46 = vld [vmem:[%s9727_s7 + $0xe80] ss:$16 sps:$4 sm:$0xff]   ;;  %v7050_v7 = vld [vmem:[%s9727_s7 + $0xa88] ss:$16 sps:$4 sm:$0xff]  }
 0x2af   :  { %5040 = vmatprep.subr.bf16.mxu1 %v6980_v9  ;;  %v7055_v9 = vld [vmem:[%s9727_s7 + $0xea4] ss:$16 sps:$4 sm:$0xff]  }
 0x2b1   :  { %4795 = vmatpush1.bf16.msra.mxu0 %v6975_v10  ;;  %v7058_v10 = vld [vmem:[%s9727_s7 + $0xaac] ss:$16 sps:$4 sm:$0xff]  }
 0x2b2   :  { %5041 = vmatpush1.bf16.msra.mxu1 %v6978_v8  ;;  %4796 = vmatprep.subr.bf16.mxu0 %v6983_v48  ;;  %v7053_v8 = vld [vmem:[%s9727_s7 + $0xea0] ss:$16 sps:$4 sm:$0xff]   ;;  %v7056_v48 = vld [vmem:[%s9727_s7 + $0xaa8] ss:$16 sps:$4 sm:$0xff]  }
 0x2b3   :  { %5042 = vmatprep.subr.bf16.mxu1 %v6986_v12  ;;  %v7061_v12 = vld [vmem:[%s9727_s7 + $0xec4] ss:$16 sps:$4 sm:$0xff]  }
 0x2b5   :  { %4797 = vmatpush1.bf16.msra.mxu0 %v6981_v13  ;;  %v7064_v13 = vld [vmem:[%s9727_s7 + $0xacc] ss:$16 sps:$4 sm:$0xff]  }
 0x2b6   :  { %5043 = vmatpush1.bf16.msra.mxu1 %v6984_v25  ;;  %4798 = vmatprep.subr.bf16.mxu0 %v6989_v14  ;;  %v7059_v25 = vld [vmem:[%s9727_s7 + $0xec0] ss:$16 sps:$4 sm:$0xff]   ;;  %v7062_v14 = vld [vmem:[%s9727_s7 + $0xac8] ss:$16 sps:$4 sm:$0xff]  }
 0x2b7   :  { %5044 = vmatprep.subr.bf16.mxu1 %v6992_v38  ;;  %v7067_v38 = vld [vmem:[%s9727_s7 + $0xee4] ss:$16 sps:$4 sm:$0xff]  }
 0x2b9   :  { %4799 = vmatpush1.bf16.msra.mxu0 %v6987_v15  ;;  %v7070_v15 = vld [vmem:[%s9727_s7 + $0xaec] ss:$16 sps:$4 sm:$0xff]  }
 0x2ba   :  { %5045 = vmatpush1.bf16.msra.mxu1 %v6990_v39  ;;  %4800 = vmatprep.subr.bf16.mxu0 %v6995_v18  ;;  %v7065_v39 = vld [vmem:[%s9727_s7 + $0xee0] ss:$16 sps:$4 sm:$0xff]   ;;  %v7068_v18 = vld [vmem:[%s9727_s7 + $0xae8] ss:$16 sps:$4 sm:$0xff]  }
 0x2bb   :  { %5046 = vmatprep.subr.bf16.mxu1 %v6998_v22  ;;  %v7073_v22 = vld [vmem:[%s9727_s7 + $0xf04] ss:$16 sps:$4 sm:$0xff]  }
 0x2bd   :  { %4801 = vmatpush1.bf16.msra.mxu0 %v6993_v19  ;;  %v7076_v19 = vld [vmem:[%s9727_s7 + $0xb0c] ss:$16 sps:$4 sm:$0xff]  }
 0x2be   :  { %5047 = vmatpush1.bf16.msra.mxu1 %v6996_v21  ;;  %4802 = vmatprep.subr.bf16.mxu0 %v7001_v40  ;;  %v7071_v21 = vld [vmem:[%s9727_s7 + $0xf00] ss:$16 sps:$4 sm:$0xff]   ;;  %v7074_v40 = vld [vmem:[%s9727_s7 + $0xb08] ss:$16 sps:$4 sm:$0xff]  }
 0x2bf   :  { %5048 = vmatprep.subr.bf16.mxu1 %v7004_v16  ;;  %v7079_v16 = vld [vmem:[%s9727_s7 + $0xf24] ss:$16 sps:$4 sm:$0xff]  }
 0x2c1   :  { %4803 = vmatpush1.bf16.msra.mxu0 %v6999_v32  ;;  %v7082_v32 = vld [vmem:[%s9727_s7 + $0xb2c] ss:$16 sps:$4 sm:$0xff]  }
 0x2c2   :  { %5049 = vmatpush1.bf16.msra.mxu1 %v7002_v17  ;;  %4804 = vmatprep.subr.bf16.mxu0 %v7007_v50  ;;  %v7077_v17 = vld [vmem:[%s9727_s7 + $0xf20] ss:$16 sps:$4 sm:$0xff]   ;;  %v7080_v50 = vld [vmem:[%s9727_s7 + $0xb28] ss:$16 sps:$4 sm:$0xff]  }
 0x2c3   :  { %5050 = vmatprep.subr.bf16.mxu1 %v7010_v47  ;;  %v7085_v47 = vld [vmem:[%s9727_s7 + $0xf44] ss:$16 sps:$4 sm:$0xff]  }
 0x2c5   :  { %4805 = vmatpush1.bf16.msra.mxu0 %v7005_v41  ;;  %v7088_v41 = vld [vmem:[%s9727_s7 + $0xb4c] ss:$16 sps:$4 sm:$0xff]  }
 0x2c6   :  { %5051 = vmatpush1.bf16.msra.mxu1 %v7008_v24  ;;  %4806 = vmatprep.subr.bf16.mxu0 %v7013_v52  ;;  %v7083_v24 = vld [vmem:[%s9727_s7 + $0xf40] ss:$16 sps:$4 sm:$0xff]   ;;  %v7086_v52 = vld [vmem:[%s9727_s7 + $0xb48] ss:$16 sps:$4 sm:$0xff]  }
 0x2c7   :  { %5052 = vmatprep.subr.bf16.mxu1 %v7016_v36  ;;  %v7091_v36 = vld [vmem:[%s9727_s7 + $0xf64] ss:$16 sps:$4 sm:$0xff]  }
 0x2c9   :  { %4807 = vmatpush1.bf16.msra.mxu0 %v7011_v42  ;;  %v7094_v42 = vld [vmem:[%s9727_s7 + $0xb6c] ss:$16 sps:$4 sm:$0xff]  }
 0x2ca   :  { %5053 = vmatpush1.bf16.msra.mxu1 %v7014_v43  ;;  %4808 = vmatprep.subr.bf16.mxu0 %v7019_v55  ;;  %v7089_v43 = vld [vmem:[%s9727_s7 + $0xf60] ss:$16 sps:$4 sm:$0xff]   ;;  %v7092_v55 = vld [vmem:[%s9727_s7 + $0xb68] ss:$16 sps:$4 sm:$0xff]  }
 0x2cb   :  { %5054 = vmatprep.subr.bf16.mxu1 %v7022_v44  ;;  %v7097_v44 = vld [vmem:[%s9727_s7 + $0xf84] ss:$16 sps:$4 sm:$0xff]  }
 0x2cd   :  { %4809 = vmatpush1.bf16.msra.mxu0 %v7017_v6  ;;  %v7100_v6 = vld [vmem:[%s9727_s7 + $0xb8c] ss:$16 sps:$4 sm:$0xff]  }
 0x2ce   :  { %5055 = vmatpush1.bf16.msra.mxu1 %v7020_v45  ;;  %4819 = vmatprep.subr.bf16.mxu0 %v7025_v3  ;;  %v7098_v45 = vld [vmem:[%s9727_s7 + $0xb88] ss:$16 sps:$4 sm:$0xff]   ;;  %v7103_v3 = vld [vmem:[%s9727_s7 + $0xfa4] ss:$16 sps:$4 sm:$0xff]  }
 0x2cf   :  { %5065 = vmatprep.subr.bf16.mxu1 %v7028_v31  ;;  %v7106_v31 = vld [vmem:[%s9727_s7 + $0xbac] ss:$16 sps:$4 sm:$0xff]  }
 0x2d0   :  { %4811 = vmatmul.mubr.bf16.vlgmr.msra.gmra.mrb[32].mxu0 %v9104_v26 }
 0x2d1   :  { %5057 = vmatmul.mubr.bf16.vlgmr.msra.gmra.mrb[36].mxu1 %v8696_v11  ;;  %4820 = vmatpush1.bf16.msra.mxu0 %v7023_v56  ;;  %v7040_v11 = vld [vmem:[%s9727_s7 + $0xa4c] ss:$16 sps:$4 sm:$0xff]   ;;  %v7104_v56 = vld [vmem:[%s9727_s7 + $0xba8] ss:$16 sps:$4 sm:$0xff]  }
 0x2d2   :  { %4851 = vmatprep.mubr.bf16.mxu0 %v9112_v29  ;;  %5066 = vmatpush1.bf16.msra.mxu1 %v7026_v27  ;;  %v7109_v27 = vld [vmem:[%s9727_s7 + $0xfc4] ss:$16 sps:$4 sm:$0xff]  }
 0x2d3   :  { %5097 = vmatprep.mubr.bf16.mxu1 %v8704_v49  ;;  %4821 = vmatprep.subr.bf16.mxu0 %v7031_v28  ;;  %v7043_v49 = vld [vmem:[%s9727_s7 + $0xe64] ss:$16 sps:$4 sm:$0xff]   ;;  %v7112_v28 = vld [vmem:[%s9727_s7 + $0xbcc] ss:$16 sps:$4 sm:$0xff]  }
 0x2d4   :  { %5067 = vmatprep.subr.bf16.mxu1 %v7034_v54  ;;  %v7107_v54 = vld [vmem:[%s9727_s7 + $0xfc0] ss:$16 sps:$4 sm:$0xff]  }
 0x2d5   :  { %4822 = vmatpush1.bf16.msra.mxu0 %v7029_v33  ;;  %v7110_v33 = vld [vmem:[%s9727_s7 + $0xbc8] ss:$16 sps:$4 sm:$0xff]  }
 0x2d6   :  { %5068 = vmatpush1.bf16.msra.mxu1 %v7032_v58  ;;  %4823 = vmatprep.subr.bf16.mxu0 %v7037_v53  ;;  %v7115_v58 = vld [vmem:[%s9727_s7 + $0xfe4] ss:$16 sps:$4 sm:$0xff]   ;;  %v7118_v53 = vld [vmem:[%s9727_s7 + $0xbec] ss:$16 sps:$4 sm:$0xff]  }
 0x2d7   :  { %5069 = vmatprep.subr.bf16.mxu1 %v7040_v11  ;;  %v7113_v11 = vld [vmem:[%s9727_s7 + $0xfe0] ss:$16 sps:$4 sm:$0xff]  }
 0x2d9   :  { %4824 = vmatpush1.bf16.msra.mxu0 %v7035_v60  ;;  %v1420_v60 = vmax.f32 %v8215_v30, 0.0  ;;  %v7124_v30 = vld [vmem:[%s9727_s7 + $0xc2c] ss:$16 sps:$4 sm:$0xff]  }
 0x2da   :  { %5070 = vmatpush1.bf16.msra.mxu1 %v7038_v23  ;;  %4825 = vmatprep.subr.bf16.mxu0 %v7043_v49  ;;  %v7116_v23 = vld [vmem:[%s9727_s7 + $0xbe8] ss:$16 sps:$4 sm:$0xff]   ;;  %v7121_v49 = vld [vmem:[%s9727_s7 + $0xc0c] ss:$16 sps:$4 sm:$0xff]  }
 0x2db   :  { %5071 = vmatprep.subr.bf16.mxu1 %v7046_v61  ;;  %v9299_v61 = vpack.c.bf16 %v1420_v60, %v1420_v60  ;;  %v7256_v60 = vld [vmem:[%s9729_s9 + $0xd4] ss:$8 sps:$4 sm:$0xff]  }
 0x2dd   :  { %4826 = vmatpush1.bf16.msra.mxu0 %v7041_v62  ;;  %v7119_v62 = vld [vmem:[%s9727_s7 + $0xc08] ss:$16 sps:$4 sm:$0xff]  }
 0x2de   :  { %5072 = vmatpush1.bf16.msra.mxu1 %v7044_v59  ;;  %4827 = vmatprep.subr.bf16.mxu0 %v7049_v4  ;;  %v7215_v59 = vld [vmem:[%s9729_s9] ss:$8 sps:$4 sm:$0xff]   ;;  %v7217_v4 = vld [vmem:[%s9729_s9 + $0x4] ss:$8 sps:$4 sm:$0xff]  }
 0x2df   :  { %5073 = vmatprep.subr.bf16.mxu1 %v7052_v5  ;;  %v7122_v5 = vld [vmem:[%s9727_s7 + $0xc28] ss:$16 sps:$4 sm:$0xff]  }
 0x2e1   :  { %4828 = vmatpush1.bf16.msra.mxu0 %v7047_v46  ;;  %v7220_v46 = vld [vmem:[%s9729_s9 + $0x14] ss:$8 sps:$4 sm:$0xff]  }
 0x2e2   :  { %5074 = vmatpush1.bf16.msra.mxu1 %v7050_v7  ;;  %4829 = vmatprep.subr.bf16.mxu0 %v7055_v9  ;;  %v7218_v7 = vld [vmem:[%s9729_s9 + $0x10] ss:$8 sps:$4 sm:$0xff]  }
 0x2e3   :  { %5075 = vmatprep.subr.bf16.mxu1 %v7058_v10  ;;  %v7125_v9 = vld [vmem:[%s9727_s7 + $0xc48] ss:$16 sps:$4 sm:$0xff]   ;;  %v7130_v10 = vld [vmem:[%s9727_s7 + $0xc6c] ss:$16 sps:$4 sm:$0xff]  }
 0x2e5   :  { %4830 = vmatpush1.bf16.msra.mxu0 %v7053_v8  ;;  %v7221_v8 = vld [vmem:[%s9729_s9 + $0x20] ss:$8 sps:$4 sm:$0xff]  }
 0x2e6   :  { %5076 = vmatpush1.bf16.msra.mxu1 %v7056_v48  ;;  %4831 = vmatprep.subr.bf16.mxu0 %v7061_v12  ;;  %v7226_v48 = vld [vmem:[%s9729_s9 + $0x34] ss:$8 sps:$4 sm:$0xff]   ;;  %v7128_v12 = vld [vmem:[%s9727_s7 + $0xc68] ss:$16 sps:$4 sm:$0xff]  }
 0x2e7   :  { %5077 = vmatprep.subr.bf16.mxu1 %v7064_v13  ;;  %v7133_v13 = vld [vmem:[%s9727_s7 + $0xc8c] ss:$16 sps:$4 sm:$0xff]  }
 0x2e9   :  { %4832 = vmatpush1.bf16.msra.mxu0 %v7059_v25  ;;  %v7224_v25 = vld [vmem:[%s9729_s9 + $0x30] ss:$8 sps:$4 sm:$0xff]  }
 0x2ea   :  { %5078 = vmatpush1.bf16.msra.mxu1 %v7062_v14  ;;  %4833 = vmatprep.subr.bf16.mxu0 %v7067_v38  ;;  %v7229_v14 = vld [vmem:[%s9729_s9 + $0x44] ss:$8 sps:$4 sm:$0xff]   ;;  %v7131_v38 = vld [vmem:[%s9727_s7 + $0xc88] ss:$16 sps:$4 sm:$0xff]  }
 0x2eb   :  { %5079 = vmatprep.subr.bf16.mxu1 %v7070_v15  ;;  %v7136_v15 = vld [vmem:[%s9727_s7 + $0xcac] ss:$16 sps:$4 sm:$0xff]  }
 0x2ed   :  { %4834 = vmatpush1.bf16.msra.mxu0 %v7065_v39  ;;  %v7227_v39 = vld [vmem:[%s9729_s9 + $0x40] ss:$8 sps:$4 sm:$0xff]  }
 0x2ee   :  { %5080 = vmatpush1.bf16.msra.mxu1 %v7068_v18  ;;  %4835 = vmatprep.subr.bf16.mxu0 %v7073_v22  ;;  %v7232_v18 = vld [vmem:[%s9729_s9 + $0x54] ss:$8 sps:$4 sm:$0xff]   ;;  %v7134_v22 = vld [vmem:[%s9727_s7 + $0xca8] ss:$16 sps:$4 sm:$0xff]  }
 0x2ef   :  { %5081 = vmatprep.subr.bf16.mxu1 %v7076_v19  ;;  %v7139_v19 = vld [vmem:[%s9727_s7 + $0xccc] ss:$16 sps:$4 sm:$0xff]  }
 0x2f1   :  { %4836 = vmatpush1.bf16.msra.mxu0 %v7071_v21  ;;  %v7230_v21 = vld [vmem:[%s9729_s9 + $0x50] ss:$8 sps:$4 sm:$0xff]  }
 0x2f2   :  { %5082 = vmatpush1.bf16.msra.mxu1 %v7074_v40  ;;  %4837 = vmatprep.subr.bf16.mxu0 %v7079_v16  ;;  %v7235_v40 = vld [vmem:[%s9729_s9 + $0x64] ss:$8 sps:$4 sm:$0xff]   ;;  %v7137_v16 = vld [vmem:[%s9727_s7 + $0xcc8] ss:$16 sps:$4 sm:$0xff]  }
 0x2f3   :  { %5083 = vmatprep.subr.bf16.mxu1 %v7082_v32  ;;  %v7142_v32 = vld [vmem:[%s9727_s7 + $0xcec] ss:$16 sps:$4 sm:$0xff]  }
 0x2f5   :  { %4838 = vmatpush1.bf16.msra.mxu0 %v7077_v17  ;;  %v7233_v17 = vld [vmem:[%s9729_s9 + $0x60] ss:$8 sps:$4 sm:$0xff]  }
 0x2f6   :  { %5084 = vmatpush1.bf16.msra.mxu1 %v7080_v50  ;;  %4839 = vmatprep.subr.bf16.mxu0 %v7085_v47  ;;  %v7238_v50 = vld [vmem:[%s9729_s9 + $0x74] ss:$8 sps:$4 sm:$0xff]   ;;  %v7140_v47 = vld [vmem:[%s9727_s7 + $0xce8] ss:$16 sps:$4 sm:$0xff]  }
 0x2f7   :  { %5085 = vmatprep.subr.bf16.mxu1 %v7088_v41  ;;  %v7145_v41 = vld [vmem:[%s9727_s7 + $0xd0c] ss:$16 sps:$4 sm:$0xff]  }
 0x2f9   :  { %4840 = vmatpush1.bf16.msra.mxu0 %v7083_v24  ;;  %v7236_v24 = vld [vmem:[%s9729_s9 + $0x70] ss:$8 sps:$4 sm:$0xff]  }
 0x2fa   :  { %5086 = vmatpush1.bf16.msra.mxu1 %v7086_v52  ;;  %4841 = vmatprep.subr.bf16.mxu0 %v7091_v36  ;;  %v7241_v52 = vld [vmem:[%s9729_s9 + $0x84] ss:$8 sps:$4 sm:$0xff]   ;;  %v7143_v36 = vld [vmem:[%s9727_s7 + $0xd08] ss:$16 sps:$4 sm:$0xff]  }
 0x2fb   :  { %5087 = vmatprep.subr.bf16.mxu1 %v7094_v42  ;;  %v7148_v42 = vld [vmem:[%s9727_s7 + $0xd2c] ss:$16 sps:$4 sm:$0xff]  }
 0x2fd   :  { %4842 = vmatpush1.bf16.msra.mxu0 %v7089_v43  ;;  %v7239_v43 = vld [vmem:[%s9729_s9 + $0x80] ss:$8 sps:$4 sm:$0xff]  }
 0x2fe   :  { %5088 = vmatpush1.bf16.msra.mxu1 %v7092_v55  ;;  %4843 = vmatprep.subr.bf16.mxu0 %v7097_v44  ;;  %v7244_v55 = vld [vmem:[%s9729_s9 + $0x94] ss:$8 sps:$4 sm:$0xff]   ;;  %v7146_v44 = vld [vmem:[%s9727_s7 + $0xd28] ss:$16 sps:$4 sm:$0xff]  }
 0x2ff   :  { %5089 = vmatprep.subr.bf16.mxu1 %v7100_v6  ;;  %v7151_v6 = vld [vmem:[%s9727_s7 + $0xd4c] ss:$16 sps:$4 sm:$0xff]  }
 0x301   :  { %4844 = vmatpush1.bf16.msra.mxu0 %v7095_v57  ;;  %v7242_v57 = vld [vmem:[%s9729_s9 + $0x90] ss:$8 sps:$4 sm:$0xff]  }
 0x302   :  { %5090 = vmatpush1.bf16.msra.mxu1 %v7098_v45  ;;  %4845 = vmatprep.subr.bf16.mxu0 %v7103_v3  ;;  %v7247_v45 = vld [vmem:[%s9729_s9 + $0xa4] ss:$8 sps:$4 sm:$0xff]   ;;  %v7149_v3 = vld [vmem:[%s9727_s7 + $0xd48] ss:$16 sps:$4 sm:$0xff]  }
 0x303   :  { %5091 = vmatprep.subr.bf16.mxu1 %v7106_v31  ;;  %v7154_v31 = vld [vmem:[%s9727_s7 + $0xd6c] ss:$16 sps:$4 sm:$0xff]  }
 0x305   :  { %4846 = vmatpush1.bf16.msra.mxu0 %v7101_v51  ;;  %v7245_v51 = vld [vmem:[%s9729_s9 + $0xa0] ss:$8 sps:$4 sm:$0xff]  }
 0x306   :  { %5092 = vmatpush1.bf16.msra.mxu1 %v7104_v56  ;;  %4847 = vmatprep.subr.bf16.mxu0 %v7109_v27  ;;  %v7250_v56 = vld [vmem:[%s9729_s9 + $0xb4] ss:$8 sps:$4 sm:$0xff]   ;;  %v7152_v27 = vld [vmem:[%s9727_s7 + $0xd68] ss:$16 sps:$4 sm:$0xff]  }
 0x307   :  { %5093 = vmatprep.subr.bf16.mxu1 %v7112_v28  ;;  %v7157_v28 = vld [vmem:[%s9727_s7 + $0xd8c] ss:$16 sps:$4 sm:$0xff]  }
 0x309   :  { %4848 = vmatpush1.bf16.msra.mxu0 %v7107_v54  ;;  %v7248_v54 = vld [vmem:[%s9729_s9 + $0xb0] ss:$8 sps:$4 sm:$0xff]  }
 0x30a   :  { %5094 = vmatpush1.bf16.msra.mxu1 %v7110_v33  ;;  %4849 = vmatprep.subr.bf16.mxu0 %v7115_v58  ;;  %v7253_v33 = vld [vmem:[%s9729_s9 + $0xc4] ss:$8 sps:$4 sm:$0xff]   ;;  %v7155_v58 = vld [vmem:[%s9727_s7 + $0xd88] ss:$16 sps:$4 sm:$0xff]  }
 0x30b   :  { %5095 = vmatprep.subr.bf16.mxu1 %v7118_v53  ;;  %v7160_v53 = vld [vmem:[%s9727_s7 + $0xdac] ss:$16 sps:$4 sm:$0xff]  }
 0x30d   :  { %4850 = vmatpush1.bf16.msra.mxu0 %v7113_v11  ;;  %v7251_v11 = vld [vmem:[%s9729_s9 + $0xc0] ss:$8 sps:$4 sm:$0xff]  }
 0x30e   :  { %5096 = vmatpush1.bf16.msra.mxu1 %v7116_v23  ;;  %5592 = vmatprep.subr.bf16.mxu0 %v7217_v4  ;;  %v7158_v23 = vld [vmem:[%s9727_s7 + $0xda8] ss:$16 sps:$4 sm:$0xff]  }
 0x30f   :  { %5106 = vmatprep.subr.bf16.mxu1 %v7121_v49  ;;  %v7163_v49 = vld [vmem:[%s9727_s7 + $0xdcc] ss:$16 sps:$4 sm:$0xff]   ;;  %v7164_v4 = vld [vmem:[%s9727_s7 + $0xde8] ss:$16 sps:$4 sm:$0xff]  }
 0x310   :  { %4852 = vmatmul.mubr.bf16.vlgmr.msra.gmra.mrb[32].mxu0 %v9299_v61 }
 0x311   :  { %5098 = vmatmul.mubr.bf16.vlgmr.msra.gmra.mrb[36].mxu1 %v8902_v20  ;;  %v7127_v20 = vld [vmem:[%s9727_s7 + $0xc4c] ss:$16 sps:$4 sm:$0xff]   ;;  %5593 = vmatpush1.bf16.msra.mxu0 %v7215_v59 }
 0x312   :  { %5107 = vmatpush1.bf16.msra.mxu1 %v7119_v62  ;;  %5138 = vmatprep.mubr.bf16.mxu1 %v8910_v34  ;;  %v7223_v34 = vld [vmem:[%s9729_s9 + $0x24] ss:$8 sps:$4 sm:$0xff]   ;;  %v7254_v62 = vld [vmem:[%s9729_s9 + $0xd0] ss:$8 sps:$4 sm:$0xff]  }
 0x313   :  { %5108 = vmatprep.subr.bf16.mxu1 %v7124_v30  ;;  %5594 = vmatprep.subr.bf16.mxu0 %v7220_v46  ;;  %v7161_v30 = vld [vmem:[%s9727_s7 + $0xdc8] ss:$16 sps:$4 sm:$0xff]   ;;  %v7166_v59 = vld [vmem:[%s9727_s7 + $0xdec] ss:$16 sps:$4 sm:$0xff]  }
 0x314   :  { %v7167_v46 = vld [vmem:[%s9727_s7 + $0xe08] ss:$16 sps:$4 sm:$0xff]  }
 0x315   :  { %5595 = vmatpush1.bf16.msra.mxu0 %v7218_v7  ;;  %v7170_v7 = vld [vmem:[%s9727_s7 + $0xe28] ss:$16 sps:$4 sm:$0xff]  }
 0x316   :  { %5109 = vmatpush1.bf16.msra.mxu1 %v7122_v5  ;;  %5596 = vmatprep.subr.bf16.mxu0 %v7223_v34  ;;  %v7169_v5 = vld [vmem:[%s9727_s7 + $0xe0c] ss:$16 sps:$4 sm:$0xff]  }
 0x317   :  { %5110 = vmatprep.subr.bf16.mxu1 %v7127_v20  ;;  %v7172_v20 = vld [vmem:[%s9727_s7 + $0xe2c] ss:$16 sps:$4 sm:$0xff]  }
 0x318   :  { %v7175_v34 = vld [vmem:[%s9727_s7 + $0xe4c] ss:$16 sps:$4 sm:$0xff]  }
 0x319   :  { %5597 = vmatpush1.bf16.msra.mxu0 %v7221_v8  ;;  %v7179_v8 = vld [vmem:[%s9727_s7 + $0xe88] ss:$16 sps:$4 sm:$0xff]  }
 0x31a   :  { %5111 = vmatpush1.bf16.msra.mxu1 %v7125_v9  ;;  %5598 = vmatprep.subr.bf16.mxu0 %v7226_v48  ;;  %v7173_v9 = vld [vmem:[%s9727_s7 + $0xe48] ss:$16 sps:$4 sm:$0xff]   ;;  %v7184_v48 = vld [vmem:[%s9727_s7 + $0xeac] ss:$16 sps:$4 sm:$0xff]  }
 0x31b   :  { %5112 = vmatprep.subr.bf16.mxu1 %v7130_v10  ;;  %v7181_v10 = vld [vmem:[%s9727_s7 + $0xe8c] ss:$16 sps:$4 sm:$0xff]  }
 0x31d   :  { %5599 = vmatpush1.bf16.msra.mxu0 %v7224_v25  ;;  %v7259_v25 = vld [vmem:[%s9729_s9 + $0xe4] ss:$8 sps:$4 sm:$0xff]  }
 0x31e   :  { %5113 = vmatpush1.bf16.msra.mxu1 %v7128_v12  ;;  %5600 = vmatprep.subr.bf16.mxu0 %v7229_v14  ;;  %v7182_v12 = vld [vmem:[%s9727_s7 + $0xea8] ss:$16 sps:$4 sm:$0xff]  }
 0x31f   :  { %5114 = vmatprep.subr.bf16.mxu1 %v7133_v13  ;;  %v7187_v13 = vld [vmem:[%s9727_s7 + $0xecc] ss:$16 sps:$4 sm:$0xff]   ;;  %v7257_v14 = vld [vmem:[%s9729_s9 + $0xe0] ss:$8 sps:$4 sm:$0xff]  }
 0x321   :  { %5601 = vmatpush1.bf16.msra.mxu0 %v7227_v39  ;;  %v7262_v39 = vld [vmem:[%s9729_s9 + $0xf4] ss:$8 sps:$4 sm:$0xff]  }
 0x322   :  { %5115 = vmatpush1.bf16.msra.mxu1 %v7131_v38  ;;  %5602 = vmatprep.subr.bf16.mxu0 %v7232_v18  ;;  %v7185_v38 = vld [vmem:[%s9727_s7 + $0xec8] ss:$16 sps:$4 sm:$0xff]  }
 0x323   :  { %5116 = vmatprep.subr.bf16.mxu1 %v7136_v15  ;;  %v7190_v15 = vld [vmem:[%s9727_s7 + $0xeec] ss:$16 sps:$4 sm:$0xff]   ;;  %v7260_v18 = vld [vmem:[%s9729_s9 + $0xf0] ss:$8 sps:$4 sm:$0xff]  }
 0x325   :  { %5603 = vmatpush1.bf16.msra.mxu0 %v7230_v21  ;;  %v7265_v21 = vld [vmem:[%s9729_s9 + $0x104] ss:$8 sps:$4 sm:$0xff]  }
 0x326   :  { %5117 = vmatpush1.bf16.msra.mxu1 %v7134_v22  ;;  %5604 = vmatprep.subr.bf16.mxu0 %v7235_v40  ;;  %v7188_v22 = vld [vmem:[%s9727_s7 + $0xee8] ss:$16 sps:$4 sm:$0xff]  }
 0x327   :  { %5118 = vmatprep.subr.bf16.mxu1 %v7139_v19  ;;  %v7193_v19 = vld [vmem:[%s9727_s7 + $0xf0c] ss:$16 sps:$4 sm:$0xff]   ;;  %v7191_v40 = vld [vmem:[%s9727_s7 + $0xf08] ss:$16 sps:$4 sm:$0xff]  }
 0x329   :  { %5605 = vmatpush1.bf16.msra.mxu0 %v7233_v17  ;;  %v7199_v17 = vld [vmem:[%s9727_s7 + $0xf4c] ss:$16 sps:$4 sm:$0xff]  }
 0x32a   :  { %5119 = vmatpush1.bf16.msra.mxu1 %v7137_v16  ;;  %5606 = vmatprep.subr.bf16.mxu0 %v7238_v50  ;;  %v7196_v16 = vld [vmem:[%s9727_s7 + $0xf2c] ss:$16 sps:$4 sm:$0xff]   ;;  %v7197_v50 = vld [vmem:[%s9727_s7 + $0xf48] ss:$16 sps:$4 sm:$0xff]  }
 0x32b   :  { %5120 = vmatprep.subr.bf16.mxu1 %v7142_v32  ;;  %v7194_v32 = vld [vmem:[%s9727_s7 + $0xf28] ss:$16 sps:$4 sm:$0xff]  }
 0x32d   :  { %5607 = vmatpush1.bf16.msra.mxu0 %v7236_v24  ;;  %v7205_v24 = vld [vmem:[%s9727_s7 + $0xf8c] ss:$16 sps:$4 sm:$0xff]  }
 0x32e   :  { %5121 = vmatpush1.bf16.msra.mxu1 %v7140_v47  ;;  %5608 = vmatprep.subr.bf16.mxu0 %v7241_v52  ;;  %v7202_v47 = vld [vmem:[%s9727_s7 + $0xf6c] ss:$16 sps:$4 sm:$0xff]   ;;  %v7203_v52 = vld [vmem:[%s9727_s7 + $0xf88] ss:$16 sps:$4 sm:$0xff]  }
 0x32f   :  { %5122 = vmatprep.subr.bf16.mxu1 %v7145_v41  ;;  %v7200_v41 = vld [vmem:[%s9727_s7 + $0xf68] ss:$16 sps:$4 sm:$0xff]  }
 0x331   :  { %5609 = vmatpush1.bf16.msra.mxu0 %v7239_v43  ;;  %v7211_v43 = vld [vmem:[%s9727_s7 + $0xfcc] ss:$16 sps:$4 sm:$0xff]  }
 0x332   :  { %5123 = vmatpush1.bf16.msra.mxu1 %v7143_v36  ;;  %5610 = vmatprep.subr.bf16.mxu0 %v7244_v55  ;;  %v7208_v36 = vld [vmem:[%s9727_s7 + $0xfac] ss:$16 sps:$4 sm:$0xff]   ;;  %v7209_v55 = vld [vmem:[%s9727_s7 + $0xfc8] ss:$16 sps:$4 sm:$0xff]  }
 0x333   :  { %5124 = vmatprep.subr.bf16.mxu1 %v7148_v42  ;;  %v7206_v42 = vld [vmem:[%s9727_s7 + $0xfa8] ss:$16 sps:$4 sm:$0xff]  }
 0x335   :  { %5611 = vmatpush1.bf16.msra.mxu0 %v7242_v57  ;;  %v9598_v57 = vld [vmem:[%s9728_s8] sm:$0xf] }
 0x336   :  { %5125 = vmatpush1.bf16.msra.mxu1 %v7146_v44  ;;  %5612 = vmatprep.subr.bf16.mxu0 %v7247_v45  ;;  %v7214_v44 = vld [vmem:[%s9727_s7 + $0xfec] ss:$16 sps:$4 sm:$0xff]   ;;  %v1955_v45 = vrot.slane %v9598_v57, %v8012_v63 }
 0x337   :  { %5126 = vmatprep.subr.bf16.mxu1 %v7151_v6  ;;  %v7212_v6 = vld [vmem:[%s9727_s7 + $0xfe8] ss:$16 sps:$4 sm:$0xff]  }
 0x339   :  { %5613 = vmatpush1.bf16.msra.mxu0 %v7245_v51 }
 0x33a   :  { %5127 = vmatpush1.bf16.msra.mxu1 %v7149_v3  ;;  %5614 = vmatprep.subr.bf16.mxu0 %v7250_v56  ;;  %v1959_v3 = vrot.slane %v9598_v57, %v8018_v1 }
 0x33b   :  { %5128 = vmatprep.subr.bf16.mxu1 %v7154_v31  ;;  %v4567_v31 = vadd.f32 %v8770_v35, %v1955_v45  ;;  %v7268_v35 = vld [vmem:[%s9729_s9 + $0x114] ss:$8 sps:$4 sm:$0xff]  }
 0x33c   :  { %v4569_v51 = vadd.f32 %v8775_v37, %v1959_v3  ;;  %v7266_v37 = vld [vmem:[%s9729_s9 + $0x110] ss:$8 sps:$4 sm:$0xff]  }
 0x33d   :  { %5615 = vmatpush1.bf16.msra.mxu0 %v7248_v54 }
 0x33e   :  { %5129 = vmatpush1.bf16.msra.mxu1 %v7152_v27  ;;  %5616 = vmatprep.subr.bf16.mxu0 %v7253_v33 }
 0x33f   :  { %5130 = vmatprep.subr.bf16.mxu1 %v7157_v28 }
 0x341   :  { %5617 = vmatpush1.bf16.msra.mxu0 %v7251_v11 }
 0x342   :  { %5131 = vmatpush1.bf16.msra.mxu1 %v7155_v58  ;;  %5618 = vmatprep.subr.bf16.mxu0 %v7256_v60  ;;  %v7263_v60 = vld [vmem:[%s9729_s9 + $0x100] ss:$8 sps:$4 sm:$0xff]  }
 0x343   :  { %5132 = vmatprep.subr.bf16.mxu1 %v7160_v53 }
 0x345   :  { %5619 = vmatpush1.bf16.msra.mxu0 %v7254_v62  ;;  %v7269_v62 = vld [vmem:[%s9729_s9 + $0x120] ss:$8 sps:$4 sm:$0xff]  }
 0x346   :  { %5133 = vmatpush1.bf16.msra.mxu1 %v7158_v23  ;;  %5620 = vmatprep.subr.bf16.mxu0 %v7259_v25  ;;  %v7298_v25 = vld [vmem:[%s9729_s9 + $0x1b4] ss:$8 sps:$4 sm:$0xff]  }
 0x347   :  { %5134 = vmatprep.subr.bf16.mxu1 %v7163_v49  ;;  %v7271_v49 = vld [vmem:[%s9729_s9 + $0x124] ss:$8 sps:$4 sm:$0xff]  }
 0x349   :  { %5621 = vmatpush1.bf16.msra.mxu0 %v7257_v14  ;;  %v7296_v14 = vld [vmem:[%s9729_s9 + $0x1b0] ss:$8 sps:$4 sm:$0xff]  }
 0x34a   :  { %5135 = vmatpush1.bf16.msra.mxu1 %v7161_v30  ;;  %5622 = vmatprep.subr.bf16.mxu0 %v7262_v39  ;;  %v7274_v30 = vld [vmem:[%s9729_s9 + $0x134] ss:$8 sps:$4 sm:$0xff]  }
 0x34b   :  { %5136 = vmatprep.subr.bf16.mxu1 %v7166_v59  ;;  %v7272_v59 = vld [vmem:[%s9729_s9 + $0x130] ss:$8 sps:$4 sm:$0xff]   ;;  %v7304_v39 = vld [vmem:[%s9729_s9 + $0x1d4] ss:$8 sps:$4 sm:$0xff]  }
 0x34d   :  { %5623 = vmatpush1.bf16.msra.mxu0 %v7260_v18  ;;  %v7302_v18 = vld [vmem:[%s9729_s9 + $0x1d0] ss:$8 sps:$4 sm:$0xff]  }
 0x34e   :  { %5137 = vmatpush1.bf16.msra.mxu1 %v7164_v4  ;;  %5633 = vmatprep.subr.bf16.mxu0 %v7265_v21  ;;  %v7277_v4 = vld [vmem:[%s9729_s9 + $0x144] ss:$8 sps:$4 sm:$0xff]   ;;  %v7310_v21 = vld [vmem:[%s9729_s9 + $0x1f4] ss:$8 sps:$4 sm:$0xff]  }
 0x34f   :  { %5147 = vmatprep.subr.bf16.mxu1 %v7169_v5  ;;  %v7275_v5 = vld [vmem:[%s9729_s9 + $0x140] ss:$8 sps:$4 sm:$0xff]  }
 0x351   :  { %5139 = vmatmul.mubr.bf16.vlgmr.msra.gmra.mrb[36].mxu1 %v9104_v26  ;;  %v7178_v26 = vld [vmem:[%s9727_s7 + $0xe6c] ss:$16 sps:$4 sm:$0xff]  }
 0x352   :  { %5148 = vmatpush1.bf16.msra.mxu1 %v7167_v46  ;;  %5179 = vmatprep.mubr.bf16.mxu1 %v9112_v29  ;;  %v7176_v29 = vld [vmem:[%s9727_s7 + $0xe68] ss:$16 sps:$4 sm:$0xff]   ;;  %v7280_v46 = vld [vmem:[%s9729_s9 + $0x154] ss:$8 sps:$4 sm:$0xff]  }
 0x353   :  { %5149 = vmatprep.subr.bf16.mxu1 %v7172_v20  ;;  %v7278_v20 = vld [vmem:[%s9729_s9 + $0x150] ss:$8 sps:$4 sm:$0xff]  }
 0x356   :  { %5150 = vmatpush1.bf16.msra.mxu1 %v7170_v7  ;;  %v7283_v7 = vld [vmem:[%s9729_s9 + $0x164] ss:$8 sps:$4 sm:$0xff]  }
 0x357   :  { %5151 = vmatprep.subr.bf16.mxu1 %v7175_v34  ;;  %v7281_v34 = vld [vmem:[%s9729_s9 + $0x160] ss:$8 sps:$4 sm:$0xff]  }
 0x35a   :  { %5152 = vmatpush1.bf16.msra.mxu1 %v7173_v9  ;;  %v7286_v9 = vld [vmem:[%s9729_s9 + $0x174] ss:$8 sps:$4 sm:$0xff]  }
 0x35b   :  { %5153 = vmatprep.subr.bf16.mxu1 %v7178_v26  ;;  %v7284_v26 = vld [vmem:[%s9729_s9 + $0x170] ss:$8 sps:$4 sm:$0xff]  }
 0x35e   :  { %5154 = vmatpush1.bf16.msra.mxu1 %v7176_v29  ;;  %v7289_v29 = vld [vmem:[%s9729_s9 + $0x184] ss:$8 sps:$4 sm:$0xff]  }
 0x35f   :  { %5155 = vmatprep.subr.bf16.mxu1 %v7181_v10  ;;  %v7287_v10 = vld [vmem:[%s9729_s9 + $0x180] ss:$8 sps:$4 sm:$0xff]  }
 0x362   :  { %5156 = vmatpush1.bf16.msra.mxu1 %v7179_v8  ;;  %v7292_v8 = vld [vmem:[%s9729_s9 + $0x194] ss:$8 sps:$4 sm:$0xff]  }
 0x363   :  { %5157 = vmatprep.subr.bf16.mxu1 %v7184_v48  ;;  %v7290_v48 = vld [vmem:[%s9729_s9 + $0x190] ss:$8 sps:$4 sm:$0xff]  }
 0x366   :  { %5158 = vmatpush1.bf16.msra.mxu1 %v7182_v12  ;;  %v7295_v12 = vld [vmem:[%s9729_s9 + $0x1a4] ss:$8 sps:$4 sm:$0xff]  }
 0x367   :  { %5159 = vmatprep.subr.bf16.mxu1 %v7187_v13  ;;  %v7293_v13 = vld [vmem:[%s9729_s9 + $0x1a0] ss:$8 sps:$4 sm:$0xff]  }
 0x36a   :  { %5160 = vmatpush1.bf16.msra.mxu1 %v7185_v38  ;;  %v7301_v38 = vld [vmem:[%s9729_s9 + $0x1c4] ss:$8 sps:$4 sm:$0xff]  }
 0x36b   :  { %5161 = vmatprep.subr.bf16.mxu1 %v7190_v15  ;;  %v7299_v15 = vld [vmem:[%s9729_s9 + $0x1c0] ss:$8 sps:$4 sm:$0xff]  }
 0x36e   :  { %5162 = vmatpush1.bf16.msra.mxu1 %v7188_v22  ;;  %v7307_v22 = vld [vmem:[%s9729_s9 + $0x1e4] ss:$8 sps:$4 sm:$0xff]  }
 0x36f   :  { %5163 = vmatprep.subr.bf16.mxu1 %v7193_v19  ;;  %v7305_v19 = vld [vmem:[%s9729_s9 + $0x1e0] ss:$8 sps:$4 sm:$0xff]  }
 0x372   :  { %5164 = vmatpush1.bf16.msra.mxu1 %v7191_v40  ;;  %v7308_v40 = vld [vmem:[%s9729_s9 + $0x1f0] ss:$8 sps:$4 sm:$0xff]  }
 0x373   :  { %5165 = vmatprep.subr.bf16.mxu1 %v7196_v16  ;;  %v1963_v16 = vrot.slane %v9598_v57, %v8015_v0 }
 0x376   :  { %5166 = vmatpush1.bf16.msra.mxu1 %v7194_v32  ;;  %v1967_v32 = vrot.slane %v9598_v57, %v8021_v2 }
 0x377   :  { %5167 = vmatprep.subr.bf16.mxu1 %v7199_v17 }
 0x37a   :  { %5168 = vmatpush1.bf16.msra.mxu1 %v7197_v50 }
 0x37b   :  { %5169 = vmatprep.subr.bf16.mxu1 %v7202_v47 }
 0x37e   :  { %5170 = vmatpush1.bf16.msra.mxu1 %v7200_v41 }
 0x37f   :  { %5171 = vmatprep.subr.bf16.mxu1 %v7205_v24 }
 0x382   :  { %5172 = vmatpush1.bf16.msra.mxu1 %v7203_v52 }
 0x383   :  { %5173 = vmatprep.subr.bf16.mxu1 %v7208_v36 }
 0x386   :  { %5174 = vmatpush1.bf16.msra.mxu1 %v7206_v42 }
 0x387   :  { %5175 = vmatprep.subr.bf16.mxu1 %v7211_v43 }
 0x38a   :  { %5176 = vmatpush1.bf16.msra.mxu1 %v7209_v55 }
 0x38b   :  { %5177 = vmatprep.subr.bf16.mxu1 %v7214_v44  ;;  %v5260_v44 = vld [vmem:[%s9730_s10] sm:$0x3] }
 0x38c   :  { %v5265_v0 = vrot.slane %v5260_v44, %v8012_v63  ;;  %v5269_v2 = vrot.slane %v5260_v44, %v8018_v1 }
 0x38e   :  { %5178 = vmatpush1.bf16.msra.mxu1 %v7212_v6 }
 0x391   :  { %5180 = vmatmul.mubr.bf16.vlgmr.msra.gmra.mrb[36].mxu1 %v9299_v61 }
 0x3e3   :  { %v4853_v56 = vpop.f32.mrb[32].mxu0 }
 0x3e4   :  { %v6381_v27 = vadd.f32 %v4853_v56, %v4567_v31  ;;  %v4855_v28 = vpop.f32.mrb[33].mxu0 }
 0x3e5   :  { %v6383_v54 = vadd.f32 %v4855_v28, %v4569_v51  ;;  %v4857_v61 = vpop.f32.mrb[34].mxu0 }
 0x3e6   :  { %v5188_v33 = vmax.f32 %v6381_v27, 0.0  ;;  %v4858_v58 = vpop.f32.mrb[35].mxu0 }
 0x3e7   :  { %v5189_v53 = vmax.f32 %v6383_v54, 0.0 }
 0x3e8   :  { %v5192_v23 = vpack.c.bf16 %v5188_v33, %v5188_v33 }
 0x3e9   :  { %v5193_v11 = vpack.c.bf16 %v5189_v53, %v5189_v53 }
 0x3eb   :  { %5624 = vmatprep.mubr.bf16.mxu0 %v5193_v11 }
 0x3ec   :  { %5625 = vmatmul.mubr.bf16.vlgmr.msra.gmra.mrb[36].mxu0 %v5192_v23 }
 0x3ed   :  { %5634 = vmatpush1.bf16.msra.mxu0 %v7263_v60 }
 0x3ee   :  { %5635 = vmatprep.subr.bf16.mxu0 %v7268_v35 }
 0x3f1   :  { %5636 = vmatpush1.bf16.msra.mxu0 %v7266_v37 }
 0x3f2   :  { %5637 = vmatprep.subr.bf16.mxu0 %v7271_v49 }
 0x3f5   :  { %5638 = vmatpush1.bf16.msra.mxu0 %v7269_v62 }
 0x3f6   :  { %5639 = vmatprep.subr.bf16.mxu0 %v7274_v30 }
 0x3f9   :  { %5640 = vmatpush1.bf16.msra.mxu0 %v7272_v59 }
 0x3fa   :  { %5641 = vmatprep.subr.bf16.mxu0 %v7277_v4 }
 0x3fd   :  { %5642 = vmatpush1.bf16.msra.mxu0 %v7275_v5 }
 0x3fe   :  { %5643 = vmatprep.subr.bf16.mxu0 %v7280_v46 }
 0x401   :  { %5644 = vmatpush1.bf16.msra.mxu0 %v7278_v20 }
 0x402   :  { %5645 = vmatprep.subr.bf16.mxu0 %v7283_v7 }
 0x405   :  { %5646 = vmatpush1.bf16.msra.mxu0 %v7281_v34 }
 0x406   :  { %5647 = vmatprep.subr.bf16.mxu0 %v7286_v9 }
 0x409   :  { %5648 = vmatpush1.bf16.msra.mxu0 %v7284_v26 }
 0x40a   :  { %5649 = vmatprep.subr.bf16.mxu0 %v7289_v29 }
 0x40d   :  { %5650 = vmatpush1.bf16.msra.mxu0 %v7287_v10 }
 0x40e   :  { %5651 = vmatprep.subr.bf16.mxu0 %v7292_v8 }
 0x411   :  { %5652 = vmatpush1.bf16.msra.mxu0 %v7290_v48 }
 0x412   :  { %5653 = vmatprep.subr.bf16.mxu0 %v7295_v12 }
 0x415   :  { %5654 = vmatpush1.bf16.msra.mxu0 %v7293_v13 }
 0x416   :  { %5655 = vmatprep.subr.bf16.mxu0 %v7298_v25 }
 0x419   :  { %5656 = vmatpush1.bf16.msra.mxu0 %v7296_v14 }
 0x41a   :  { %5657 = vmatprep.subr.bf16.mxu0 %v7301_v38 }
 0x41d   :  { %5658 = vmatpush1.bf16.msra.mxu0 %v7299_v15 }
 0x41e   :  { %5659 = vmatprep.subr.bf16.mxu0 %v7304_v39 }
 0x421   :  { %5660 = vmatpush1.bf16.msra.mxu0 %v7302_v18 }
 0x422   :  { %5661 = vmatprep.subr.bf16.mxu0 %v7307_v22 }
 0x425   :  { %5662 = vmatpush1.bf16.msra.mxu0 %v7305_v19 }
 0x426   :  { %5663 = vmatprep.subr.bf16.mxu0 %v7310_v21 }
 0x429   :  { %5664 = vmatpush1.bf16.msra.mxu0 %v7308_v40 }
 0x464   :  { %v5181_v17 = vpop.f32.mrb[36].mxu1 }
 0x465   :  { %v6384_v50 = vadd.f32 %v5181_v17, %v1963_v16  ;;  %v5183_v47 = vpop.f32.mrb[37].mxu1 }
 0x466   :  { %v6385_v41 = vadd.f32 %v5183_v47, %v1967_v32  ;;  %v5185_v24 = vpop.f32.mrb[38].mxu1 }
 0x467   :  { %v5190_v52 = vmax.f32 %v6384_v50, 0.0  ;;  %v5186_v36 = vpop.f32.mrb[39].mxu1 }
 0x468   :  { %v5191_v42 = vmax.f32 %v6385_v41, 0.0 }
 0x469   :  { %v5194_v55 = vpack.c.bf16 %v5190_v52, %v5190_v52 }
 0x46a   :  { %v5195_v43 = vpack.c.bf16 %v5191_v42, %v5191_v42 }
 0x46c   :  { %5665 = vmatprep.mubr.bf16.mxu0 %v5195_v43 }
 0x46d   :  { %5666 = vmatmul.mubr.bf16.vlgmr.msra.gmra.mrb[36].mxu0 %v5194_v55 }
 0x540   :  { %v5667_v6 = vpop.f32.mrb[36].mxu0 }
 0x541   :  { %v6386_v57 = vadd.f32 %v5667_v6, %v5265_v0  ;;  %v5669_v45 = vpop.f32.mrb[37].mxu0 }
 0x542   :  { %v6387_v3 = vadd.f32 %v5669_v45, %v5269_v2  ;;  %v5671_v31 = vpop.f32.mrb[38].mxu0 }
 0x543   :  { %5674 = vst [vmem:[#allocation2] sm:$0xff] %v6386_v57  ;;  %v5672_v51 = vpop.f32.mrb[39].mxu0 }
 0x544   :  { %5675 = vst [vmem:[#allocation2 + $0x8] sm:$0xff] %v6387_v3 }
 0x545   :  { %7322 = shalt.err (!%p7319_p4)
}
 0x546   :  { %s7323_s0 = scalar_lea.hbm %s9731_s11, 256 }
 0x547   :  { %p7324_p5 = scmp.ne.s32.totalorder %s9731_s11, %s7323_s0  ;;  %p7327_p6 = scmp.lt.u32.totalorder %s7323_s0, %s9731_s11 }
 0x549   :  { %p7329_p7 = pnand %p7327_p6, %p7324_p5 }
 0x54b   :  { %7332 = shalt.err (!%p7329_p7)
}
 0x54c   :  { %5685 = dma.vmem_to_hbm [thread:$0]  %s5683_s24, 256, %s9731_s11, [#allocation3]  }
 0x54d   :  { %7333 = dma.done.wait [#allocation3], 256  }
 0x54e   :  { %7334 = vsyncadd [#allocation3], 4294967040 }
 0x54f   :  { %5689 = vsyncpa [#allocation3], 1 }

</bundles_post_ra>
